<compile_context>
chip_gen: v5e
topology: v5e:2x2
jax: 0.10.0
libtpu: 0.0.40
codegen_flags: <defaults>
</compile_context>

<pallas_src>
import functools

import jax
import jax.numpy as jnp
from jax.experimental import pallas as pl
from jax.experimental.pallas import tpu as pltpu


# --------------------------------------------------------------------------
# Helpers
# --------------------------------------------------------------------------
def _round_up(x, m):
    return (x + m - 1) // m * m


def _vmem_limit_bytes():
    """Generation-aware scoped-VMEM budget (~3/4 of physical, capped)."""
    try:
        cap = int(pltpu.get_tpu_info().vmem_capacity_bytes)
    except Exception:  # pragma: no cover - conservative fallback
        cap = 64 * 1024 * 1024
    return max(32 * 1024 * 1024, min(cap * 3 // 4, 110 * 1024 * 1024))


def _pool2x2(x):
    """2x2/2 max pool on NCHW (floor semantics, matches nn.MaxPool2d(2, 2))."""
    n, c, h, w = x.shape
    x = x[:, :, : (h // 2) * 2, : (w // 2) * 2]
    x = x.reshape(n, c, h // 2, 2, w // 2, 2)
    return jnp.max(x, axis=(3, 5))


def _pool_pad_select(hp_in, wpad_in, hp_out, wp_out, wpad_out, spad_out):
    """Constant 0/1 matrix that maps the flattened conv-output grid (width
    wpad_in) to the pooled + zero-padded + flattened next-conv input slab:
    row (2i)*wpad_in + 2j  ->  column (i+2)*wpad_out + (j+2); everything else
    (incl. the padding ring) stays exactly zero."""
    i = jnp.arange(hp_out)
    j = jnp.arange(wp_out)
    src = (2 * i[:, None] * wpad_in + 2 * j[None, :]).reshape(-1)
    dst = ((i[:, None] + 2) * wpad_out + (j[None, :] + 2)).reshape(-1)
    s = jnp.zeros((hp_in * wpad_in, spad_out), jnp.float32)
    s = s.at[src, dst].set(1.0)
    return s.astype(jnp.bfloat16)


# --------------------------------------------------------------------------
# The fused kernel: conv1 -> pool -> conv2 -> pool -> conv3 -> head
# --------------------------------------------------------------------------
def _decision_net_kernel(x_ref, segs_ref, w1_ref, sh1_ref, s1_ref,
                         w2_ref, sh2_ref, s2_ref, w3_ref, sh3_ref,
                         wa_ref, wm_ref, we_ref, o_ref, *,
                         wpad1, mout1, wpad2, mout2, wpad3, mout3,
                         wp3, inv_area3):
    f32, bf16 = jnp.float32, jnp.bfloat16
    m_y1 = mout1 + wpad1 + 1            # conv1 output width we need (incl. pool halo)
    m_y2 = mout2 + wpad2 + 1            # conv2 output width (incl. pool halo)

    # ---- stage 1: Conv(1040->8, 5x5, p=2) + BN + ReLU -----------------------
    # One stacked-filter matmul: g[(di*5+dj)*8+co, p] = sum_ci W[co,ci,di,dj]*x[ci,p]
    g = jnp.dot(w1_ref[...], x_ref[0], preferred_element_type=f32)   # (200, spad1)
    acc1 = jnp.zeros((8, m_y1), f32)
    for di in range(5):
        for dj in range(5):
            t = di * 5 + dj
            off = di * wpad1 + dj
            acc1 = acc1 + g[t * 8:(t + 1) * 8, off:off + m_y1]
    y1 = jnp.maximum(acc1 + sh1_ref[...], 0.0)                        # (8, m_y1) f32

    # fused 2x2 maxpool (neighbour maxima via static lane-offset slices) +
    # re-pad + flatten re-layout via a constant selection matmul.
    p1 = jnp.maximum(y1[:, :m_y1 - 1], y1[:, 1:m_y1])
    q1 = jnp.maximum(p1[:, :mout1], p1[:, wpad1:wpad1 + mout1])       # (8, mout1)
    q1 = jnp.concatenate([q1, jnp.zeros((8, mout1), f32)], axis=0)    # Cin 8 -> 16 pad
    x2 = jnp.dot(q1.astype(bf16), s1_ref[...],
                 preferred_element_type=f32).astype(bf16)             # (16, spad2)

    # ---- stage 2: Conv(8->16, 5x5, p=2) + BN + ReLU, im2col K=400 -----------
    cols2 = jnp.concatenate(
        [x2[:, di * wpad2 + dj: di * wpad2 + dj + m_y2]
         for di in range(5) for dj in range(5)], axis=0)              # (400, m_y2)
    y2 = jnp.maximum(
        jnp.dot(w2_ref[...], cols2, preferred_element_type=f32) + sh2_ref[...],
        0.0)                                                          # (16, m_y2)

    p2 = jnp.maximum(y2[:, :m_y2 - 1], y2[:, 1:m_y2])
    q2 = jnp.maximum(p2[:, :mout2], p2[:, wpad2:wpad2 + mout2])       # (16, mout2)
    x3 = jnp.dot(q2.astype(bf16), s2_ref[...],
                 preferred_element_type=f32).astype(bf16)             # (16, spad3)

    # ---- stage 3: Conv(16->32, 5x5, p=2) + BN + ReLU, im2col K=400 ----------
    cols3 = jnp.concatenate(
        [x3[:, di * wpad3 + dj: di * wpad3 + dj + mout3]
         for di in range(5) for dj in range(5)], axis=0)              # (400, mout3)
    y3 = jnp.maximum(
        jnp.dot(w3_ref[...], cols3, preferred_element_type=f32) + sh3_ref[...],
        0.0)                                                          # (32, mout3)

    # ---- head: global avg/max + Linear(66, 1, no bias) + Sigmoid ------------
    col = jax.lax.broadcasted_iota(jnp.int32, y3.shape, 1)
    valid = (col % wpad3) < wp3
    avg = jnp.sum(jnp.where(valid, y3, 0.0), axis=1, keepdims=True) * inv_area3
    mx = jnp.max(jnp.where(valid, y3, -jnp.inf), axis=1, keepdims=True)
    z = (jnp.sum(avg * wa_ref[...], axis=0, keepdims=True)
         + jnp.sum(mx * wm_ref[...], axis=0, keepdims=True)
         + jnp.sum(segs_ref[0] * we_ref[...], axis=1, keepdims=True))   # (1, 1)
    o_ref[...] = (1.0 / (1.0 + jnp.exp(-z))).reshape(1, 1, 1)


def _const_spec(shape):
    nd = len(shape)
    return pl.BlockSpec(shape, lambda *_: (0,) * nd)


# --------------------------------------------------------------------------
# Full forward pass
# --------------------------------------------------------------------------
def decision_net_forward(params, feature, seg_output):
    n, c, h, w = feature.shape
    assert c == 1024 and seg_output.shape == (n, 1, h, w)
    assert h >= 8 and w >= 8, "need at least 8x8 spatial input"

    hp1, wp1 = h // 2, w // 2
    hp2, wp2 = hp1 // 2, wp1 // 2
    hp3, wp3 = hp2 // 2, wp2 // 2
    wpad1, wpad2, wpad3 = wp1 + 4, wp2 + 4, wp3 + 4
    mout1, mout2, mout3 = hp1 * wpad1, hp2 * wpad2, hp3 * wpad3
    m_y1 = mout1 + wpad1 + 1
    m_y2 = mout2 + wpad2 + 1
    spad1 = _round_up(4 * wpad1 + 4 + m_y1, 128)   # lane-dense slab width
    spad2 = 4 * wpad2 + 4 + m_y2
    spad3 = 4 * wpad3 + 4 + mout3

    # Stage-1 pool + seg concat + Cin pad (1025->1040) + spatial zero-pad +
    # flatten + bf16 cast.  XLA fuses this into one pass over the big tensor.
    f_p = _pool2x2(feature)                                     # (N,1024,hp1,wp1)
    s_p = _pool2x2(seg_output)                                  # (N,1,hp1,wp1)
    x = jnp.concatenate(
        [f_p, s_p, jnp.zeros((n, 15, hp1, wp1), f_p.dtype)], axis=1)
    x = jnp.pad(x, ((0, 0), (0, 0), (2, 2), (2, wpad1 - wp1 - 2)))
    x = x.reshape(n, 1040, (hp1 + 4) * wpad1)
    x1 = jnp.pad(x, ((0, 0), (0, 0), (0, spad1 - (hp1 + 4) * wpad1)))
    x1 = x1.astype(jnp.bfloat16)                                # (N, 1040, spad1)

    seg_stats = jnp.stack([jnp.mean(seg_output, axis=(2, 3)),
                           jnp.max(seg_output, axis=(2, 3))], axis=-1)  # (N,1,2)

    s1 = _pool_pad_select(hp1, wpad1, hp2, wp2, wpad2, spad2)   # (mout1, spad2)
    s2 = _pool_pad_select(hp2, wpad2, hp3, wp3, wpad3, spad3)   # (mout2, spad3)

    kernel = functools.partial(
        _decision_net_kernel,
        wpad1=wpad1, mout1=mout1, wpad2=wpad2, mout2=mout2,
        wpad3=wpad3, mout3=mout3, wp3=wp3,
        inv_area3=1.0 / float(hp3 * wp3))

    out = pl.pallas_call(
        kernel,
        out_shape=jax.ShapeDtypeStruct((n, 1, 1), jnp.float32),
        grid=(n,),
        in_specs=[
            pl.BlockSpec((1, 1040, spad1), lambda i: (i, 0, 0)),   # x1 slab
            pl.BlockSpec((1, 1, 2), lambda i: (i, 0, 0)),          # seg stats
            _const_spec(params["w1"].shape),                       # (200, 1040)
            _const_spec((8, 1)),                                   # shift1
            _const_spec(s1.shape),                                 # pool/pad select 1
            _const_spec(params["w2"].shape),                       # (16, 400)
            _const_spec((16, 1)),                                  # shift2
            _const_spec(s2.shape),                                 # pool/pad select 2
            _const_spec(params["w3"].shape),                       # (32, 400)
            _const_spec((32, 1)),                                  # shift3
            _const_spec((32, 1)),                                  # fc: avg32 weights
            _const_spec((32, 1)),                                  # fc: max32 weights
            _const_spec((1, 2)),                                   # fc: seg weights
        ],
        out_specs=pl.BlockSpec((1, 1, 1), lambda i: (i, 0, 0)),
        compiler_params=pltpu.CompilerParams(
            dimension_semantics=("parallel",),
            vmem_limit_bytes=_vmem_limit_bytes()),
    )(x1, seg_stats, params["w1"], params["shift1"], s1,
      params["w2"], params["shift2"], s2, params["w3"], params["shift3"],
      params["fc_wa"], params["fc_wm"], params["fc_we"])

    return out.reshape(n, 1)


# --------------------------------------------------------------------------
# Parameters (deterministic synthetic init; shapes from decisionNet.__init__)
# --------------------------------------------------------------------------
def _bn_fold(gamma, beta, mean, var, conv_bias, eps=1e-5):
    scale = gamma / jnp.sqrt(var + eps)
    shift = beta + scale * (conv_bias - mean)
    return scale, shift


def init_params(key):
    def conv_block(k, cin, cout):
        ks = jax.random.split(k, 6)
        w = jax.random.normal(ks[0], (cout, cin, 5, 5), jnp.float32) * 0.05
        b = jax.random.normal(ks[1], (cout,), jnp.float32) * 0.05
        gamma = jax.random.uniform(ks[2], (cout,), jnp.float32, 0.5, 1.5)
        beta = jax.random.normal(ks[3], (cout,), jnp.float32) * 0.1
        rmean = jax.random.normal(ks[4], (cout,), jnp.float32) * 0.1
        rvar = jax.random.uniform(ks[5], (cout,), jnp.float32, 0.5, 1.5)
        scale, shift = _bn_fold(gamma, beta, rmean, rvar, b)
        return w * scale[:, None, None, None], shift        # BN scale folded into W

    k1, k2, k3, k4 = jax.random.split(key, 4)
    w1f, sh1 = conv_block(k1, 1025, 8)     # channels 0..1023 feature, 1024 seg
    w2f, sh2 = conv_block(k2, 8, 16)
    w3f, sh3 = conv_block(k3, 16, 32)
    fc_w = jax.random.normal(k4, (1, 66), jnp.float32) * 0.1

    # conv1: Cin 1025 -> 1040 zero pad, stacked-filter layout (25*Cout, Cin).
    w1p = jnp.pad(w1f, ((0, 0), (0, 15), (0, 0), (0, 0)))            # (8,1040,5,5)
    w1s = jnp.transpose(w1p, (2, 3, 0, 1)).reshape(200, 1040)        # [(di*5+dj)*8+co, ci]

    # conv2: Cin 8 -> 16 zero pad, im2col layout (Cout, 25*16).
    w2p = jnp.pad(w2f, ((0, 0), (0, 8), (0, 0), (0, 0)))             # (16,16,5,5)
    w2k = jnp.transpose(w2p, (0, 2, 3, 1)).reshape(16, 400)          # [co,(di*5+dj)*16+ci]

    # conv3: im2col layout (Cout, 25*16).
    w3k = jnp.transpose(w3f, (0, 2, 3, 1)).reshape(32, 400)

    return dict(
        w1=w1s.astype(jnp.bfloat16), shift1=sh1.reshape(8, 1).astype(jnp.float32),
        w2=w2k.astype(jnp.bfloat16), shift2=sh2.reshape(16, 1).astype(jnp.float32),
        w3=w3k.astype(jnp.bfloat16), shift3=sh3.reshape(32, 1).astype(jnp.float32),
        fc_wa=fc_w[0, 0:32].reshape(32, 1),     # weights for avg-pool(conv3)
        fc_wm=fc_w[0, 32:64].reshape(32, 1),    # weights for max-pool(conv3)
        fc_we=fc_w[0, 64:66].reshape(1, 2),     # weights for [avg(seg), max(seg)]
    )


# --------------------------------------------------------------------------
# Main
# --------------------------------------------------------------------------
if __name__ == "__main__":
    key = jax.random.PRNGKey(0)
    k_feat, k_seg, k_par = jax.random.split(key, 3)

    N, H, W = 2, 16, 16
    feature = jax.random.normal(k_feat, (N, 1024, H, W), jnp.float32)
    seg_output = jax.random.normal(k_seg, (N, 1, H, W), jnp.float32)
    params = init_params(k_par)

    fwd = jax.jit(decision_net_forward)
    out = jax.block_until_ready(fwd(params, feature, seg_output))

    assert out.shape == (N, 1), out.shape
    assert bool(jnp.all(jnp.isfinite(out)))
    assert bool(jnp.all((out >= 0.0) & (out <= 1.0)))  # sigmoid range
    print("KERNEL_OK")
</pallas_src>

<mosaic_0001>
module attributes {stable_mosaic.version = 11 : i64} {
  func.func @_decision_net_kernel(%arg0: i32, %arg1: memref<1x1040x256xbf16, #tpu.memory_space<vmem>>, %arg2: memref<1x1x2xf32, #tpu.memory_space<vmem>>, %arg3: memref<200x1040xbf16, #tpu.memory_space<vmem>>, %arg4: memref<8x1xf32, #tpu.memory_space<vmem>>, %arg5: memref<96x77xbf16, #tpu.memory_space<vmem>>, %arg6: memref<16x400xbf16, #tpu.memory_space<vmem>>, %arg7: memref<16x1xf32, #tpu.memory_space<vmem>>, %arg8: memref<32x40xbf16, #tpu.memory_space<vmem>>, %arg9: memref<32x400xbf16, #tpu.memory_space<vmem>>, %arg10: memref<32x1xf32, #tpu.memory_space<vmem>>, %arg11: memref<32x1xf32, #tpu.memory_space<vmem>>, %arg12: memref<32x1xf32, #tpu.memory_space<vmem>>, %arg13: memref<1x2xf32, #tpu.memory_space<vmem>>, %arg14: memref<1x1x1xf32, #tpu.memory_space<vmem>>) attributes {dimension_semantics = [#tpu.dimension_semantics<parallel>], iteration_bounds = array<i64: 2>, scalar_prefetch = 0 : i64, scratch_operands = 0 : i64, tpu.core_type = #tpu.core_type<tc>, window_params = [{transform_indices = @transform_0, window_bounds = array<i64: 1, 1040, 256>}, {transform_indices = @transform_1, window_bounds = array<i64: 1, 1, 2>}, {pipeline_mode = #tpu.pipeline_mode<synchronous>, transform_indices = @transform_2, window_bounds = array<i64: 200, 1040>}, {pipeline_mode = #tpu.pipeline_mode<synchronous>, transform_indices = @transform_3, window_bounds = array<i64: 8, 1>}, {pipeline_mode = #tpu.pipeline_mode<synchronous>, transform_indices = @transform_4, window_bounds = array<i64: 96, 77>}, {pipeline_mode = #tpu.pipeline_mode<synchronous>, transform_indices = @transform_5, window_bounds = array<i64: 16, 400>}, {pipeline_mode = #tpu.pipeline_mode<synchronous>, transform_indices = @transform_6, window_bounds = array<i64: 16, 1>}, {pipeline_mode = #tpu.pipeline_mode<synchronous>, transform_indices = @transform_7, window_bounds = array<i64: 32, 40>}, {pipeline_mode = #tpu.pipeline_mode<synchronous>, transform_indices = @transform_8, window_bounds = array<i64: 32, 400>}, {pipeline_mode = #tpu.pipeline_mode<synchronous>, transform_indices = @transform_9, window_bounds = array<i64: 32, 1>}, {pipeline_mode = #tpu.pipeline_mode<synchronous>, transform_indices = @transform_10, window_bounds = array<i64: 32, 1>}, {pipeline_mode = #tpu.pipeline_mode<synchronous>, transform_indices = @transform_11, window_bounds = array<i64: 32, 1>}, {pipeline_mode = #tpu.pipeline_mode<synchronous>, transform_indices = @transform_12, window_bounds = array<i64: 1, 2>}, {transform_indices = @transform_13, window_bounds = array<i64: 1, 1, 1>}]} {
    %c0 = arith.constant 0 : index
    %c0_0 = arith.constant 0 : index
    %0 = vector.load %arg3[%c0, %c0_0] : memref<200x1040xbf16, #tpu.memory_space<vmem>>, vector<200x1040xbf16>
    %c0_1 = arith.constant 0 : index
    %c0_2 = arith.constant 0 : index
    %c0_3 = arith.constant 0 : index
    %1 = vector.load %arg1[%c0_1, %c0_2, %c0_3] : memref<1x1040x256xbf16, #tpu.memory_space<vmem>>, vector<1x1040x256xbf16>
    %2 = vector.shape_cast %1 : vector<1x1040x256xbf16> to vector<1040x256xbf16>
    %cst = arith.constant dense<0.000000e+00> : vector<200x256xf32>
    %3 = tpu.matmul %0, %2, %cst {dimension_numbers = #tpu.dot_dimension_numbers<[1], [0], [0], [1], [0, 0, 1, 1], [], []>} : vector<200x1040xbf16>, vector<1040x256xbf16>, vector<200x256xf32> -> vector<200x256xf32>
    %cst_4 = arith.constant 0.000000e+00 : f32
    %4 = vector.broadcast %cst_4 : f32 to vector<8x109xf32>
    %5 = vector.extract_strided_slice %3 {offsets = [0, 0], sizes = [8, 109], strides = [1, 1]} : vector<200x256xf32> to vector<8x109xf32>
    %6 = arith.addf %4, %5 : vector<8x109xf32>
    %7 = vector.extract_strided_slice %3 {offsets = [8, 1], sizes = [8, 109], strides = [1, 1]} : vector<200x256xf32> to vector<8x109xf32>
    %8 = arith.addf %6, %7 : vector<8x109xf32>
    %9 = vector.extract_strided_slice %3 {offsets = [16, 2], sizes = [8, 109], strides = [1, 1]} : vector<200x256xf32> to vector<8x109xf32>
    %10 = arith.addf %8, %9 : vector<8x109xf32>
    %11 = vector.extract_strided_slice %3 {offsets = [24, 3], sizes = [8, 109], strides = [1, 1]} : vector<200x256xf32> to vector<8x109xf32>
    %12 = arith.addf %10, %11 : vector<8x109xf32>
    %13 = vector.extract_strided_slice %3 {offsets = [32, 4], sizes = [8, 109], strides = [1, 1]} : vector<200x256xf32> to vector<8x109xf32>
    %14 = arith.addf %12, %13 : vector<8x109xf32>
    %15 = vector.extract_strided_slice %3 {offsets = [40, 12], sizes = [8, 109], strides = [1, 1]} : vector<200x256xf32> to vector<8x109xf32>
    %16 = arith.addf %14, %15 : vector<8x109xf32>
    %17 = vector.extract_strided_slice %3 {offsets = [48, 13], sizes = [8, 109], strides = [1, 1]} : vector<200x256xf32> to vector<8x109xf32>
    %18 = arith.addf %16, %17 : vector<8x109xf32>
    %19 = vector.extract_strided_slice %3 {offsets = [56, 14], sizes = [8, 109], strides = [1, 1]} : vector<200x256xf32> to vector<8x109xf32>
    %20 = arith.addf %18, %19 : vector<8x109xf32>
    %21 = vector.extract_strided_slice %3 {offsets = [64, 15], sizes = [8, 109], strides = [1, 1]} : vector<200x256xf32> to vector<8x109xf32>
    %22 = arith.addf %20, %21 : vector<8x109xf32>
    %23 = vector.extract_strided_slice %3 {offsets = [72, 16], sizes = [8, 109], strides = [1, 1]} : vector<200x256xf32> to vector<8x109xf32>
    %24 = arith.addf %22, %23 : vector<8x109xf32>
    %25 = vector.extract_strided_slice %3 {offsets = [80, 24], sizes = [8, 109], strides = [1, 1]} : vector<200x256xf32> to vector<8x109xf32>
    %26 = arith.addf %24, %25 : vector<8x109xf32>
    %27 = vector.extract_strided_slice %3 {offsets = [88, 25], sizes = [8, 109], strides = [1, 1]} : vector<200x256xf32> to vector<8x109xf32>
    %28 = arith.addf %26, %27 : vector<8x109xf32>
    %29 = vector.extract_strided_slice %3 {offsets = [96, 26], sizes = [8, 109], strides = [1, 1]} : vector<200x256xf32> to vector<8x109xf32>
    %30 = arith.addf %28, %29 : vector<8x109xf32>
    %31 = vector.extract_strided_slice %3 {offsets = [104, 27], sizes = [8, 109], strides = [1, 1]} : vector<200x256xf32> to vector<8x109xf32>
    %32 = arith.addf %30, %31 : vector<8x109xf32>
    %33 = vector.extract_strided_slice %3 {offsets = [112, 28], sizes = [8, 109], strides = [1, 1]} : vector<200x256xf32> to vector<8x109xf32>
    %34 = arith.addf %32, %33 : vector<8x109xf32>
    %35 = vector.extract_strided_slice %3 {offsets = [120, 36], sizes = [8, 109], strides = [1, 1]} : vector<200x256xf32> to vector<8x109xf32>
    %36 = arith.addf %34, %35 : vector<8x109xf32>
    %37 = vector.extract_strided_slice %3 {offsets = [128, 37], sizes = [8, 109], strides = [1, 1]} : vector<200x256xf32> to vector<8x109xf32>
    %38 = arith.addf %36, %37 : vector<8x109xf32>
    %39 = vector.extract_strided_slice %3 {offsets = [136, 38], sizes = [8, 109], strides = [1, 1]} : vector<200x256xf32> to vector<8x109xf32>
    %40 = arith.addf %38, %39 : vector<8x109xf32>
    %41 = vector.extract_strided_slice %3 {offsets = [144, 39], sizes = [8, 109], strides = [1, 1]} : vector<200x256xf32> to vector<8x109xf32>
    %42 = arith.addf %40, %41 : vector<8x109xf32>
    %43 = vector.extract_strided_slice %3 {offsets = [152, 40], sizes = [8, 109], strides = [1, 1]} : vector<200x256xf32> to vector<8x109xf32>
    %44 = arith.addf %42, %43 : vector<8x109xf32>
    %45 = vector.extract_strided_slice %3 {offsets = [160, 48], sizes = [8, 109], strides = [1, 1]} : vector<200x256xf32> to vector<8x109xf32>
    %46 = arith.addf %44, %45 : vector<8x109xf32>
    %47 = vector.extract_strided_slice %3 {offsets = [168, 49], sizes = [8, 109], strides = [1, 1]} : vector<200x256xf32> to vector<8x109xf32>
    %48 = arith.addf %46, %47 : vector<8x109xf32>
    %49 = vector.extract_strided_slice %3 {offsets = [176, 50], sizes = [8, 109], strides = [1, 1]} : vector<200x256xf32> to vector<8x109xf32>
    %50 = arith.addf %48, %49 : vector<8x109xf32>
    %51 = vector.extract_strided_slice %3 {offsets = [184, 51], sizes = [8, 109], strides = [1, 1]} : vector<200x256xf32> to vector<8x109xf32>
    %52 = arith.addf %50, %51 : vector<8x109xf32>
    %53 = vector.extract_strided_slice %3 {offsets = [192, 52], sizes = [8, 109], strides = [1, 1]} : vector<200x256xf32> to vector<8x109xf32>
    %54 = arith.addf %52, %53 : vector<8x109xf32>
    %c0_5 = arith.constant 0 : index
    %c0_6 = arith.constant 0 : index
    %55 = vector.load %arg4[%c0_5, %c0_6] : memref<8x1xf32, #tpu.memory_space<vmem>>, vector<8x1xf32>
    %56 = vector.broadcast %55 : vector<8x1xf32> to vector<8x109xf32>
    %57 = arith.addf %54, %56 : vector<8x109xf32>
    %cst_7 = arith.constant 0.000000e+00 : f32
    %58 = vector.broadcast %cst_7 : f32 to vector<8x109xf32>
    %59 = arith.maximumf %57, %58 : vector<8x109xf32>
    %60 = vector.extract_strided_slice %59 {offsets = [0, 0], sizes = [8, 108], strides = [1, 1]} : vector<8x109xf32> to vector<8x108xf32>
    %61 = vector.extract_strided_slice %59 {offsets = [0, 1], sizes = [8, 108], strides = [1, 1]} : vector<8x109xf32> to vector<8x108xf32>
    %62 = arith.maximumf %60, %61 : vector<8x108xf32>
    %63 = vector.extract_strided_slice %62 {offsets = [0, 0], sizes = [8, 96], strides = [1, 1]} : vector<8x108xf32> to vector<8x96xf32>
    %64 = vector.extract_strided_slice %62 {offsets = [0, 12], sizes = [8, 96], strides = [1, 1]} : vector<8x108xf32> to vector<8x96xf32>
    %65 = arith.maximumf %63, %64 : vector<8x96xf32>
    %cst_8 = arith.constant 0.000000e+00 : f32
    %66 = vector.broadcast %cst_8 : f32 to vector<8x96xf32>
    %67 = tpu.concatenate %65, %66 in 0 : vector<8x96xf32>, vector<8x96xf32> -> vector<16x96xf32>
    %68 = arith.truncf %67 : vector<16x96xf32> to vector<16x96xbf16>
    %c0_9 = arith.constant 0 : index
    %c0_10 = arith.constant 0 : index
    %69 = vector.load %arg5[%c0_9, %c0_10] : memref<96x77xbf16, #tpu.memory_space<vmem>>, vector<96x77xbf16>
    %cst_11 = arith.constant dense<0.000000e+00> : vector<16x77xf32>
    %70 = tpu.matmul %68, %69, %cst_11 {dimension_numbers = #tpu.dot_dimension_numbers<[1], [0], [0], [1], [0, 0, 1, 1], [], []>} : vector<16x96xbf16>, vector<96x77xbf16>, vector<16x77xf32> -> vector<16x77xf32>
    %71 = arith.truncf %70 : vector<16x77xf32> to vector<16x77xbf16>
    %72 = vector.extract_strided_slice %71 {offsets = [0, 0], sizes = [16, 41], strides = [1, 1]} : vector<16x77xbf16> to vector<16x41xbf16>
    %73 = vector.extract_strided_slice %71 {offsets = [0, 1], sizes = [16, 41], strides = [1, 1]} : vector<16x77xbf16> to vector<16x41xbf16>
    %74 = vector.extract_strided_slice %71 {offsets = [0, 2], sizes = [16, 41], strides = [1, 1]} : vector<16x77xbf16> to vector<16x41xbf16>
    %75 = vector.extract_strided_slice %71 {offsets = [0, 3], sizes = [16, 41], strides = [1, 1]} : vector<16x77xbf16> to vector<16x41xbf16>
    %76 = vector.extract_strided_slice %71 {offsets = [0, 4], sizes = [16, 41], strides = [1, 1]} : vector<16x77xbf16> to vector<16x41xbf16>
    %77 = vector.extract_strided_slice %71 {offsets = [0, 8], sizes = [16, 41], strides = [1, 1]} : vector<16x77xbf16> to vector<16x41xbf16>
    %78 = vector.extract_strided_slice %71 {offsets = [0, 9], sizes = [16, 41], strides = [1, 1]} : vector<16x77xbf16> to vector<16x41xbf16>
    %79 = vector.extract_strided_slice %71 {offsets = [0, 10], sizes = [16, 41], strides = [1, 1]} : vector<16x77xbf16> to vector<16x41xbf16>
    %80 = vector.extract_strided_slice %71 {offsets = [0, 11], sizes = [16, 41], strides = [1, 1]} : vector<16x77xbf16> to vector<16x41xbf16>
    %81 = vector.extract_strided_slice %71 {offsets = [0, 12], sizes = [16, 41], strides = [1, 1]} : vector<16x77xbf16> to vector<16x41xbf16>
    %82 = vector.extract_strided_slice %71 {offsets = [0, 16], sizes = [16, 41], strides = [1, 1]} : vector<16x77xbf16> to vector<16x41xbf16>
    %83 = vector.extract_strided_slice %71 {offsets = [0, 17], sizes = [16, 41], strides = [1, 1]} : vector<16x77xbf16> to vector<16x41xbf16>
    %84 = vector.extract_strided_slice %71 {offsets = [0, 18], sizes = [16, 41], strides = [1, 1]} : vector<16x77xbf16> to vector<16x41xbf16>
    %85 = vector.extract_strided_slice %71 {offsets = [0, 19], sizes = [16, 41], strides = [1, 1]} : vector<16x77xbf16> to vector<16x41xbf16>
    %86 = vector.extract_strided_slice %71 {offsets = [0, 20], sizes = [16, 41], strides = [1, 1]} : vector<16x77xbf16> to vector<16x41xbf16>
    %87 = vector.extract_strided_slice %71 {offsets = [0, 24], sizes = [16, 41], strides = [1, 1]} : vector<16x77xbf16> to vector<16x41xbf16>
    %88 = vector.extract_strided_slice %71 {offsets = [0, 25], sizes = [16, 41], strides = [1, 1]} : vector<16x77xbf16> to vector<16x41xbf16>
    %89 = vector.extract_strided_slice %71 {offsets = [0, 26], sizes = [16, 41], strides = [1, 1]} : vector<16x77xbf16> to vector<16x41xbf16>
    %90 = vector.extract_strided_slice %71 {offsets = [0, 27], sizes = [16, 41], strides = [1, 1]} : vector<16x77xbf16> to vector<16x41xbf16>
    %91 = vector.extract_strided_slice %71 {offsets = [0, 28], sizes = [16, 41], strides = [1, 1]} : vector<16x77xbf16> to vector<16x41xbf16>
    %92 = vector.extract_strided_slice %71 {offsets = [0, 32], sizes = [16, 41], strides = [1, 1]} : vector<16x77xbf16> to vector<16x41xbf16>
    %93 = vector.extract_strided_slice %71 {offsets = [0, 33], sizes = [16, 41], strides = [1, 1]} : vector<16x77xbf16> to vector<16x41xbf16>
    %94 = vector.extract_strided_slice %71 {offsets = [0, 34], sizes = [16, 41], strides = [1, 1]} : vector<16x77xbf16> to vector<16x41xbf16>
    %95 = vector.extract_strided_slice %71 {offsets = [0, 35], sizes = [16, 41], strides = [1, 1]} : vector<16x77xbf16> to vector<16x41xbf16>
    %96 = vector.extract_strided_slice %71 {offsets = [0, 36], sizes = [16, 41], strides = [1, 1]} : vector<16x77xbf16> to vector<16x41xbf16>
    %97 = tpu.concatenate %72, %73, %74, %75, %76, %77, %78, %79, %80, %81, %82, %83, %84, %85, %86, %87 in 0 : vector<16x41xbf16>, vector<16x41xbf16>, vector<16x41xbf16>, vector<16x41xbf16>, vector<16x41xbf16>, vector<16x41xbf16>, vector<16x41xbf16>, vector<16x41xbf16>, vector<16x41xbf16>, vector<16x41xbf16>, vector<16x41xbf16>, vector<16x41xbf16>, vector<16x41xbf16>, vector<16x41xbf16>, vector<16x41xbf16>, vector<16x41xbf16> -> vector<256x41xbf16>
    %98 = tpu.concatenate %88, %89, %90, %91, %92, %93, %94, %95, %96 in 0 : vector<16x41xbf16>, vector<16x41xbf16>, vector<16x41xbf16>, vector<16x41xbf16>, vector<16x41xbf16>, vector<16x41xbf16>, vector<16x41xbf16>, vector<16x41xbf16>, vector<16x41xbf16> -> vector<144x41xbf16>
    %99 = tpu.concatenate %97, %98 in 0 : vector<256x41xbf16>, vector<144x41xbf16> -> vector<400x41xbf16>
    %c0_12 = arith.constant 0 : index
    %c0_13 = arith.constant 0 : index
    %100 = vector.load %arg6[%c0_12, %c0_13] : memref<16x400xbf16, #tpu.memory_space<vmem>>, vector<16x400xbf16>
    %cst_14 = arith.constant dense<0.000000e+00> : vector<16x41xf32>
    %101 = tpu.matmul %100, %99, %cst_14 {dimension_numbers = #tpu.dot_dimension_numbers<[1], [0], [0], [1], [0, 0, 1, 1], [], []>} : vector<16x400xbf16>, vector<400x41xbf16>, vector<16x41xf32> -> vector<16x41xf32>
    %c0_15 = arith.constant 0 : index
    %c0_16 = arith.constant 0 : index
    %102 = vector.load %arg7[%c0_15, %c0_16] : memref<16x1xf32, #tpu.memory_space<vmem>>, vector<16x1xf32>
    %103 = vector.broadcast %102 : vector<16x1xf32> to vector<16x41xf32>
    %104 = arith.addf %101, %103 : vector<16x41xf32>
    %cst_17 = arith.constant 0.000000e+00 : f32
    %105 = vector.broadcast %cst_17 : f32 to vector<16x41xf32>
    %106 = arith.maximumf %104, %105 : vector<16x41xf32>
    %107 = vector.extract_strided_slice %106 {offsets = [0, 0], sizes = [16, 40], strides = [1, 1]} : vector<16x41xf32> to vector<16x40xf32>
    %108 = vector.extract_strided_slice %106 {offsets = [0, 1], sizes = [16, 40], strides = [1, 1]} : vector<16x41xf32> to vector<16x40xf32>
    %109 = arith.maximumf %107, %108 : vector<16x40xf32>
    %110 = vector.extract_strided_slice %109 {offsets = [0, 0], sizes = [16, 32], strides = [1, 1]} : vector<16x40xf32> to vector<16x32xf32>
    %111 = vector.extract_strided_slice %109 {offsets = [0, 8], sizes = [16, 32], strides = [1, 1]} : vector<16x40xf32> to vector<16x32xf32>
    %112 = arith.maximumf %110, %111 : vector<16x32xf32>
    %113 = arith.truncf %112 : vector<16x32xf32> to vector<16x32xbf16>
    %c0_18 = arith.constant 0 : index
    %c0_19 = arith.constant 0 : index
    %114 = vector.load %arg8[%c0_18, %c0_19] : memref<32x40xbf16, #tpu.memory_space<vmem>>, vector<32x40xbf16>
    %cst_20 = arith.constant dense<0.000000e+00> : vector<16x40xf32>
    %115 = tpu.matmul %113, %114, %cst_20 {dimension_numbers = #tpu.dot_dimension_numbers<[1], [0], [0], [1], [0, 0, 1, 1], [], []>} : vector<16x32xbf16>, vector<32x40xbf16>, vector<16x40xf32> -> vector<16x40xf32>
    %116 = arith.truncf %115 : vector<16x40xf32> to vector<16x40xbf16>
    %117 = vector.extract_strided_slice %116 {offsets = [0, 0], sizes = [16, 12], strides = [1, 1]} : vector<16x40xbf16> to vector<16x12xbf16>
    %118 = vector.extract_strided_slice %116 {offsets = [0, 1], sizes = [16, 12], strides = [1, 1]} : vector<16x40xbf16> to vector<16x12xbf16>
    %119 = vector.extract_strided_slice %116 {offsets = [0, 2], sizes = [16, 12], strides = [1, 1]} : vector<16x40xbf16> to vector<16x12xbf16>
    %120 = vector.extract_strided_slice %116 {offsets = [0, 3], sizes = [16, 12], strides = [1, 1]} : vector<16x40xbf16> to vector<16x12xbf16>
    %121 = vector.extract_strided_slice %116 {offsets = [0, 4], sizes = [16, 12], strides = [1, 1]} : vector<16x40xbf16> to vector<16x12xbf16>
    %122 = vector.extract_strided_slice %116 {offsets = [0, 6], sizes = [16, 12], strides = [1, 1]} : vector<16x40xbf16> to vector<16x12xbf16>
    %123 = vector.extract_strided_slice %116 {offsets = [0, 7], sizes = [16, 12], strides = [1, 1]} : vector<16x40xbf16> to vector<16x12xbf16>
    %124 = vector.extract_strided_slice %116 {offsets = [0, 8], sizes = [16, 12], strides = [1, 1]} : vector<16x40xbf16> to vector<16x12xbf16>
    %125 = vector.extract_strided_slice %116 {offsets = [0, 9], sizes = [16, 12], strides = [1, 1]} : vector<16x40xbf16> to vector<16x12xbf16>
    %126 = vector.extract_strided_slice %116 {offsets = [0, 10], sizes = [16, 12], strides = [1, 1]} : vector<16x40xbf16> to vector<16x12xbf16>
    %127 = vector.extract_strided_slice %116 {offsets = [0, 12], sizes = [16, 12], strides = [1, 1]} : vector<16x40xbf16> to vector<16x12xbf16>
    %128 = vector.extract_strided_slice %116 {offsets = [0, 13], sizes = [16, 12], strides = [1, 1]} : vector<16x40xbf16> to vector<16x12xbf16>
    %129 = vector.extract_strided_slice %116 {offsets = [0, 14], sizes = [16, 12], strides = [1, 1]} : vector<16x40xbf16> to vector<16x12xbf16>
    %130 = vector.extract_strided_slice %116 {offsets = [0, 15], sizes = [16, 12], strides = [1, 1]} : vector<16x40xbf16> to vector<16x12xbf16>
    %131 = vector.extract_strided_slice %116 {offsets = [0, 16], sizes = [16, 12], strides = [1, 1]} : vector<16x40xbf16> to vector<16x12xbf16>
    %132 = vector.extract_strided_slice %116 {offsets = [0, 18], sizes = [16, 12], strides = [1, 1]} : vector<16x40xbf16> to vector<16x12xbf16>
    %133 = vector.extract_strided_slice %116 {offsets = [0, 19], sizes = [16, 12], strides = [1, 1]} : vector<16x40xbf16> to vector<16x12xbf16>
    %134 = vector.extract_strided_slice %116 {offsets = [0, 20], sizes = [16, 12], strides = [1, 1]} : vector<16x40xbf16> to vector<16x12xbf16>
    %135 = vector.extract_strided_slice %116 {offsets = [0, 21], sizes = [16, 12], strides = [1, 1]} : vector<16x40xbf16> to vector<16x12xbf16>
    %136 = vector.extract_strided_slice %116 {offsets = [0, 22], sizes = [16, 12], strides = [1, 1]} : vector<16x40xbf16> to vector<16x12xbf16>
    %137 = vector.extract_strided_slice %116 {offsets = [0, 24], sizes = [16, 12], strides = [1, 1]} : vector<16x40xbf16> to vector<16x12xbf16>
    %138 = vector.extract_strided_slice %116 {offsets = [0, 25], sizes = [16, 12], strides = [1, 1]} : vector<16x40xbf16> to vector<16x12xbf16>
    %139 = vector.extract_strided_slice %116 {offsets = [0, 26], sizes = [16, 12], strides = [1, 1]} : vector<16x40xbf16> to vector<16x12xbf16>
    %140 = vector.extract_strided_slice %116 {offsets = [0, 27], sizes = [16, 12], strides = [1, 1]} : vector<16x40xbf16> to vector<16x12xbf16>
    %141 = vector.extract_strided_slice %116 {offsets = [0, 28], sizes = [16, 12], strides = [1, 1]} : vector<16x40xbf16> to vector<16x12xbf16>
    %142 = tpu.concatenate %117, %118, %119, %120, %121, %122, %123, %124, %125, %126, %127, %128, %129, %130, %131, %132 in 0 : vector<16x12xbf16>, vector<16x12xbf16>, vector<16x12xbf16>, vector<16x12xbf16>, vector<16x12xbf16>, vector<16x12xbf16>, vector<16x12xbf16>, vector<16x12xbf16>, vector<16x12xbf16>, vector<16x12xbf16>, vector<16x12xbf16>, vector<16x12xbf16>, vector<16x12xbf16>, vector<16x12xbf16>, vector<16x12xbf16>, vector<16x12xbf16> -> vector<256x12xbf16>
    %143 = tpu.concatenate %133, %134, %135, %136, %137, %138, %139, %140, %141 in 0 : vector<16x12xbf16>, vector<16x12xbf16>, vector<16x12xbf16>, vector<16x12xbf16>, vector<16x12xbf16>, vector<16x12xbf16>, vector<16x12xbf16>, vector<16x12xbf16>, vector<16x12xbf16> -> vector<144x12xbf16>
    %144 = tpu.concatenate %142, %143 in 0 : vector<256x12xbf16>, vector<144x12xbf16> -> vector<400x12xbf16>
    %c0_21 = arith.constant 0 : index
    %c0_22 = arith.constant 0 : index
    %145 = vector.load %arg9[%c0_21, %c0_22] : memref<32x400xbf16, #tpu.memory_space<vmem>>, vector<32x400xbf16>
    %cst_23 = arith.constant dense<0.000000e+00> : vector<32x12xf32>
    %146 = tpu.matmul %145, %144, %cst_23 {dimension_numbers = #tpu.dot_dimension_numbers<[1], [0], [0], [1], [0, 0, 1, 1], [], []>} : vector<32x400xbf16>, vector<400x12xbf16>, vector<32x12xf32> -> vector<32x12xf32>
    %c0_24 = arith.constant 0 : index
    %c0_25 = arith.constant 0 : index
    %147 = vector.load %arg10[%c0_24, %c0_25] : memref<32x1xf32, #tpu.memory_space<vmem>>, vector<32x1xf32>
    %148 = vector.broadcast %147 : vector<32x1xf32> to vector<32x12xf32>
    %149 = arith.addf %146, %148 : vector<32x12xf32>
    %cst_26 = arith.constant 0.000000e+00 : f32
    %150 = vector.broadcast %cst_26 : f32 to vector<32x12xf32>
    %151 = arith.maximumf %149, %150 : vector<32x12xf32>
    %152 = tpu.iota {dimensions = array<i32: 1>} : vector<32x12xi32>
    %c6_i32 = arith.constant 6 : i32
    %c0_i32 = arith.constant 0 : i32
    %153 = arith.cmpi eq, %c6_i32, %c0_i32 : i32
    %c1_i32 = arith.constant 1 : i32
    %154 = arith.select %153, %c1_i32, %c6_i32 : i32
    %155 = vector.broadcast %154 : i32 to vector<32x12xi32>
    %156 = arith.remsi %152, %155 : vector<32x12xi32>
    %c0_i32_27 = arith.constant 0 : i32
    %157 = vector.broadcast %c0_i32_27 : i32 to vector<32x12xi32>
    %158 = arith.cmpi ne, %156, %157 : vector<32x12xi32>
    %c0_i32_28 = arith.constant 0 : i32
    %159 = vector.broadcast %c0_i32_28 : i32 to vector<32x12xi32>
    %160 = arith.cmpi slt, %156, %159 : vector<32x12xi32>
    %c0_i32_29 = arith.constant 0 : i32
    %161 = arith.cmpi slt, %154, %c0_i32_29 : i32
    %162 = vector.broadcast %161 : i1 to vector<32x12xi1>
    %163 = vector.broadcast %162 : vector<32x12xi1> to vector<32x12xi1>
    %164 = arith.xori %160, %163 : vector<32x12xi1>
    %165 = arith.andi %164, %158 : vector<32x12xi1>
    %166 = vector.broadcast %154 : i32 to vector<32x12xi32>
    %167 = arith.addi %156, %166 : vector<32x12xi32>
    %168 = arith.select %165, %167, %156 : vector<32x12xi1>, vector<32x12xi32>
    %c2_i32 = arith.constant 2 : i32
    %169 = vector.broadcast %c2_i32 : i32 to vector<32x12xi32>
    %170 = arith.cmpi slt, %168, %169 : vector<32x12xi32>
    %cst_30 = arith.constant 0.000000e+00 : f32
    %171 = vector.broadcast %cst_30 : f32 to vector<32x12xf32>
    %172 = arith.select %170, %151, %171 : vector<32x12xi1>, vector<32x12xf32>
    %cst_31 = arith.constant dense<0.000000e+00> : vector<32xf32>
    %173 = vector.multi_reduction <add>, %172, %cst_31 [1] : vector<32x12xf32> to vector<32xf32>
    %174 = vector.shape_cast %173 : vector<32xf32> to vector<32x1xf32>
    %cst_32 = arith.constant 2.500000e-01 : f32
    %175 = vector.broadcast %cst_32 : f32 to vector<32x1xf32>
    %176 = arith.mulf %174, %175 : vector<32x1xf32>
    %cst_33 = arith.constant 0xFF800000 : f32
    %177 = vector.broadcast %cst_33 : f32 to vector<32x12xf32>
    %178 = arith.select %170, %151, %177 : vector<32x12xi1>, vector<32x12xf32>
    %cst_34 = arith.constant dense<0xFF800000> : vector<32xf32>
    %179 = vector.multi_reduction <maximumf>, %178, %cst_34 [1] : vector<32x12xf32> to vector<32xf32>
    %180 = vector.shape_cast %179 : vector<32xf32> to vector<32x1xf32>
    %c0_35 = arith.constant 0 : index
    %c0_36 = arith.constant 0 : index
    %181 = vector.load %arg11[%c0_35, %c0_36] : memref<32x1xf32, #tpu.memory_space<vmem>>, vector<32x1xf32>
    %182 = arith.mulf %176, %181 : vector<32x1xf32>
    %cst_37 = arith.constant dense<0.000000e+00> : vector<1xf32>
    %183 = vector.multi_reduction <add>, %182, %cst_37 [0] : vector<32x1xf32> to vector<1xf32>
    %184 = vector.shape_cast %183 : vector<1xf32> to vector<1x1xf32>
    %c0_38 = arith.constant 0 : index
    %c0_39 = arith.constant 0 : index
    %185 = vector.load %arg12[%c0_38, %c0_39] : memref<32x1xf32, #tpu.memory_space<vmem>>, vector<32x1xf32>
    %186 = arith.mulf %180, %185 : vector<32x1xf32>
    %cst_40 = arith.constant dense<0.000000e+00> : vector<1xf32>
    %187 = vector.multi_reduction <add>, %186, %cst_40 [0] : vector<32x1xf32> to vector<1xf32>
    %188 = vector.shape_cast %187 : vector<1xf32> to vector<1x1xf32>
    %189 = arith.addf %184, %188 : vector<1x1xf32>
    %c0_41 = arith.constant 0 : index
    %c0_42 = arith.constant 0 : index
    %c0_43 = arith.constant 0 : index
    %190 = vector.load %arg2[%c0_41, %c0_42, %c0_43] : memref<1x1x2xf32, #tpu.memory_space<vmem>>, vector<1x1x2xf32>
    %191 = vector.shape_cast %190 : vector<1x1x2xf32> to vector<1x2xf32>
    %c0_44 = arith.constant 0 : index
    %c0_45 = arith.constant 0 : index
    %192 = vector.load %arg13[%c0_44, %c0_45] : memref<1x2xf32, #tpu.memory_space<vmem>>, vector<1x2xf32>
    %193 = arith.mulf %191, %192 : vector<1x2xf32>
    %cst_46 = arith.constant dense<0.000000e+00> : vector<1xf32>
    %194 = vector.multi_reduction <add>, %193, %cst_46 [1] : vector<1x2xf32> to vector<1xf32>
    %195 = vector.shape_cast %194 : vector<1xf32> to vector<1x1xf32>
    %196 = arith.addf %189, %195 : vector<1x1xf32>
    %cst_47 = arith.constant 0.000000e+00 : f32
    %197 = vector.broadcast %cst_47 : f32 to vector<1x1xf32>
    %198 = arith.subf %197, %196 : vector<1x1xf32>
    %199 = math.exp %198 : vector<1x1xf32>
    %cst_48 = arith.constant 1.000000e+00 : f32
    %200 = vector.broadcast %cst_48 : f32 to vector<1x1xf32>
    %201 = arith.addf %200, %199 : vector<1x1xf32>
    %cst_49 = arith.constant 1.000000e+00 : f32
    %202 = vector.broadcast %cst_49 : f32 to vector<1x1xf32>
    %203 = arith.divf %202, %201 : vector<1x1xf32>
    %204 = vector.shape_cast %203 : vector<1x1xf32> to vector<1x1x1xf32>
    %c0_50 = arith.constant 0 : index
    %c0_51 = arith.constant 0 : index
    %c0_52 = arith.constant 0 : index
    %205 = vector.load %arg14[%c0_50, %c0_51, %c0_52] : memref<1x1x1xf32, #tpu.memory_space<vmem>>, vector<1x1x1xf32>
    tpu.vector_store %arg14[%c0_50, %c0_51, %c0_52], %204 {strides = array<i32>} : memref<1x1x1xf32, #tpu.memory_space<vmem>>, vector<1x1x1xf32>,
    return
  }
  func.func @transform_0(%arg0: i32) -> (i32, i32, i32) {
    %c0_i32 = arith.constant 0 : i32
    %c0_i32_0 = arith.constant 0 : i32
    %c0_i32_1 = arith.constant 0 : i32
    return %arg0, %c0_i32, %c0_i32_0 : i32, i32, i32
  }
  func.func @transform_1(%arg0: i32) -> (i32, i32, i32) {
    %c0_i32 = arith.constant 0 : i32
    %c0_i32_0 = arith.constant 0 : i32
    %c0_i32_1 = arith.constant 0 : i32
    return %arg0, %c0_i32, %c0_i32_0 : i32, i32, i32
  }
  func.func @transform_2(%arg0: i32) -> (i32, i32) {
    %c0_i32 = arith.constant 0 : i32
    %c0_i32_0 = arith.constant 0 : i32
    %c0_i32_1 = arith.constant 0 : i32
    return %c0_i32, %c0_i32_0 : i32, i32
  }
  func.func @transform_3(%arg0: i32) -> (i32, i32) {
    %c0_i32 = arith.constant 0 : i32
    %c0_i32_0 = arith.constant 0 : i32
    %c0_i32_1 = arith.constant 0 : i32
    return %c0_i32, %c0_i32_0 : i32, i32
  }
  func.func @transform_4(%arg0: i32) -> (i32, i32) {
    %c0_i32 = arith.constant 0 : i32
    %c0_i32_0 = arith.constant 0 : i32
    %c0_i32_1 = arith.constant 0 : i32
    return %c0_i32, %c0_i32_0 : i32, i32
  }
  func.func @transform_5(%arg0: i32) -> (i32, i32) {
    %c0_i32 = arith.constant 0 : i32
    %c0_i32_0 = arith.constant 0 : i32
    %c0_i32_1 = arith.constant 0 : i32
    return %c0_i32, %c0_i32_0 : i32, i32
  }
  func.func @transform_6(%arg0: i32) -> (i32, i32) {
    %c0_i32 = arith.constant 0 : i32
    %c0_i32_0 = arith.constant 0 : i32
    %c0_i32_1 = arith.constant 0 : i32
    return %c0_i32, %c0_i32_0 : i32, i32
  }
  func.func @transform_7(%arg0: i32) -> (i32, i32) {
    %c0_i32 = arith.constant 0 : i32
    %c0_i32_0 = arith.constant 0 : i32
    %c0_i32_1 = arith.constant 0 : i32
    return %c0_i32, %c0_i32_0 : i32, i32
  }
  func.func @transform_8(%arg0: i32) -> (i32, i32) {
    %c0_i32 = arith.constant 0 : i32
    %c0_i32_0 = arith.constant 0 : i32
    %c0_i32_1 = arith.constant 0 : i32
    return %c0_i32, %c0_i32_0 : i32, i32
  }
  func.func @transform_9(%arg0: i32) -> (i32, i32) {
    %c0_i32 = arith.constant 0 : i32
    %c0_i32_0 = arith.constant 0 : i32
    %c0_i32_1 = arith.constant 0 : i32
    return %c0_i32, %c0_i32_0 : i32, i32
  }
  func.func @transform_10(%arg0: i32) -> (i32, i32) {
    %c0_i32 = arith.constant 0 : i32
    %c0_i32_0 = arith.constant 0 : i32
    %c0_i32_1 = arith.constant 0 : i32
    return %c0_i32, %c0_i32_0 : i32, i32
  }
  func.func @transform_11(%arg0: i32) -> (i32, i32) {
    %c0_i32 = arith.constant 0 : i32
    %c0_i32_0 = arith.constant 0 : i32
    %c0_i32_1 = arith.constant 0 : i32
    return %c0_i32, %c0_i32_0 : i32, i32
  }
  func.func @transform_12(%arg0: i32) -> (i32, i32) {
    %c0_i32 = arith.constant 0 : i32
    %c0_i32_0 = arith.constant 0 : i32
    %c0_i32_1 = arith.constant 0 : i32
    return %c0_i32, %c0_i32_0 : i32, i32
  }
  func.func @transform_13(%arg0: i32) -> (i32, i32, i32) {
    %c0_i32 = arith.constant 0 : i32
    %c0_i32_0 = arith.constant 0 : i32
    %c0_i32_1 = arith.constant 0 : i32
    return %arg0, %c0_i32, %c0_i32_0 : i32, i32, i32
  }
}

</mosaic_0001>

<bundles_post_ra>
// kernel: decision_net_forward.1
= control target key start
LH: loop header
LB: loop body
LE: loop exit
PB: predicated region body
PF: predicated region fallthrough
CT: control target
= control target key end

     0   :  { %s5668_s25 = smov 0   ;;  %s7886_s0 = inlined_call_operand.vmem [shape: bf16[2,1040,256], index: 0, kind: input, shape index: {}]   ;;  %s7887_s1 = inlined_call_operand.vmem [shape: f32[2,1,2], index: 1, kind: input, shape index: {}]   ;;  %s7888_s2 = inlined_call_operand.vmem [shape: bf16[200,1040], index: 2, kind: input, shape index: {}]   ;;  %s7889_s3 = inlined_call_operand.vmem [shape: f32[8,1], index: 3, kind: input, shape index: {}]   ;;  %s7890_s4 = inlined_call_operand.vmem [shape: bf16[96,77], index: 4, kind: input, shape index: {}]   ;;  %s7891_s5 = inlined_call_operand.vmem [shape: bf16[16,400], index: 5, kind: input, shape index: {}]   ;;  %s7892_s6 = inlined_call_operand.vmem [shape: f32[16,1], index: 6, kind: input, shape index: {}]   ;;  %s7893_s7 = inlined_call_operand.vmem [shape: bf16[32,40], index: 7, kind: input, shape index: {}]   ;;  %s7894_s8 = inlined_call_operand.vmem [shape: bf16[32,400], index: 8, kind: input, shape index: {}]   ;;  %s7895_s9 = inlined_call_operand.vmem [shape: f32[32,1], index: 9, kind: input, shape index: {}]   ;;  %s7896_s10 = inlined_call_operand.vmem [shape: f32[32,1], index: 10, kind: input, shape index: {}]   ;;  %s7897_s11 = inlined_call_operand.vmem [shape: f32[32,1], index: 11, kind: input, shape index: {}]   ;;  %s7898_s12 = inlined_call_operand.vmem [shape: f32[1,2], index: 12, kind: input, shape index: {}]   ;;  %s7899_s13 = inlined_call_operand.vmem [shape: f32[2,1,1], index: 13, kind: output, shape index: {}]  }
   0x1   :  { %8007 = sst [smem:[#allocation86_spill]] %s7886_s0 }
   0x2 LB: > { %s4147_s26 = sadd.s32 4294967295, %s5560_s25   ;;  %p4151_p0 = scmp.ge.s32.totalorder %s5560_s25, 1  ;;  %s5560_s25 = sphi %s5668_s25, %s23_s25  }
   0x3   : > { %p395_p1 = scmp.lt.s32.totalorder %s5560_s25, 3 }
   0x5   : > { %p396_p2 = pnand %p4151_p0, %p395_p1 }
   0x7   : > { %399 = sbr.rel (%p396_p2) target bundleno = 3020 (0xbcc), region = 72 }
   0xc   : > { %p440_p3 = scmp.lt.s32.totalorder %s4147_s26, 1  ;;  %s8008_s0 = sld [smem:[#allocation86_spill]]  ;;  %v4155_v46 = vld [vmem:[%s7888_s2] sm:$0xf]  ;;  %v5222_v47 = vld [vmem:[%s7888_s2 + $0x20] sm:$0xf0] }
   0xd   : > { %v4551_v53 = vld [vmem:[%s7888_s2 + $0x318] sm:$0xf]  ;;  %v5321_v54 = vld [vmem:[%s7888_s2 + $0x338] sm:$0xf0]  ;;  %v5218_v55 = vld [vmem:[%s7888_s2 + $0x4] sm:$0xf]  ;;  %v5745_v63 = vor.u32 %v5222_v47, %v4155_v46 }
   0xe   : > { %s8195_s26 = smov (!%p440_p3, %s4147_s26), 1  ;;  %v4157_v57 = vld [vmem:[%s7888_s2 + $0x24] sm:$0xf0]  ;;  %v5317_v58 = vld [vmem:[%s7888_s2 + $0x31c] sm:$0xf]  ;;  %vm1928_vm0 = vcmask 130048  }
   0xf   : > { %s5492_s27 = smul.u32 1040, %s8195_s26  ;;  %v4553_v59 = vld [vmem:[%s7888_s2 + $0x33c] sm:$0xf0]  ;;  %s7997_s22 = smov 127   ;;  %vm3244_vm1 = vcmask 850944   ;;  %vm3254_vm2 = vcmask 842752  }
  0x10   : > { %s7993_s29 = smov 126   ;;  %s7991_s14 = smov 125   ;;  %vm3264_vm3 = vcmask 834560   ;;  %vm3274_vm4 = vcmask 826368   ;;  %vm3284_vm5 = vcmask 818176   ;;  %vm3294_vm6 = vcmask 752640  }
  0x11   : > { %s7989_s19 = smov 124   ;;  %s7995_s20 = smov 116   ;;  %vm3304_vm7 = vcmask 744448   ;;  %vm3314_vm8 = vcmask 736256   ;;  %vm3324_vm9 = vcmask 728064   ;;  %vm3334_vm10 = vcmask 719872  }
  0x12   : > { %s5682_s30 = scalar_lea.vmem %s8008_s0, %s5492_s27  ;;  %s7984_s28 = smov 115   ;;  %vm3344_vm11 = vcmask 654336   ;;  %vm3354_vm12 = vcmask 646144   ;;  %vm3364_vm13 = vcmask 637952   ;;  %vm3374_vm14 = vcmask 629760  }
  0x13   : > { %v4643_v0 = vld [vmem:[%s5682_s30 + $0x70] sm:$0xf]  ;;  %v5341_v1 = vld [vmem:[%s5682_s30 + $0x74] sm:$0xf0]  ;;  %v4635_v5 = vld [vmem:[%s5682_s30 + $0x60] sm:$0xf] }
  0x14   : > { %v4707_v2 = vld [vmem:[%s5682_s30 + $0xf0] sm:$0xf]  ;;  %v4644_v3 = vor.u32 %v5341_v1, %v4643_v0  ;;  %v5357_v4 = vld [vmem:[%s5682_s30 + $0xf4] sm:$0xf0]  ;;  %v5339_v6 = vld [vmem:[%s5682_s30 + $0x64] sm:$0xf0]  ;;  %v5747_v0 = vor.u32 %v5321_v54, %v4551_v53 }
  0x15   : > { %v4708_v7 = vor.u32 %v5357_v4, %v4707_v2  ;;  %v4699_v8 = vld [vmem:[%s5682_s30 + $0xe0] sm:$0xf]  ;;  %v5355_v9 = vld [vmem:[%s5682_s30 + $0xe4] sm:$0xf0]  ;;  %v4636_v10 = vor.u32 %v5339_v6, %v4635_v5  ;;  %v4627_v12 = vld [vmem:[%s5682_s30 + $0x50] sm:$0xf]  ;;  %v5752_v4 = vor.u32 %v5218_v55, %v4157_v57  ;;  %v5754_v5 = vor.u32 %v5317_v58, %v4553_v59 }
  0x16   : > { %1968 = vmatpush.bf16.msra.mxu0 %v4644_v3  ;;  %5476 = vmatpush.bf16.msra.mxu2 %v4644_v3  ;;  %v4700_v11 = vor.u32 %v5355_v9, %v4699_v8  ;;  %v5337_v13 = vld [vmem:[%s5682_s30 + $0x54] sm:$0xf0]  ;;  %v4691_v14 = vld [vmem:[%s5682_s30 + $0xd0] sm:$0xf]  ;;  %v4619_v18 = vld [vmem:[%s5682_s30 + $0x40] sm:$0xf] }
  0x17   : > { %2041 = vmatpush.bf16.msra.mxu1 %v4708_v7  ;;  %5484 = vmatpush.bf16.msra.mxu3 %v4708_v7  ;;  %v5353_v15 = vld [vmem:[%s5682_s30 + $0xd4] sm:$0xf0]  ;;  %v4628_v16 = vor.u32 %v5337_v13, %v4627_v12  ;;  %v5335_v19 = vld [vmem:[%s5682_s30 + $0x44] sm:$0xf0]  ;;  %v4683_v20 = vld [vmem:[%s5682_s30 + $0xc0] sm:$0xf] }
  0x18   : > { %v4692_v17 = vor.u32 %v5353_v15, %v4691_v14  ;;  %v5351_v21 = vld [vmem:[%s5682_s30 + $0xc4] sm:$0xf0]  ;;  %v4620_v22 = vor.u32 %v5335_v19, %v4619_v18  ;;  %v4611_v24 = vld [vmem:[%s5682_s30 + $0x30] sm:$0xf]  ;;  %v5333_v25 = vld [vmem:[%s5682_s30 + $0x34] sm:$0xf0] }
  0x19   : > { %v4684_v23 = vor.u32 %v5351_v21, %v4683_v20  ;;  %v4675_v26 = vld [vmem:[%s5682_s30 + $0xb0] sm:$0xf]  ;;  %v5349_v27 = vld [vmem:[%s5682_s30 + $0xb4] sm:$0xf0]  ;;  %v4612_v28 = vor.u32 %v5333_v25, %v4611_v24  ;;  %v4603_v30 = vld [vmem:[%s5682_s30 + $0x20] sm:$0xf] }
  0x1a   : > { %1969 = vmatpush.bf16.msra.mxu0 %v4636_v10  ;;  %5477 = vmatpush.bf16.msra.mxu2 %v4636_v10  ;;  %v4676_v29 = vor.u32 %v5349_v27, %v4675_v26  ;;  %v5331_v31 = vld [vmem:[%s5682_s30 + $0x24] sm:$0xf0]  ;;  %v4667_v32 = vld [vmem:[%s5682_s30 + $0xa0] sm:$0xf]  ;;  %v4595_v36 = vld [vmem:[%s5682_s30 + $0x10] sm:$0xf] }
  0x1b   : > { %2042 = vmatpush.bf16.msra.mxu1 %v4700_v11  ;;  %5485 = vmatpush.bf16.msra.mxu3 %v4700_v11  ;;  %v5347_v33 = vld [vmem:[%s5682_s30 + $0xa4] sm:$0xf0]  ;;  %v4604_v34 = vor.u32 %v5331_v31, %v4603_v30  ;;  %v5329_v37 = vld [vmem:[%s5682_s30 + $0x14] sm:$0xf0]  ;;  %v4659_v38 = vld [vmem:[%s5682_s30 + $0x90] sm:$0xf] }
  0x1c   : > { %v4668_v35 = vor.u32 %v5347_v33, %v4667_v32  ;;  %v5345_v39 = vld [vmem:[%s5682_s30 + $0x94] sm:$0xf0]  ;;  %v4596_v40 = vor.u32 %v5329_v37, %v4595_v36  ;;  %v4587_v41 = vld [vmem:[%s5682_s30] sm:$0xf]  ;;  %v5327_v43 = vld [vmem:[%s5682_s30 + $0x4] sm:$0xf0] }
  0x1d   : > { %v4660_v42 = vor.u32 %v5345_v39, %v4659_v38  ;;  %v4651_v44 = vld [vmem:[%s5682_s30 + $0x80] sm:$0xf]  ;;  %v5343_v45 = vld [vmem:[%s5682_s30 + $0x84] sm:$0xf0]  ;;  %v4771_v48 = vld [vmem:[%s5682_s30 + $0x170] sm:$0xf]  ;;  %v4588_v52 = vor.u32 %v5327_v43, %v4587_v41 }
  0x1e   : > { %1970 = vmatpush.bf16.msra.mxu0 %v4628_v16  ;;  %5478 = vmatpush.bf16.msra.mxu2 %v4628_v16  ;;  %v5373_v49 = vld [vmem:[%s5682_s30 + $0x174] sm:$0xf0]  ;;  %v4835_v50 = vld [vmem:[%s5682_s30 + $0x1f0] sm:$0xf]  ;;  %v4652_v56 = vor.u32 %v5343_v45, %v4651_v44  ;;  %v4763_v62 = vld [vmem:[%s5682_s30 + $0x160] sm:$0xf] }
  0x1f   : > { %2043 = vmatpush.bf16.msra.mxu1 %v4692_v17  ;;  %5486 = vmatpush.bf16.msra.mxu3 %v4692_v17  ;;  %v5389_v51 = vld [vmem:[%s5682_s30 + $0x1f4] sm:$0xf0]  ;;  %v4772_v60 = vor.u32 %v5373_v49, %v4771_v48  ;;  %8009 = vst [vmem:[#allocation2_spill] sm:$0xff] %v5747_v0  ;;  %v5371_v1 = vld [vmem:[%s5682_s30 + $0x164] sm:$0xf0]  ;;  %v572_v18 = vld [vmem:[%s7888_s2 + $0x360] sm:$0xff] }
  0x20   : > { %v4836_v61 = vor.u32 %v5389_v51, %v4835_v50  ;;  %v4827_v2 = vld [vmem:[%s5682_s30 + $0x1e0] sm:$0xf]  ;;  %v5387_v3 = vld [vmem:[%s5682_s30 + $0x1e4] sm:$0xf0]  ;;  %8010 = vst [vmem:[#allocation3_spill] sm:$0xff] %v5754_v5  ;;  %v4764_v6 = vor.u32 %v5371_v1, %v4763_v62  ;;  %s7985_s17 = smov 114  }
  0x21   : > { %v4828_v7 = vor.u32 %v5387_v3, %v4827_v2  ;;  %v4755_v8 = vld [vmem:[%s5682_s30 + $0x150] sm:$0xf]  ;;  %v5369_v9 = vld [vmem:[%s5682_s30 + $0x154] sm:$0xf0]  ;;  %v4747_v14 = vld [vmem:[%s5682_s30 + $0x140] sm:$0xf] }
  0x22   : > { %1971 = vmatpush.bf16.msra.mxu0 %v4620_v22  ;;  %5479 = vmatpush.bf16.msra.mxu2 %v4620_v22  ;;  %v4819_v10 = vld [vmem:[%s5682_s30 + $0x1d0] sm:$0xf]  ;;  %v5385_v11 = vld [vmem:[%s5682_s30 + $0x1d4] sm:$0xf0]  ;;  %v4756_v12 = vor.u32 %v5369_v9, %v4755_v8  ;;  %v5367_v15 = vld [vmem:[%s5682_s30 + $0x144] sm:$0xf0]  ;;  %v1048_v22 = vunpack.c.l.b16 %v572_v18 }
  0x23   : > { %2044 = vmatpush.bf16.msra.mxu1 %v4684_v23  ;;  %5487 = vmatpush.bf16.msra.mxu3 %v4684_v23  ;;  %v4820_v13 = vor.u32 %v5385_v11, %v4819_v10  ;;  %v4811_v16 = vld [vmem:[%s5682_s30 + $0x1c0] sm:$0xf]  ;;  %v5383_v17 = vld [vmem:[%s5682_s30 + $0x1c4] sm:$0xf0]  ;;  %v4748_v19 = vor.u32 %v5367_v15, %v4747_v14  ;;  %v4739_v21 = vld [vmem:[%s5682_s30 + $0x130] sm:$0xf] }
  0x24   : > { %v4812_v20 = vor.u32 %v5383_v17, %v4811_v16  ;;  %v5365_v23 = vld [vmem:[%s5682_s30 + $0x134] sm:$0xf0]  ;;  %v4803_v24 = vld [vmem:[%s5682_s30 + $0x1b0] sm:$0xf]  ;;  %v4191_v26 = vld [vmem:[%s7888_s2 + $0x48] sm:$0xf] }
  0x25   : > { %v5381_v25 = vld [vmem:[%s5682_s30 + $0x1b4] sm:$0xf0]  ;;  %v5231_v27 = vld [vmem:[%s7888_s2 + $0x68] sm:$0xf0]  ;;  %v4193_v30 = vld [vmem:[%s7888_s2 + $0x6c] sm:$0xf0]  ;;  %v4740_v31 = vor.u32 %v5365_v23, %v4739_v21 }
  0x26   : > { %1972 = vmatpush.bf16.msra.mxu0 %v4612_v28  ;;  %5480 = vmatpush.bf16.msra.mxu2 %v4612_v28  ;;  %v1049_v28 = vunpack.c.h.b16 %v572_v18  ;;  %v4804_v32 = vor.u32 %v5381_v25, %v4803_v24  ;;  %v4731_v33 = vld [vmem:[%s5682_s30 + $0x120] sm:$0xf]  ;;  %v5363_v36 = vld [vmem:[%s5682_s30 + $0x124] sm:$0xf0]  ;;  %v4723_v43 = vld [vmem:[%s5682_s30 + $0x110] sm:$0xf] }
  0x27   : > { %2045 = vmatpush.bf16.msra.mxu1 %v4676_v29  ;;  %5488 = vmatpush.bf16.msra.mxu3 %v4676_v29  ;;  %v5227_v29 = vld [vmem:[%s7888_s2 + $0x4c] sm:$0xf]  ;;  %v4795_v37 = vld [vmem:[%s5682_s30 + $0x1a0] sm:$0xf]  ;;  %v5379_v38 = vld [vmem:[%s5682_s30 + $0x1a4] sm:$0xf0]  ;;  %v4732_v41 = vor.u32 %v5363_v36, %v4731_v33 }
  0x28   : > { %v5795_v39 = vor.u32 %v5227_v29, %v4193_v30  ;;  %v5361_v44 = vld [vmem:[%s5682_s30 + $0x114] sm:$0xf0]  ;;  %v4787_v45 = vld [vmem:[%s5682_s30 + $0x190] sm:$0xf]  ;;  %v4715_v49 = vld [vmem:[%s5682_s30 + $0x100] sm:$0xf] }
  0x29   : > { %v5377_v46 = vld [vmem:[%s5682_s30 + $0x194] sm:$0xf0]  ;;  %v4724_v47 = vor.u32 %v5361_v44, %v4723_v43  ;;  %v5359_v50 = vld [vmem:[%s5682_s30 + $0x104] sm:$0xf0]  ;;  %v4779_v51 = vld [vmem:[%s5682_s30 + $0x180] sm:$0xf] }
  0x2a   : > { %1973 = vmatpush.bf16.msra.mxu0 %v4604_v34  ;;  %5481 = vmatpush.bf16.msra.mxu2 %v4604_v34  ;;  %v5788_v34 = vor.u32 %v5231_v27, %v4191_v26  ;;  %v4788_v48 = vor.u32 %v5377_v46, %v4787_v45  ;;  %v4716_v53 = vor.u32 %v5359_v50, %v4715_v49  ;;  %v4227_v55 = vld [vmem:[%s7888_s2 + $0x90] sm:$0xf]  ;;  %v5236_v57 = vld [vmem:[%s7888_s2 + $0x94] sm:$0xf]  ;;  %v4163_v58 = vld [vmem:[%s7888_s2 + $0x8] sm:$0xf] }
  0x2b   : > { %2046 = vmatpush.bf16.msra.mxu1 %v4668_v35  ;;  %5489 = vmatpush.bf16.msra.mxu3 %v4668_v35  ;;  %v5790_v35 = vpack.c.b16 %v1048_v22, %v1048_v22  ;;  %v5223_v59 = vld [vmem:[%s7888_s2 + $0x28] sm:$0xf0]  ;;  %v4165_v62 = vld [vmem:[%s7888_s2 + $0x2c] sm:$0xf0]  ;;  %v5249_v8 = vld [vmem:[%s7888_s2 + $0xf8] sm:$0xf0] }
  0x2c   : > { %v5837_v2 = vor.u32 %v5223_v59, %v4163_v58  ;;  %v5245_v9 = vld [vmem:[%s7888_s2 + $0xdc] sm:$0xf]  ;;  %v4199_v10 = vld [vmem:[%s7888_s2 + $0x50] sm:$0xf]  ;;  %v5232_v11 = vld [vmem:[%s7888_s2 + $0x70] sm:$0xf0] }
  0x2d   : > { %8011 = vst [vmem:[#allocation4_spill] sm:$0xff] %v5790_v35  ;;  %v4201_v14 = vld [vmem:[%s7888_s2 + $0x74] sm:$0xf0]  ;;  %v5873_v16 = vor.u32 %v5232_v11, %v4199_v10  ;;  %v4963_v21 = vld [vmem:[%s5682_s30 + $0x2f0] sm:$0xf]  ;;  %s7986_s18 = smov 113  }
  0x2e   : > { %1974 = vmatpush.bf16.msra.mxu0 %v4596_v40  ;;  %5482 = vmatpush.bf16.msra.mxu2 %v4596_v40  ;;  %v5797_v40 = vpack.c.b16 %v1049_v28, %v1049_v28  ;;  %v5421_v23 = vld [vmem:[%s5682_s30 + $0x2f4] sm:$0xf0]  ;;  %v4299_v25 = vld [vmem:[%s7888_s2 + $0x120] sm:$0xf]  ;;  %v5258_v26 = vld [vmem:[%s7888_s2 + $0x140] sm:$0xf0] }
  0x2f   : > { %2047 = vmatpush.bf16.msra.mxu1 %v4660_v42  ;;  %5490 = vmatpush.bf16.msra.mxu3 %v4660_v42  ;;  %v4796_v42 = vor.u32 %v5379_v38, %v4795_v37  ;;  %v4964_v24 = vor.u32 %v5421_v23, %v4963_v21  ;;  %v5254_v27 = vld [vmem:[%s7888_s2 + $0x124] sm:$0xf]  ;;  %v4235_v28 = vld [vmem:[%s7888_s2 + $0x98] sm:$0xf]  ;;  %v5241_v29 = vld [vmem:[%s7888_s2 + $0xb8] sm:$0xf0]  ;;  %v5911_v33 = vor.u32 %v5258_v26, %v4299_v25 }
  0x30   : > { %8012 = vst [vmem:[#allocation5_spill] sm:$0xff] %v5797_v40  ;;  %v4301_v30 = vld [vmem:[%s7888_s2 + $0x144] sm:$0xf0]  ;;  %v5913_v36 = vor.u32 %v5241_v29, %v4235_v28  ;;  %v4955_v43 = vld [vmem:[%s5682_s30 + $0x2e0] sm:$0xf]  ;;  %s7987_s21 = smov 112  }
  0x31   : > { %v5915_v37 = vor.u32 %v5254_v27, %v4301_v30  ;;  %v5419_v45 = vld [vmem:[%s5682_s30 + $0x2e4] sm:$0xf0]  ;;  %v5263_v49 = vld [vmem:[%s7888_s2 + $0x16c] sm:$0xf]  ;;  %v4271_v50 = vld [vmem:[%s7888_s2 + $0xe0] sm:$0xf] }
  0x32   : > { %1975 = vmatpush.bf16.msra.mxu0 %v4588_v52  ;;  %5483 = vmatpush.bf16.msra.mxu2 %v4588_v52  ;;  %v5375_v52 = vld [vmem:[%s5682_s30 + $0x184] sm:$0xf0]  ;;  %v4956_v46 = vor.u32 %v5419_v45, %v4955_v43  ;;  %v4371_v59 = vld [vmem:[%s7888_s2 + $0x1b0] sm:$0xf]  ;;  %v5417_v23 = vld [vmem:[%s5682_s30 + $0x2d4] sm:$0xf0] }
  0x33   : > { %2048 = vmatpush.bf16.msra.mxu1 %v4652_v56  ;;  %5491 = vmatpush.bf16.msra.mxu3 %v4652_v56  ;;  %v4780_v54 = vor.u32 %v5375_v52, %v4779_v51  ;;  %v5240_v56 = vld [vmem:[%s7888_s2 + $0xb0] sm:$0xf0]  ;;  %8015 = vst [vmem:[#allocation8_spill] sm:$0xff] %v5915_v37  ;;  %v5250_v51 = vld [vmem:[%s7888_s2 + $0x100] sm:$0xf0]  ;;  %s5571_s23 = smov 104  }
  0x34   : > { %v5835_v1 = vor.u32 %v5240_v56, %v4227_v55  ;;  %v4337_v52 = vld [vmem:[%s7888_s2 + $0x18c] sm:$0xf0]  ;;  %v5953_v56 = vor.u32 %v5250_v51, %v4271_v50  ;;  %v4407_v25 = vld [vmem:[%s7888_s2 + $0x1f8] sm:$0xf]  ;;  %v5285_v26 = vld [vmem:[%s7888_s2 + $0x218] sm:$0xf0] }
  0x35   : > { %1976 = vmatmul.bf16.vlgmr.msra.gmra.mxu0 %v5745_v63  ;;  %2031 = vmatmul.bf16.vlgmr.msra.gmra.mxu2 %v5747_v0  ;;  %v4309_v10 = vld [vmem:[%s7888_s2 + $0x14c] sm:$0xf0]  ;;  %v5281_v27 = vld [vmem:[%s7888_s2 + $0x1fc] sm:$0xf]  ;;  %v5268_v29 = vld [vmem:[%s7888_s2 + $0x190] sm:$0xf0] }
  0x36   : > { %2114 = vmatpush.bf16.msrb.mxu2 %v4772_v60  ;;  %2049 = vmatmul.bf16.vlgmr.msra.gmra.mxu1 %v5752_v4  ;;  %v4229_v60 = vld [vmem:[%s7888_s2 + $0xb4] sm:$0xf0]  ;;  %v4947_v21 = vld [vmem:[%s5682_s30 + $0x2d0] sm:$0xf]  ;;  %v4409_v30 = vld [vmem:[%s7888_s2 + $0x21c] sm:$0xf0] }
  0x37   : > { %2187 = vmatpush.bf16.msrb.mxu3 %v4836_v61  ;;  %v5219_v61 = vld [vmem:[%s7888_s2 + $0xc] sm:$0xf]  ;;  %v5839_v3 = vor.u32 %v5236_v57, %v4229_v60  ;;  %2333 = vmatpush.bf16.msrb.mxu1 %v4964_v24  ;;  %v5955_v57 = vor.u32 %v5263_v49, %v4337_v52  ;;  %v5276_v60 = vld [vmem:[%s7888_s2 + $0x1d0] sm:$0xf0]  ;;  %v4948_v24 = vor.u32 %v5417_v23, %v4947_v21  ;;  %v4343_v28 = vld [vmem:[%s7888_s2 + $0x170] sm:$0xf] }
  0x38   : > { %2104 = vmatmul.bf16.vlgmr.msra.gmra.mxu3 %v5754_v5  ;;  %v5987_v11 = vor.u32 %v5276_v60, %v4371_v59  ;;  %v6031_v43 = vor.u32 %v5281_v27, %v4409_v30  ;;  %v4875_v45 = vld [vmem:[%s5682_s30 + $0x240] sm:$0xf]  ;;  %v5294_v49 = vld [vmem:[%s7888_s2 + $0x260] sm:$0xf0]  ;;  %v5415_v51 = vld [vmem:[%s5682_s30 + $0x2c4] sm:$0xf0] }
  0x39   : > { %8017 = vst [vmem:[#allocation10_spill] sm:$0xff] %v5955_v57  ;;  %v5290_v52 = vld [vmem:[%s7888_s2 + $0x244] sm:$0xf]  ;;  %v4445_v60 = vld [vmem:[%s7888_s2 + $0x264] sm:$0xf0]  ;;  %s5572_s24 = smov 103  }
  0x3a   : > { %2115 = vmatpush.bf16.msrb.mxu2 %v4764_v6  ;;  %v5841_v6 = vor.u32 %v5219_v61, %v4165_v62  ;;  %v5272_v61 = vld [vmem:[%s7888_s2 + $0x1b4] sm:$0xf]  ;;  %v4307_v62 = vld [vmem:[%s7888_s2 + $0x128] sm:$0xf]  ;;  %8023 = vst [vmem:[#allocation16_spill] sm:$0xff] %v6031_v43  ;;  %s5573_s27 = smov 102  }
  0x3b   : > { %2188 = vmatpush.bf16.msrb.mxu3 %v4828_v7  ;;  %v4263_v7 = vld [vmem:[%s7888_s2 + $0xd8] sm:$0xf]  ;;  %2334 = vmatpush.bf16.msrb.mxu1 %v4956_v46  ;;  %v5399_v46 = vld [vmem:[%s5682_s30 + $0x244] sm:$0xf0]  ;;  %v5035_v0 = vld [vmem:[%s5682_s30 + $0x380] sm:$0xf] }
  0x3c   : > { %8013 = vst [vmem:[#allocation6_spill] sm:$0xff] %v5841_v6  ;;  %v5871_v15 = vor.u32 %v5249_v8, %v4263_v7  ;;  %v5259_v7 = vld [vmem:[%s7888_s2 + $0x148] sm:$0xf0]  ;;  %v4373_v8 = vld [vmem:[%s7888_s2 + $0x1d4] sm:$0xf0]  ;;  %v4876_v50 = vor.u32 %v5399_v46, %v4875_v45  ;;  %s5574_s15 = smov 101  }
  0x3d   : > { %v5397_v23 = vld [vmem:[%s5682_s30 + $0x234] sm:$0xf0]  ;;  %v5395_v30 = vld [vmem:[%s5682_s30 + $0x224] sm:$0xf0]  ;;  %s5575_s16 = smov 100   ;;  %vm3384_vm15 = vcmask 621568  }
  0x3e   : > { %2116 = vmatpush.bf16.msrb.mxu2 %v4756_v12  ;;  %v4265_v12 = vld [vmem:[%s7888_s2 + $0xfc] sm:$0xf0]  ;;  %v5411_v46 = vld [vmem:[%s5682_s30 + $0x2a4] sm:$0xf0]  ;;  %s8187_s0 = smov 114  }
  0x3f   : > { %2189 = vmatpush.bf16.msrb.mxu3 %v4820_v13  ;;  %v5228_v13 = vld [vmem:[%s7888_s2 + $0x54] sm:$0xf]  ;;  %v5875_v17 = vor.u32 %v5245_v9, %v4265_v12  ;;  %v5255_v9 = vld [vmem:[%s7888_s2 + $0x12c] sm:$0xf]  ;;  %v5989_v12 = vor.u32 %v5259_v7, %v4307_v62  ;;  %2335 = vmatpush.bf16.msrb.mxu1 %v4948_v24  ;;  %v4381_v62 = vld [vmem:[%s7888_s2 + $0x1dc] sm:$0xf0] }
  0x40   : > { %v5877_v18 = vor.u32 %v5228_v13, %v4201_v14  ;;  %v5991_v13 = vor.u32 %v5272_v61, %v4373_v8  ;;  %v5993_v14 = vor.u32 %v5255_v9, %v4309_v10  ;;  %v5273_v61 = vld [vmem:[%s7888_s2 + $0x1bc] sm:$0xf]  ;;  %v6071_v10 = vor.u32 %v5290_v52, %v4445_v60  ;;  %v4931_v24 = vld [vmem:[%s5682_s30 + $0x2b0] sm:$0xf]  ;;  %v5303_v60 = vld [vmem:[%s7888_s2 + $0x2a8] sm:$0xf0] }
  0x41   : > { %8019 = vst [vmem:[#allocation12_spill] sm:$0xff] %v5989_v12  ;;  %v4851_v52 = vld [vmem:[%s5682_s30 + $0x210] sm:$0xf] }
  0x42   : > { %2117 = vmatpush.bf16.msrb.mxu2 %v4748_v19  ;;  %8014 = vst [vmem:[#allocation7_spill] sm:$0xff] %v5877_v18  ;;  %v4899_v19 = vld [vmem:[%s5682_s30 + $0x270] sm:$0xf] }
  0x43   : > { %2190 = vmatpush.bf16.msrb.mxu3 %v4812_v20  ;;  %v5405_v20 = vld [vmem:[%s5682_s30 + $0x274] sm:$0xf0]  ;;  %8020 = vst [vmem:[#allocation13_spill] sm:$0xff] %v5991_v13 }
  0x44   : > { %v4900_v22 = vor.u32 %v5405_v20, %v4899_v19  ;;  %8021 = vst [vmem:[#allocation14_spill] sm:$0xff] %v5993_v14  ;;  %v4883_v19 = vld [vmem:[%s5682_s30 + $0x250] sm:$0xf]  ;;  %v5401_v20 = vld [vmem:[%s5682_s30 + $0x254] sm:$0xf0] }
  0x45   : > { %1981 = vmatmul.bf16.gmra.mxu0 %v5788_v34  ;;  %2036 = vmatmul.bf16.gmra.mxu2 %v5790_v35  ;;  %8027 = vst [vmem:[#allocation20_spill] sm:$0xff] %v6071_v10 }
  0x46   : > { %2118 = vmatpush.bf16.msrb.mxu2 %v4740_v31  ;;  %2054 = vmatmul.bf16.gmra.mxu1 %v5795_v39  ;;  %v5237_v31 = vld [vmem:[%s7888_s2 + $0x9c] sm:$0xf] }
  0x47   : > { %2191 = vmatpush.bf16.msrb.mxu3 %v4804_v32  ;;  %2260 = vmatpush.bf16.msrb.mxu0 %v4900_v22  ;;  %v4237_v32 = vld [vmem:[%s7888_s2 + $0xbc] sm:$0xf0]  ;;  %v4884_v22 = vor.u32 %v5401_v20, %v4883_v19  ;;  %v6073_v19 = vor.u32 %v5273_v61, %v4381_v62  ;;  %v5409_v62 = vld [vmem:[%s5682_s30 + $0x294] sm:$0xf0] }
  0x48   : > { %2109 = vmatmul.bf16.gmra.mxu3 %v5797_v40  ;;  %v5917_v38 = vor.u32 %v5237_v31, %v4237_v32  ;;  %v5264_v31 = vld [vmem:[%s7888_s2 + $0x174] sm:$0xf]  ;;  %v4345_v32 = vld [vmem:[%s7888_s2 + $0x194] sm:$0xf0] }
  0x49   : > { %8028 = vst [vmem:[#allocation21_spill] sm:$0xff] %v6073_v19 }
  0x4a   : > { %2119 = vmatpush.bf16.msrb.mxu2 %v4732_v41  ;;  %8016 = vst [vmem:[#allocation9_spill] sm:$0xff] %v5917_v38  ;;  %v4891_v41 = vld [vmem:[%s5682_s30 + $0x260] sm:$0xf] }
  0x4b   : > { %2192 = vmatpush.bf16.msrb.mxu3 %v4796_v42  ;;  %v5403_v42 = vld [vmem:[%s5682_s30 + $0x264] sm:$0xf0] }
  0x4c   : > { %v4892_v44 = vor.u32 %v5403_v42, %v4891_v41  ;;  %v6027_v41 = vor.u32 %v5285_v26, %v4407_v25  ;;  %v6029_v42 = vor.u32 %v5268_v29, %v4343_v28  ;;  %v5413_v26 = vld [vmem:[%s5682_s30 + $0x2b4] sm:$0xf0]  ;;  %v4859_v29 = vld [vmem:[%s5682_s30 + $0x220] sm:$0xf] }
  0x4d   : > { %v4932_v27 = vor.u32 %v5413_v26, %v4931_v24  ;;  %v4860_v45 = vor.u32 %v5395_v30, %v4859_v29  ;;  %v4481_v24 = vld [vmem:[%s7888_s2 + $0x2ac] sm:$0xf0]  ;;  %v4417_v26 = vld [vmem:[%s7888_s2 + $0x224] sm:$0xf0]  ;;  %v4907_v30 = vld [vmem:[%s5682_s30 + $0x280] sm:$0xf] }
  0x4e   : > { %2120 = vmatpush.bf16.msrb.mxu2 %v4724_v47  ;;  %2261 = vmatpush.bf16.msrb.mxu0 %v4892_v44  ;;  %v4335_v47 = vld [vmem:[%s7888_s2 + $0x168] sm:$0xf]  ;;  %8022 = vst [vmem:[#allocation15_spill] sm:$0xff] %v6029_v42  ;;  %v6033_v44 = vor.u32 %v5264_v31, %v4345_v32  ;;  %v4923_v31 = vld [vmem:[%s5682_s30 + $0x2a0] sm:$0xf] }
  0x4f   : > { %2193 = vmatpush.bf16.msrb.mxu3 %v4788_v48  ;;  %v5267_v48 = vld [vmem:[%s7888_s2 + $0x188] sm:$0xf0]  ;;  %v5391_v29 = vld [vmem:[%s5682_s30 + $0x204] sm:$0xf0] }
  0x50   : > { %v5951_v55 = vor.u32 %v5267_v48, %v4335_v47  ;;  %8024 = vst [vmem:[#allocation17_spill] sm:$0xff] %v6033_v44  ;;  %v4939_v47 = vld [vmem:[%s5682_s30 + $0x2c0] sm:$0xf] }
  0x51   : > { %v4443_v48 = vld [vmem:[%s7888_s2 + $0x240] sm:$0xf]  ;;  %v4940_v59 = vor.u32 %v5415_v51, %v4939_v47 }
  0x52   : > { %2121 = vmatpush.bf16.msrb.mxu2 %v4716_v53  ;;  %v5246_v53 = vld [vmem:[%s7888_s2 + $0xe4] sm:$0xf]  ;;  %2262 = vmatpush.bf16.msrb.mxu0 %v4884_v22  ;;  %v6067_v7 = vor.u32 %v5294_v49, %v4443_v48  ;;  %v4867_v22 = vld [vmem:[%s5682_s30 + $0x230] sm:$0xf]  ;;  %v4924_v49 = vor.u32 %v5411_v46, %v4923_v31 }
  0x53   : > { %2194 = vmatpush.bf16.msrb.mxu3 %v4780_v54  ;;  %v4273_v54 = vld [vmem:[%s7888_s2 + $0x104] sm:$0xf0]  ;;  %2336 = vmatpush.bf16.msrb.mxu1 %v4940_v59  ;;  %v4868_v25 = vor.u32 %v5397_v23, %v4867_v22  ;;  %v5286_v22 = vld [vmem:[%s7888_s2 + $0x220] sm:$0xf0] }
  0x54   : > { %v5957_v58 = vor.u32 %v5246_v53, %v4273_v54  ;;  %v4379_v53 = vld [vmem:[%s7888_s2 + $0x1b8] sm:$0xf]  ;;  %v5277_v54 = vld [vmem:[%s7888_s2 + $0x1d8] sm:$0xf0]  ;;  %8025 = vst [vmem:[#allocation18_spill] sm:$0xff] %v6067_v7 }
  0x55   : > { %1986 = vmatmul.bf16.gmra.mxu0 %v5835_v1  ;;  %2122 = vmatmul.bf16.vlgmr.msrb.gmra.mxu2 %v5837_v2  ;;  %v6069_v8 = vor.u32 %v5277_v54, %v4379_v53  ;;  %v5393_v53 = vld [vmem:[%s5682_s30 + $0x214] sm:$0xf0]  ;;  %v4915_v54 = vld [vmem:[%s5682_s30 + $0x290] sm:$0xf]  ;;  %v4479_v59 = vld [vmem:[%s7888_s2 + $0x288] sm:$0xf] }
  0x56   : > { %2059 = vmatmul.bf16.gmra.mxu1 %v5839_v3  ;;  %8018 = vst [vmem:[#allocation11_spill] sm:$0xff] %v5957_v58  ;;  %2263 = vmatpush.bf16.msrb.mxu0 %v4876_v50  ;;  %v4852_v61 = vor.u32 %v5393_v53, %v4851_v52  ;;  %v4916_v23 = vor.u32 %v5409_v62, %v4915_v54 }
  0x57   : > { %8026 = vst [vmem:[#allocation19_spill] sm:$0xff] %v6069_v8  ;;  %2337 = vmatpush.bf16.msrb.mxu1 %v4932_v27 }
  0x58   : > { %2195 = vmatmul.bf16.vlgmr.msrb.gmra.mxu3 %v5841_v6 }
  0x5a   : > { %2264 = vmatpush.bf16.msrb.mxu0 %v4868_v25  ;;  %v5282_v25 = vld [vmem:[%s7888_s2 + $0x204] sm:$0xf] }
  0x5b   : > { %2338 = vmatpush.bf16.msrb.mxu1 %v4924_v49  ;;  %v6133_v53 = vor.u32 %v5282_v25, %v4417_v26  ;;  %v5312_v25 = vld [vmem:[%s7888_s2 + $0x2f0] sm:$0xf0] }
  0x5c   : > { %v5308_v26 = vld [vmem:[%s7888_s2 + $0x2d4] sm:$0xf] }
  0x5d   : > { %8032 = vst [vmem:[#allocation25_spill] sm:$0xff] %v6133_v53 }
  0x5e   : > { %2265 = vmatpush.bf16.msrb.mxu0 %v4860_v45 }
  0x5f   : > { %2339 = vmatpush.bf16.msrb.mxu1 %v4916_v23 }
  0x62   : > { %2266 = vmatpush.bf16.msrb.mxu0 %v4852_v61 }
  0x65   : > { %1991 = vmatmul.bf16.gmra.mxu0 %v5871_v15  ;;  %2127 = vmatmul.bf16.gmra.mxu2 %v5873_v16 }
  0x66   : > { %2064 = vmatmul.bf16.gmra.mxu1 %v5875_v17 }
  0x68   : > { %2200 = vmatmul.bf16.gmra.mxu3 %v5877_v18 }
  0x75   : > { %1996 = vmatmul.bf16.gmra.mxu0 %v5911_v33  ;;  %2132 = vmatmul.bf16.gmra.mxu2 %v5913_v36 }
  0x76   : > { %2069 = vmatmul.bf16.gmra.mxu1 %v5915_v37 }
  0x78   : > { %2205 = vmatmul.bf16.gmra.mxu3 %v5917_v38 }
  0x85   : > { %2001 = vmatmul.bf16.gmra.mxu0 %v5951_v55  ;;  %2137 = vmatmul.bf16.gmra.mxu2 %v5953_v56 }
  0x86   : > { %2074 = vmatmul.bf16.gmra.mxu1 %v5955_v57 }
  0x88   : > { %2210 = vmatmul.bf16.gmra.mxu3 %v5957_v58 }
  0x95   : > { %2006 = vmatmul.bf16.gmra.mxu0 %v5987_v11  ;;  %2142 = vmatmul.bf16.gmra.mxu2 %v5989_v12  ;;  %v4613_v12 = vld [vmem:[%s5682_s30 + $0x38] sm:$0xf0] }
  0x96   : > { %2079 = vmatmul.bf16.gmra.mxu1 %v5991_v13 }
  0x98   : > { %2215 = vmatmul.bf16.gmra.mxu3 %v5993_v14 }
  0xa5   : > { %2011 = vmatmul.bf16.gmra.mxu0 %v6027_v41  ;;  %2147 = vmatmul.bf16.gmra.mxu2 %v6029_v42 }
  0xa6   : > { %2084 = vmatmul.bf16.gmra.mxu1 %v6031_v43 }
  0xa8   : > { %2220 = vmatmul.bf16.gmra.mxu3 %v6033_v44 }
  0xb2   : > { %v1977_v9 = vpop.f32.mrf.mxu0 }
  0xb3   : > { %v2050_v20 = vpop.f32.mrf.mxu1 }
  0xb4   : > { %v6075_v21 = vadd.f32 %v2050_v20, %v1977_v9  ;;  %v5299_v9 = vld [vmem:[%s7888_s2 + $0x28c] sm:$0xf]  ;;  %v4415_v20 = vld [vmem:[%s7888_s2 + $0x200] sm:$0xf] }
  0xb5   : > { %2016 = vmatmul.bf16.gmra.mxu0 %v6067_v7  ;;  %2152 = vmatmul.bf16.gmra.mxu2 %v6069_v8  ;;  %v6126_v45 = vor.u32 %v5286_v22, %v4415_v20  ;;  %v6131_v52 = vor.u32 %v5299_v9, %v4481_v24  ;;  %v4515_v24 = vld [vmem:[%s7888_s2 + $0x2d0] sm:$0xf] }
  0xb6   : > { %2089 = vmatmul.bf16.gmra.mxu1 %v6071_v10 }
  0xb7   : > { %8030 = vst [vmem:[#allocation23_spill] sm:$0xff] %v6126_v45 }
  0xb8   : > { %2225 = vmatmul.bf16.gmra.mxu3 %v6073_v19  ;;  %v2032_v28 = vpop.f32.mrf.mxu2  ;;  %8031 = vst [vmem:[#allocation24_spill] sm:$0xff] %v6131_v52 }
  0xba   : > { %v1979_v47 = vpop.f32.mrf.mxu0 }
  0xbb   : > { %v2105_v32 = vpop.f32.mrf.mxu3  ;;  %v2052_v50 = vpop.f32.mrf.mxu1 }
  0xbc   : > { %v6089_v48 = vadd.f32 %v2105_v32, %v2032_v28  ;;  %v6091_v51 = vadd.f32 %v2052_v50, %v1979_v47  ;;  %v4843_v28 = vld [vmem:[%s5682_s30 + $0x200] sm:$0xf]  ;;  %v6124_v32 = vor.u32 %v5303_v60, %v4479_v59  ;;  %v5407_v47 = vld [vmem:[%s5682_s30 + $0x284] sm:$0xf0] }
  0xbd   : > { %v4844_v46 = vor.u32 %v5391_v29, %v4843_v28  ;;  %v4908_v61 = vor.u32 %v5407_v47, %v4907_v30  ;;  %v5295_v28 = vld [vmem:[%s7888_s2 + $0x268] sm:$0xf0]  ;;  %v4517_v29 = vld [vmem:[%s7888_s2 + $0x2f4] sm:$0xf0] }
  0xbe   : > { %8029 = vst [vmem:[#allocation22_spill] sm:$0xff] %v6124_v32  ;;  %v5291_v30 = vld [vmem:[%s7888_s2 + $0x24c] sm:$0xf] }
  0xbf   : > { %2267 = vmatpush.bf16.msrb.mxu0 %v4844_v46  ;;  %2340 = vmatpush.bf16.msrb.mxu1 %v4908_v61 }
  0xc0   : > { %v2034_v27 = vpop.f32.mrf.mxu2 }
  0xc2   : > { %v1982_v49 = vpop.f32.mrf.mxu0 }
  0xc3   : > { %v2107_v31 = vpop.f32.mrf.mxu3  ;;  %v2055_v54 = vpop.f32.mrf.mxu1 }
  0xc4   : > { %v6129_v50 = vadd.f32 %v2107_v31, %v2034_v27  ;;  %v6135_v62 = vadd.f32 %v2055_v54, %v1982_v49  ;;  %v4451_v27 = vld [vmem:[%s7888_s2 + $0x248] sm:$0xf]  ;;  %v4453_v31 = vld [vmem:[%s7888_s2 + $0x26c] sm:$0xf0]  ;;  %v6169_v49 = vor.u32 %v5312_v25, %v4515_v24 }
  0xc5   : > { %2021 = vmatmul.bf16.gmra.mxu0 %v6124_v32  ;;  %2157 = vmatmul.bf16.gmra.mxu2 %v6126_v45  ;;  %v6171_v54 = vor.u32 %v5295_v28, %v4451_v27 }
  0xc6   : > { %2094 = vmatmul.bf16.gmra.mxu1 %v6131_v52  ;;  %8033 = vst [vmem:[#allocation26_spill] sm:$0xff] %v6169_v49 }
  0xc7   : > { %8034 = vst [vmem:[#allocation27_spill] sm:$0xff] %v6171_v54 }
  0xc8   : > { %2230 = vmatmul.bf16.gmra.mxu3 %v6133_v53  ;;  %v2037_v59 = vpop.f32.mrf.mxu2 }
  0xca   : > { %v1984_v9 = vpop.f32.mrf.mxu0 }
  0xcb   : > { %v2110_v60 = vpop.f32.mrf.mxu3  ;;  %v2057_v22 = vpop.f32.mrf.mxu1 }
  0xcc   : > { %v6141_v20 = vadd.f32 %v2110_v60, %v2037_v59  ;;  %v6143_v23 = vadd.f32 %v2057_v22, %v1984_v9  ;;  %v6173_v59 = vor.u32 %v5308_v26, %v4517_v29  ;;  %v6175_v60 = vor.u32 %v5291_v30, %v4453_v31  ;;  %v4487_v31 = vld [vmem:[%s7888_s2 + $0x290] sm:$0xf] }
  0xce   : > { %8035 = vst [vmem:[#allocation28_spill] sm:$0xff] %v6173_v59 }
  0xcf   : > { %8036 = vst [vmem:[#allocation29_spill] sm:$0xff] %v6175_v60 }
  0xd0   : > { %v2039_v46 = vpop.f32.mrf.mxu2 }
  0xd1   : > { %v5304_v46 = vld [vmem:[%s7888_s2 + $0x2b0] sm:$0xf0] }
  0xd2   : > { %v1987_v61 = vpop.f32.mrf.mxu0 }
  0xd3   : > { %v2112_v47 = vpop.f32.mrf.mxu3  ;;  %v2060_v9 = vpop.f32.mrf.mxu1 }
  0xd4   : > { %v6177_v22 = vadd.f32 %v2060_v9, %v1987_v61  ;;  %v4171_v47 = vld [vmem:[%s7888_s2 + $0x10] sm:$0xf]  ;;  %v5220_v61 = vld [vmem:[%s7888_s2 + $0x14] sm:$0xf]  ;;  %v4173_v9 = vld [vmem:[%s7888_s2 + $0x34] sm:$0xf0] }
  0xd5   : > { %2026 = vmatmul.bf16.gmra.mxu0 %v6169_v49  ;;  %2162 = vmatmul.bf16.gmra.mxu2 %v6171_v54  ;;  %v6217_v44 = vor.u32 %v5220_v61, %v4173_v9 }
  0xd6   : > { %2099 = vmatmul.bf16.gmra.mxu1 %v6173_v59 }
  0xd7   : > { %8039 = vst [vmem:[#allocation32_spill] sm:$0xff] %v6217_v44 }
  0xd8   : > { %2235 = vmatmul.bf16.gmra.mxu3 %v6175_v60  ;;  %v2123_v24 = vpop.f32.mrf.mxu2  ;;  %v6213_v60 = vor.u32 %v5304_v46, %v4487_v31  ;;  %v5437_v31 = vld [vmem:[%s5682_s30 + $0x374] sm:$0xf0] }
  0xd9   : > { %v2124_v25 = vadd.f32 %v2123_v24, %v6075_v21  ;;  %v5224_v21 = vld [vmem:[%s7888_s2 + $0x30] sm:$0xf0] }
  0xda   : > { %v1989_v28 = vpop.f32.mrf.mxu0  ;;  %v5300_v24 = vld [vmem:[%s7888_s2 + $0x294] sm:$0xf]  ;;  %8037 = vst [vmem:[#allocation30_spill] sm:$0xff] %v6213_v60  ;;  %v6215_v53 = vor.u32 %v5224_v21, %v4171_v47  ;;  %v5091_v47 = vld [vmem:[%s5682_s30 + $0x3f0] sm:$0xf] }
  0xdb   : > { %v2196_v27 = vpop.f32.mrf.mxu3  ;;  %v2062_v26 = vpop.f32.mrf.mxu1  ;;  %v5453_v21 = vld [vmem:[%s5682_s30 + $0x3f4] sm:$0xf0] }
  0xdc   : > { %v6184_v29 = vadd.f32 %v2196_v27, %v2124_v25  ;;  %v6186_v30 = vadd.f32 %v2062_v26, %v1989_v28  ;;  %v4489_v25 = vld [vmem:[%s7888_s2 + $0x2b4] sm:$0xf0]  ;;  %8038 = vst [vmem:[#allocation31_spill] sm:$0xff] %v6215_v53  ;;  %v5092_v61 = vor.u32 %v5453_v21, %v5091_v47 }
  0xdd   : > { %v6219_v14 = vor.u32 %v5300_v24, %v4489_v25 }
  0xde   : > { %2479 = vmatpush.bf16.msra.mxu3 %v5092_v61  ;;  %v5433_v61 = vld [vmem:[%s5682_s30 + $0x354] sm:$0xf0] }
  0xdf   : > { %8040 = vst [vmem:[#allocation33_spill] sm:$0xff] %v6219_v14 }
  0xe0   : > { %v2125_v27 = vpop.f32.mrf.mxu2 }
  0xe1   : > { %v2126_v28 = vadd.f32 %v2125_v27, %v6091_v51  ;;  %v5027_v51 = vld [vmem:[%s5682_s30 + $0x370] sm:$0xf] }
  0xe2   : > { %v1992_v19 = vpop.f32.mrf.mxu0  ;;  %v5028_v46 = vor.u32 %v5437_v31, %v5027_v51 }
  0xe3   : > { %v2198_v26 = vpop.f32.mrf.mxu3  ;;  %v2065_v58 = vpop.f32.mrf.mxu1 }
  0xe4   : > { %v6221_v40 = vadd.f32 %v2198_v26, %v2126_v28  ;;  %v6223_v38 = vadd.f32 %v2065_v58, %v1992_v19  ;;  %2406 = vmatpush.bf16.msra.mxu2 %v5028_v46  ;;  %v5019_v58 = vld [vmem:[%s5682_s30 + $0x360] sm:$0xf]  ;;  %v5435_v19 = vld [vmem:[%s5682_s30 + $0x364] sm:$0xf0]  ;;  %v4523_v46 = vld [vmem:[%s7888_s2 + $0x2d8] sm:$0xf] }
  0xe5   : > { %2167 = vmatmul.bf16.gmra.mxu2 %v6213_v60  ;;  %2268 = vmatmul.bf16.vlgmr.msrb.gmra.mxu0 %v6215_v53  ;;  %v5020_v27 = vor.u32 %v5435_v19, %v5019_v58  ;;  %v5083_v26 = vld [vmem:[%s5682_s30 + $0x3e0] sm:$0xf]  ;;  %v4207_v58 = vld [vmem:[%s7888_s2 + $0x58] sm:$0xf] }
  0xe6   : > { %2341 = vmatmul.bf16.vlgmr.msrb.gmra.mxu1 %v6217_v44  ;;  %v5451_v44 = vld [vmem:[%s5682_s30 + $0x3e4] sm:$0xf0] }
  0xe7   : > { %v5084_v47 = vor.u32 %v5451_v44, %v5083_v26  ;;  %v5233_v44 = vld [vmem:[%s7888_s2 + $0x78] sm:$0xf0] }
  0xe8   : > { %2240 = vmatmul.bf16.gmra.mxu3 %v6219_v14  ;;  %v2128_v9 = vpop.f32.mrf.mxu2  ;;  %2407 = vmatpush.bf16.msra.mxu2 %v5020_v27  ;;  %v5449_v27 = vld [vmem:[%s5682_s30 + $0x3d4] sm:$0xf0]  ;;  %v5309_v26 = vld [vmem:[%s7888_s2 + $0x2dc] sm:$0xf]  ;;  %v5431_v14 = vld [vmem:[%s5682_s30 + $0x344] sm:$0xf0]  ;;  %v6275_v60 = vor.u32 %v5233_v44, %v4207_v58 }
  0xe9   : > { %v2129_v24 = vadd.f32 %v2128_v9, %v6135_v62  ;;  %v5011_v62 = vld [vmem:[%s5682_s30 + $0x350] sm:$0xf]  ;;  %v5313_v9 = vld [vmem:[%s7888_s2 + $0x2f8] sm:$0xf0]  ;;  %2480 = vmatpush.bf16.msra.mxu3 %v5084_v47  ;;  %v5427_v44 = vld [vmem:[%s5682_s30 + $0x324] sm:$0xf0] }
  0xea   : > { %v1994_v28 = vpop.f32.mrf.mxu0  ;;  %v5012_v19 = vor.u32 %v5433_v61, %v5011_v62  ;;  %v5003_v61 = vld [vmem:[%s5682_s30 + $0x340] sm:$0xf]  ;;  %v6273_v59 = vor.u32 %v5313_v9, %v4523_v46  ;;  %8042 = vst [vmem:[#allocation35_spill] sm:$0xff] %v6275_v60  ;;  %v4995_v9 = vld [vmem:[%s5682_s30 + $0x330] sm:$0xf] }
  0xeb   : > { %v2201_v25 = vpop.f32.mrf.mxu3  ;;  %v2067_v51 = vpop.f32.mrf.mxu1  ;;  %v5004_v53 = vor.u32 %v5431_v14, %v5003_v61  ;;  %v5429_v14 = vld [vmem:[%s5682_s30 + $0x334] sm:$0xf0]  ;;  %v5443_v61 = vld [vmem:[%s5682_s30 + $0x3a4] sm:$0xf0] }
  0xec   : > { %v6238_v31 = vadd.f32 %v2201_v25, %v2129_v24  ;;  %v6240_v21 = vadd.f32 %v2067_v51, %v1994_v28  ;;  %v5229_v24 = vld [vmem:[%s7888_s2 + $0x5c] sm:$0xf]  ;;  %v5075_v25 = vld [vmem:[%s5682_s30 + $0x3d0] sm:$0xf]  ;;  %v4209_v28 = vld [vmem:[%s7888_s2 + $0x7c] sm:$0xf0]  ;;  %2408 = vmatpush.bf16.msra.mxu2 %v5012_v19  ;;  %v4996_v58 = vor.u32 %v5429_v14, %v4995_v9 }
  0xed   : > { %v4525_v51 = vld [vmem:[%s7888_s2 + $0x2fc] sm:$0xf0]  ;;  %v5076_v47 = vor.u32 %v5449_v27, %v5075_v25  ;;  %8041 = vst [vmem:[#allocation34_spill] sm:$0xff] %v6273_v59  ;;  %v6277_v52 = vor.u32 %v5229_v24, %v4209_v28  ;;  %v5447_v27 = vld [vmem:[%s5682_s30 + $0x3c4] sm:$0xf0] }
  0xee   : > { %v6279_v25 = vor.u32 %v5309_v26, %v4525_v51  ;;  %v5067_v19 = vld [vmem:[%s5682_s30 + $0x3c0] sm:$0xf] }
  0xef   : > { %2481 = vmatpush.bf16.msra.mxu3 %v5076_v47  ;;  %8043 = vst [vmem:[#allocation36_spill] sm:$0xff] %v6277_v52  ;;  %v5051_v47 = vld [vmem:[%s5682_s30 + $0x3a0] sm:$0xf] }
  0xf0   : > { %v2130_v62 = vpop.f32.mrf.mxu2  ;;  %8044 = vst [vmem:[#allocation37_spill] sm:$0xff] %v6279_v25  ;;  %2409 = vmatpush.bf16.msra.mxu2 %v5004_v53  ;;  %v4987_v53 = vld [vmem:[%s5682_s30 + $0x320] sm:$0xf] }
  0xf1   : > { %v2131_v5 = vadd.f32 %v2130_v62, %v6143_v23  ;;  %v5068_v62 = vor.u32 %v5447_v27, %v5067_v19  ;;  %v4988_v26 = vor.u32 %v5427_v44, %v4987_v53  ;;  %v4559_v14 = vld [vmem:[%s7888_s2 + $0x320] sm:$0xf]  ;;  %v5238_v53 = vld [vmem:[%s7888_s2 + $0xa4] sm:$0xf]  ;;  %v5043_v44 = vld [vmem:[%s5682_s30 + $0x390] sm:$0xf] }
  0xf2   : > { %v1997_v6 = vpop.f32.mrf.mxu0 }
  0xf3   : > { %v2203_v18 = vpop.f32.mrf.mxu3  ;;  %v2070_v54 = vpop.f32.mrf.mxu1  ;;  %2482 = vmatpush.bf16.msra.mxu3 %v5068_v62  ;;  %v5052_v62 = vor.u32 %v5443_v61, %v5051_v47 }
  0xf4   : > { %v6283_v23 = vadd.f32 %v2203_v18, %v2131_v5  ;;  %v6285_v46 = vadd.f32 %v2070_v54, %v1997_v6  ;;  %v5059_v5 = vld [vmem:[%s5682_s30 + $0x3b0] sm:$0xf]  ;;  %v5445_v18 = vld [vmem:[%s5682_s30 + $0x3b4] sm:$0xf0]  ;;  %2410 = vmatpush.bf16.msra.mxu2 %v4996_v58 }
  0xf5   : > { %2172 = vmatmul.bf16.gmra.mxu2 %v6273_v59  ;;  %2273 = vmatmul.bf16.gmra.mxu0 %v6275_v60  ;;  %v5060_v6 = vor.u32 %v5445_v18, %v5059_v5  ;;  %v5425_v58 = vld [vmem:[%s5682_s30 + $0x314] sm:$0xf0]  ;;  %v5322_v5 = vld [vmem:[%s7888_s2 + $0x340] sm:$0xf0]  ;;  %v4243_v18 = vld [vmem:[%s7888_s2 + $0xa0] sm:$0xf] }
  0xf6   : > { %2346 = vmatmul.bf16.gmra.mxu1 %v6277_v52  ;;  %v6335_v52 = vor.u32 %v5322_v5, %v4559_v14 }
  0xf7   : > { %2483 = vmatpush.bf16.msra.mxu3 %v5060_v6  ;;  %v5242_v6 = vld [vmem:[%s7888_s2 + $0xc0] sm:$0xf0] }
  0xf8   : > { %2245 = vmatmul.bf16.gmra.mxu3 %v6279_v25  ;;  %v2133_v54 = vpop.f32.mrf.mxu2  ;;  %2411 = vmatpush.bf16.msra.mxu2 %v4988_v26  ;;  %v5318_v26 = vld [vmem:[%s7888_s2 + $0x324] sm:$0xf]  ;;  %8045 = vst [vmem:[#allocation38_spill] sm:$0xff] %v6335_v52  ;;  %v6337_v59 = vor.u32 %v5242_v6, %v4243_v18 }
  0xf9   : > { %v2134_v24 = vadd.f32 %v2133_v54, %v6177_v22  ;;  %v4979_v22 = vld [vmem:[%s5682_s30 + $0x310] sm:$0xf] }
  0xfa   : > { %v1999_v51 = vpop.f32.mrf.mxu0  ;;  %v4980_v54 = vor.u32 %v5425_v58, %v4979_v22  ;;  %v5423_v22 = vld [vmem:[%s5682_s30 + $0x304] sm:$0xf0]  ;;  %8046 = vst [vmem:[#allocation39_spill] sm:$0xff] %v6337_v59 }
  0xfb   : > { %v2206_v28 = vpop.f32.mrf.mxu3  ;;  %v2072_v19 = vpop.f32.mrf.mxu1  ;;  %2484 = vmatpush.bf16.msra.mxu3 %v5052_v62  ;;  %v5439_v62 = vld [vmem:[%s5682_s30 + $0x384] sm:$0xf0] }
  0xfc   : > { %v6300_v27 = vadd.f32 %v2206_v28, %v2134_v24  ;;  %v6302_v9 = vadd.f32 %v2072_v19, %v1999_v51  ;;  %v5441_v24 = vld [vmem:[%s5682_s30 + $0x394] sm:$0xf0]  ;;  %v4245_v28 = vld [vmem:[%s7888_s2 + $0xc4] sm:$0xf0]  ;;  %2412 = vmatpush.bf16.msra.mxu2 %v4980_v54  ;;  %v4971_v19 = vld [vmem:[%s5682_s30 + $0x300] sm:$0xf]  ;;  %v5036_v54 = vor.u32 %v5439_v62, %v5035_v0 }
  0xfd   : > { %v4561_v51 = vld [vmem:[%s7888_s2 + $0x344] sm:$0xf0]  ;;  %v5044_v47 = vor.u32 %v5441_v24, %v5043_v44  ;;  %v4972_v60 = vor.u32 %v5423_v22, %v4971_v19  ;;  %v6339_v10 = vor.u32 %v5238_v53, %v4245_v28 }
  0xfe   : > { %v6341_v45 = vor.u32 %v5318_v26, %v4561_v51  ;;  %v573_v0 = vld [vmem:[%s7888_s2 + $0x368] sm:$0xff]  ;;  %v4281_v51 = vld [vmem:[%s7888_s2 + $0x10c] sm:$0xf0] }
  0xff   : > { %8047 = vst [vmem:[#allocation40_spill] sm:$0xff] %v6339_v10  ;;  %2485 = vmatpush.bf16.msra.mxu3 %v5044_v47  ;;  %v1050_v6 = vunpack.c.l.b16 %v573_v0  ;;  %v4279_v53 = vld [vmem:[%s7888_s2 + $0xe8] sm:$0xf]  ;;  %v1051_v28 = vunpack.c.h.b16 %v573_v0  ;;  %v5247_v26 = vld [vmem:[%s7888_s2 + $0xec] sm:$0xf] }
 0x100   : > { %v2135_v61 = vpop.f32.mrf.mxu2  ;;  %8048 = vst [vmem:[#allocation41_spill] sm:$0xff] %v6341_v45  ;;  %2413 = vmatpush.bf16.msra.mxu2 %v4972_v60 }
 0x101   : > { %v2136_v58 = vadd.f32 %v2135_v61, %v6186_v30  ;;  %v6374_v22 = vpack.c.b16 %v1050_v6, %v1050_v6  ;;  %v5455_v6 = vld [vmem:[%s5682_s30 + $0x404] sm:$0xf0] }
 0x102   : > { %v2002_v35 = vpop.f32.mrf.mxu0 }
 0x103   : > { %v2208_v25 = vpop.f32.mrf.mxu3  ;;  %v2075_v44 = vpop.f32.mrf.mxu1  ;;  %2486 = vmatpush.bf16.msra.mxu3 %v5036_v54  ;;  %8049 = vst [vmem:[#allocation42_spill] sm:$0xff] %v6374_v22  ;;  %v6380_v54 = vpack.c.b16 %v1051_v28, %v1051_v28 }
 0x104   : > { %v6345_v24 = vadd.f32 %v2208_v25, %v2136_v58  ;;  %v6347_v43 = vadd.f32 %v2075_v44, %v2002_v35  ;;  %v6378_v44 = vor.u32 %v5247_v26, %v4281_v51 }
 0x105   : > { %2177 = vmatmul.bf16.gmra.mxu2 %v6335_v52  ;;  %2278 = vmatmul.bf16.gmra.mxu0 %v6337_v59  ;;  %8052 = vst [vmem:[#allocation45_spill] sm:$0xff] %v6380_v54 }
 0x106   : > { %2351 = vmatmul.bf16.gmra.mxu1 %v6339_v10  ;;  %8051 = vst [vmem:[#allocation44_spill] sm:$0xff] %v6378_v44 }
 0x108   : > { %2250 = vmatmul.bf16.gmra.mxu3 %v6341_v45  ;;  %v2138_v30 = vpop.f32.mrf.mxu2 }
 0x109   : > { %v2139_v14 = vadd.f32 %v2138_v30, %v6223_v38  ;;  %v5251_v38 = vld [vmem:[%s7888_s2 + $0x108] sm:$0xf0] }
 0x10a   : > { %v2004_v25 = vpop.f32.mrf.mxu0  ;;  %v6376_v58 = vor.u32 %v5251_v38, %v4279_v53 }
 0x10b   : > { %v2211_v5 = vpop.f32.mrf.mxu3  ;;  %v2077_v35 = vpop.f32.mrf.mxu1 }
 0x10c   : > { %v6357_v60 = vadd.f32 %v2211_v5, %v2139_v14  ;;  %v6359_v18 = vadd.f32 %v2077_v35, %v2004_v25  ;;  %8050 = vst [vmem:[#allocation43_spill] sm:$0xff] %v6376_v58  ;;  %v5099_v35 = vld [vmem:[%s5682_s30 + $0x400] sm:$0xf] }
 0x10d   : > { %v5100_v38 = vor.u32 %v5455_v6, %v5099_v35  ;;  %v5221_v35 = vld [vmem:[%s7888_s2 + $0x1c] sm:$0xf]  ;;  %v4181_v6 = vld [vmem:[%s7888_s2 + $0x3c] sm:$0xf0] }
 0x10f   : > { %2559 = vmatpush.bf16.msra.mxu0 %v5100_v38 }
 0x110   : > { %v2140_v47 = vpop.f32.mrf.mxu2 }
 0x111   : > { %v2141_v61 = vadd.f32 %v2140_v47, %v6240_v21  ;;  %v5340_v47 = vld [vmem:[%s5682_s30 + $0x74] sm:$0xf] }
 0x112   : > { %v2007_v62 = vpop.f32.mrf.mxu0 }
 0x113   : > { %v2213_v19 = vpop.f32.mrf.mxu3  ;;  %v2080_v30 = vpop.f32.mrf.mxu1 }
 0x114   : > { %v6382_v14 = vadd.f32 %v2213_v19, %v2141_v61  ;;  %v6384_v5 = vadd.f32 %v2080_v30, %v2007_v62  ;;  %v4645_v61 = vld [vmem:[%s5682_s30 + $0x78] sm:$0xf0]  ;;  %v4315_v19 = vld [vmem:[%s7888_s2 + $0x130] sm:$0xf]  ;;  %v5256_v30 = vld [vmem:[%s7888_s2 + $0x134] sm:$0xf] }
 0x115   : > { %2182 = vmatmul.bf16.gmra.mxu2 %v6374_v22  ;;  %2283 = vmatmul.bf16.gmra.mxu0 %v6376_v58  ;;  %v4648_v62 = vor.u32 %v5340_v47, %v4645_v61 }
 0x116   : > { %2356 = vmatmul.bf16.gmra.mxu1 %v6378_v44  ;;  %v6430_v44 = vor.u32 %v5221_v35, %v4181_v6  ;;  %v5234_v35 = vld [vmem:[%s7888_s2 + $0x80] sm:$0xf0]  ;;  %v4353_v6 = vld [vmem:[%s7888_s2 + $0x19c] sm:$0xf0] }
 0x117   : > { %2625 = vmatpush.bf16.msra.mxu1 %v4648_v62 }
 0x118   : > { %2255 = vmatmul.bf16.gmra.mxu3 %v6380_v54  ;;  %v2143_v21 = vpop.f32.mrf.mxu2  ;;  %8056 = vst [vmem:[#allocation49_spill] sm:$0xff] %v6430_v44 }
 0x119   : > { %v2144_v25 = vadd.f32 %v2143_v21, %v6285_v46  ;;  %v5260_v46 = vld [vmem:[%s7888_s2 + $0x150] sm:$0xf0]  ;;  %v4179_v21 = vld [vmem:[%s7888_s2 + $0x18] sm:$0xf] }
 0x11a   : > { %v2009_v53 = vpop.f32.mrf.mxu0  ;;  %v6424_v47 = vor.u32 %v5260_v46, %v4315_v19 }
 0x11b   : > { %v2216_v0 = vpop.f32.mrf.mxu3  ;;  %v2082_v28 = vpop.f32.mrf.mxu1 }
 0x11c   : > { %v6393_v26 = vadd.f32 %v2216_v0, %v2144_v25  ;;  %v6395_v51 = vadd.f32 %v2082_v28, %v2009_v53  ;;  %v5225_v25 = vld [vmem:[%s7888_s2 + $0x38] sm:$0xf0]  ;;  %v4317_v0 = vld [vmem:[%s7888_s2 + $0x154] sm:$0xf0]  ;;  %8053 = vst [vmem:[#allocation46_spill] sm:$0xff] %v6424_v47 }
 0x11d   : > { %v6426_v61 = vor.u32 %v5225_v25, %v4179_v21  ;;  %v6428_v45 = vor.u32 %v5256_v30, %v4317_v0  ;;  %v5265_v0 = vld [vmem:[%s7888_s2 + $0x17c] sm:$0xf] }
 0x11f   : > { %8054 = vst [vmem:[#allocation47_spill] sm:$0xff] %v6426_v61 }
 0x120   : > { %v2145_v53 = vpop.f32.mrf.mxu2  ;;  %8055 = vst [vmem:[#allocation48_spill] sm:$0xff] %v6428_v45 }
 0x121   : > { %v2146_v38 = vadd.f32 %v2145_v53, %v6302_v9  ;;  %v5230_v53 = vld [vmem:[%s7888_s2 + $0x64] sm:$0xf] }
 0x122   : > { %v2012_v54 = vpop.f32.mrf.mxu0 }
 0x123   : > { %v2218_v28 = vpop.f32.mrf.mxu3  ;;  %v2085_v10 = vpop.f32.mrf.mxu1 }
 0x124   : > { %v6432_v22 = vadd.f32 %v2218_v28, %v2146_v38  ;;  %v6434_v58 = vadd.f32 %v2085_v10, %v2012_v54  ;;  %v4351_v10 = vld [vmem:[%s7888_s2 + $0x178] sm:$0xf]  ;;  %v5269_v54 = vld [vmem:[%s7888_s2 + $0x198] sm:$0xf0]  ;;  %v4217_v38 = vld [vmem:[%s7888_s2 + $0x84] sm:$0xf0] }
 0x125   : > { %2288 = vmatmul.bf16.gmra.mxu0 %v6424_v47  ;;  %2414 = vmatmul.bf16.vlgmr.msra.gmra.mxu2 %v6426_v61 }
 0x126   : > { %2361 = vmatmul.bf16.gmra.mxu1 %v6428_v45  ;;  %v6476_v45 = vor.u32 %v5230_v53, %v4217_v38 }
 0x128   : > { %2487 = vmatmul.bf16.vlgmr.msra.gmra.mxu3 %v6430_v44  ;;  %v2148_v9 = vpop.f32.mrf.mxu2  ;;  %v6474_v44 = vor.u32 %v5265_v0, %v4353_v6  ;;  %8060 = vst [vmem:[#allocation53_spill] sm:$0xff] %v6476_v45 }
 0x129   : > { %v2149_v19 = vadd.f32 %v2148_v9, %v6347_v43  ;;  %v4215_v43 = vld [vmem:[%s7888_s2 + $0x60] sm:$0xf] }
 0x12a   : > { %v2014_v62 = vpop.f32.mrf.mxu0  ;;  %8059 = vst [vmem:[#allocation52_spill] sm:$0xff] %v6474_v44 }
 0x12b   : > { %v2221_v46 = vpop.f32.mrf.mxu3  ;;  %v2087_v30 = vpop.f32.mrf.mxu1 }
 0x12c   : > { %v6441_v21 = vadd.f32 %v2221_v46, %v2149_v19  ;;  %v6443_v25 = vadd.f32 %v2087_v30, %v2014_v62  ;;  %v6470_v46 = vor.u32 %v5269_v54, %v4351_v10  ;;  %v6472_v62 = vor.u32 %v5234_v35, %v4215_v43  ;;  %v4637_v10 = vld [vmem:[%s5682_s30 + $0x68] sm:$0xf0] }
 0x12e   : > { %8057 = vst [vmem:[#allocation50_spill] sm:$0xff] %v6470_v46 }
 0x12f   : > { %8058 = vst [vmem:[#allocation51_spill] sm:$0xff] %v6472_v62 }
 0x130   : > { %v2150_v28 = vpop.f32.mrf.mxu2 }
 0x131   : > { %v2151_v9 = vadd.f32 %v2150_v28, %v6359_v18  ;;  %v5338_v18 = vld [vmem:[%s5682_s30 + $0x64] sm:$0xf]  ;;  %v4387_v28 = vld [vmem:[%s7888_s2 + $0x1c0] sm:$0xf] }
 0x132   : > { %v2017_v30 = vpop.f32.mrf.mxu0  ;;  %v4640_v54 = vor.u32 %v5338_v18, %v4637_v10  ;;  %v4389_v18 = vld [vmem:[%s7888_s2 + $0x1e4] sm:$0xf0]  ;;  %v5239_v10 = vld [vmem:[%s7888_s2 + $0xac] sm:$0xf] }
 0x133   : > { %v2223_v19 = vpop.f32.mrf.mxu3  ;;  %v2090_v61 = vpop.f32.mrf.mxu1 }
 0x134   : > { %v6478_v47 = vadd.f32 %v2223_v19, %v2151_v9  ;;  %v6480_v52 = vadd.f32 %v2090_v61, %v2017_v30  ;;  %2626 = vmatpush.bf16.msra.mxu1 %v4640_v54  ;;  %v5278_v9 = vld [vmem:[%s7888_s2 + $0x1e0] sm:$0xf0]  ;;  %v4251_v19 = vld [vmem:[%s7888_s2 + $0xa8] sm:$0xf]  ;;  %v5243_v30 = vld [vmem:[%s7888_s2 + $0xc8] sm:$0xf0] }
 0x135   : > { %2293 = vmatmul.bf16.gmra.mxu0 %v6470_v46  ;;  %2419 = vmatmul.bf16.gmra.mxu2 %v6472_v62  ;;  %v4253_v54 = vld [vmem:[%s7888_s2 + $0xcc] sm:$0xf0] }
 0x136   : > { %2366 = vmatmul.bf16.gmra.mxu1 %v6474_v44  ;;  %v6524_v62 = vor.u32 %v5239_v10, %v4253_v54  ;;  %v5336_v10 = vld [vmem:[%s5682_s30 + $0x54] sm:$0xf]  ;;  %v4629_v54 = vld [vmem:[%s5682_s30 + $0x58] sm:$0xf0] }
 0x138   : > { %2492 = vmatmul.bf16.gmra.mxu3 %v6476_v45  ;;  %v2153_v0 = vpop.f32.mrf.mxu2  ;;  %8064 = vst [vmem:[#allocation57_spill] sm:$0xff] %v6524_v62 }
 0x139   : > { %v2154_v43 = vadd.f32 %v2153_v0, %v6384_v5  ;;  %v5274_v5 = vld [vmem:[%s7888_s2 + $0x1c4] sm:$0xf] }
 0x13a   : > { %v2019_v6 = vpop.f32.mrf.mxu0  ;;  %v6522_v44 = vor.u32 %v5274_v5, %v4389_v18 }
 0x13b   : > { %v2226_v35 = vpop.f32.mrf.mxu3  ;;  %v2092_v53 = vpop.f32.mrf.mxu1 }
 0x13c   : > { %v6489_v61 = vadd.f32 %v2226_v35, %v2154_v43  ;;  %v6491_v38 = vadd.f32 %v2092_v53, %v2019_v6  ;;  %v6518_v6 = vor.u32 %v5278_v9, %v4387_v28  ;;  %v6520_v53 = vor.u32 %v5243_v30, %v4251_v19  ;;  %8063 = vst [vmem:[#allocation56_spill] sm:$0xff] %v6522_v44 }
 0x13e   : > { %8061 = vst [vmem:[#allocation54_spill] sm:$0xff] %v6518_v6 }
 0x13f   : > { %8062 = vst [vmem:[#allocation55_spill] sm:$0xff] %v6520_v53 }
 0x140   : > { %v2155_v0 = vpop.f32.mrf.mxu2 }
 0x141   : > { %v2156_v43 = vadd.f32 %v2155_v0, %v6395_v51  ;;  %v4287_v0 = vld [vmem:[%s7888_s2 + $0xf0] sm:$0xf] }
 0x142   : > { %v2022_v45 = vpop.f32.mrf.mxu0 }
 0x143   : > { %v2228_v35 = vpop.f32.mrf.mxu3  ;;  %v2095_v46 = vpop.f32.mrf.mxu1 }
 0x144   : > { %v6526_v59 = vadd.f32 %v2228_v35, %v2156_v43  ;;  %v6528_v8 = vadd.f32 %v2095_v46, %v2022_v45  ;;  %v4423_v45 = vld [vmem:[%s7888_s2 + $0x208] sm:$0xf]  ;;  %v5287_v46 = vld [vmem:[%s7888_s2 + $0x228] sm:$0xf0]  ;;  %v5252_v43 = vld [vmem:[%s7888_s2 + $0x110] sm:$0xf0]  ;;  %v4632_v35 = vor.u32 %v5336_v10, %v4629_v54 }
 0x145   : > { %2298 = vmatmul.bf16.gmra.mxu0 %v6518_v6  ;;  %2424 = vmatmul.bf16.gmra.mxu2 %v6520_v53  ;;  %v6568_v10 = vor.u32 %v5252_v43, %v4287_v0 }
 0x146   : > { %2371 = vmatmul.bf16.gmra.mxu1 %v6522_v44  ;;  %v6566_v44 = vor.u32 %v5287_v46, %v4423_v45 }
 0x147   : > { %2627 = vmatpush.bf16.msra.mxu1 %v4632_v35  ;;  %8066 = vst [vmem:[#allocation59_spill] sm:$0xff] %v6568_v10  ;;  %v5296_v35 = vld [vmem:[%s7888_s2 + $0x270] sm:$0xf0] }
 0x148   : > { %2497 = vmatmul.bf16.gmra.mxu3 %v6524_v62  ;;  %v2158_v51 = vpop.f32.mrf.mxu2  ;;  %8065 = vst [vmem:[#allocation58_spill] sm:$0xff] %v6566_v44 }
 0x149   : > { %v2159_v28 = vadd.f32 %v2158_v51, %v6434_v58  ;;  %v5283_v58 = vld [vmem:[%s7888_s2 + $0x20c] sm:$0xf]  ;;  %v4425_v51 = vld [vmem:[%s7888_s2 + $0x22c] sm:$0xf0] }
 0x14a   : > { %v2024_v5 = vpop.f32.mrf.mxu0  ;;  %v6570_v53 = vor.u32 %v5283_v58, %v4425_v51  ;;  %v5292_v51 = vld [vmem:[%s7888_s2 + $0x254] sm:$0xf] }
 0x14b   : > { %v2231_v9 = vpop.f32.mrf.mxu3  ;;  %v2097_v19 = vpop.f32.mrf.mxu1 }
 0x14c   : > { %v6535_v30 = vadd.f32 %v2231_v9, %v2159_v28  ;;  %v6537_v18 = vadd.f32 %v2097_v19, %v2024_v5  ;;  %v5248_v28 = vld [vmem:[%s7888_s2 + $0xf4] sm:$0xf]  ;;  %v4289_v9 = vld [vmem:[%s7888_s2 + $0x114] sm:$0xf0]  ;;  %8067 = vst [vmem:[#allocation60_spill] sm:$0xff] %v6570_v53 }
 0x14d   : > { %v6572_v6 = vor.u32 %v5248_v28, %v4289_v9  ;;  %v5261_v28 = vld [vmem:[%s7888_s2 + $0x158] sm:$0xf0]  ;;  %v4461_v9 = vld [vmem:[%s7888_s2 + $0x274] sm:$0xf0] }
 0x14f   : > { %8068 = vst [vmem:[#allocation61_spill] sm:$0xff] %v6572_v6 }
 0x150   : > { %v2160_v5 = vpop.f32.mrf.mxu2 }
 0x151   : > { %v2161_v19 = vadd.f32 %v2160_v5, %v6443_v25  ;;  %v5257_v5 = vld [vmem:[%s7888_s2 + $0x13c] sm:$0xf] }
 0x152   : > { %v2027_v54 = vpop.f32.mrf.mxu0 }
 0x153   : > { %v2233_v62 = vpop.f32.mrf.mxu3  ;;  %v2100_v49 = vpop.f32.mrf.mxu1 }
 0x154   : > { %v6574_v13 = vadd.f32 %v2233_v62, %v2161_v19  ;;  %v6576_v42 = vadd.f32 %v2100_v49, %v2027_v54  ;;  %v4459_v49 = vld [vmem:[%s7888_s2 + $0x250] sm:$0xf]  ;;  %v4325_v19 = vld [vmem:[%s7888_s2 + $0x15c] sm:$0xf0] }
 0x155   : > { %2303 = vmatmul.bf16.gmra.mxu0 %v6566_v44  ;;  %2429 = vmatmul.bf16.gmra.mxu2 %v6568_v10 }
 0x156   : > { %2376 = vmatmul.bf16.gmra.mxu1 %v6570_v53  ;;  %v6618_v53 = vor.u32 %v5257_v5, %v4325_v19  ;;  %v4495_v19 = vld [vmem:[%s7888_s2 + $0x298] sm:$0xf] }
 0x158   : > { %2502 = vmatmul.bf16.gmra.mxu3 %v6572_v6  ;;  %v2163_v25 = vpop.f32.mrf.mxu2  ;;  %v6616_v6 = vor.u32 %v5292_v51, %v4461_v9  ;;  %8072 = vst [vmem:[#allocation65_spill] sm:$0xff] %v6618_v53  ;;  %v5334_v51 = vld [vmem:[%s5682_s30 + $0x44] sm:$0xf] }
 0x159   : > { %v2164_v45 = vadd.f32 %v2163_v25, %v6480_v52  ;;  %v4323_v52 = vld [vmem:[%s7888_s2 + $0x138] sm:$0xf] }
 0x15a   : > { %v2029_v58 = vpop.f32.mrf.mxu0  ;;  %8071 = vst [vmem:[#allocation64_spill] sm:$0xff] %v6616_v6 }
 0x15b   : > { %v2236_v46 = vpop.f32.mrf.mxu3  ;;  %v2102_v0 = vpop.f32.mrf.mxu1 }
 0x15c   : > { %v6583_v43 = vadd.f32 %v2236_v46, %v2164_v45  ;;  %v6585_v62 = vadd.f32 %v2102_v0, %v2029_v58  ;;  %v6612_v46 = vor.u32 %v5296_v35, %v4459_v49  ;;  %v6614_v58 = vor.u32 %v5261_v28, %v4323_v52  ;;  %v4621_v52 = vld [vmem:[%s5682_s30 + $0x48] sm:$0xf0] }
 0x15d   : > { %v4624_v9 = vor.u32 %v5334_v51, %v4621_v52 }
 0x15e   : > { %8069 = vst [vmem:[#allocation62_spill] sm:$0xff] %v6612_v46 }
 0x15f   : > { %8070 = vst [vmem:[#allocation63_spill] sm:$0xff] %v6614_v58  ;;  %2628 = vmatpush.bf16.msra.mxu1 %v4624_v9 }
 0x160   : > { %v2165_v54 = vpop.f32.mrf.mxu2 }
 0x161   : > { %v2166_v25 = vadd.f32 %v2165_v54, %v6491_v38  ;;  %v5301_v54 = vld [vmem:[%s7888_s2 + $0x29c] sm:$0xf] }
 0x162   : > { %v2269_v0 = vpop.f32.mrf.mxu0 }
 0x163   : > { %v2238_v45 = vpop.f32.mrf.mxu3  ;;  %v2270_v44 = vadd.f32 %v2269_v0, %v6184_v29  ;;  %v2342_v32 = vpop.f32.mrf.mxu1  ;;  %v5266_v0 = vld [vmem:[%s7888_s2 + $0x184] sm:$0xf] }
 0x164   : > { %v6620_v10 = vadd.f32 %v2238_v45, %v2166_v25  ;;  %v5270_v25 = vld [vmem:[%s7888_s2 + $0x1a0] sm:$0xf0]  ;;  %v4497_v45 = vld [vmem:[%s7888_s2 + $0x2bc] sm:$0xf0] }
 0x165   : > { %v6623_v57 = vadd.f32 %v2342_v32, %v2270_v44  ;;  %2308 = vmatmul.bf16.gmra.mxu0 %v6612_v46  ;;  %2434 = vmatmul.bf16.gmra.mxu2 %v6614_v58 }
 0x166   : > { %2381 = vmatmul.bf16.gmra.mxu1 %v6616_v6 }
 0x168   : > { %2507 = vmatmul.bf16.gmra.mxu3 %v6618_v53  ;;  %v2168_v38 = vpop.f32.mrf.mxu2 }
 0x169   : > { %v2169_v49 = vadd.f32 %v2168_v38, %v6528_v8  ;;  %v5305_v8 = vld [vmem:[%s7888_s2 + $0x2b8] sm:$0xf0]  ;;  %v4361_v38 = vld [vmem:[%s7888_s2 + $0x1a4] sm:$0xf0] }
 0x16a   : > { %v2271_v28 = vpop.f32.mrf.mxu0  ;;  %v6662_v52 = vor.u32 %v5305_v8, %v4495_v19 }
 0x16b   : > { %v2241_v35 = vpop.f32.mrf.mxu3  ;;  %v2272_v32 = vadd.f32 %v2271_v28, %v6221_v40  ;;  %v2344_v44 = vpop.f32.mrf.mxu1  ;;  %v4359_v40 = vld [vmem:[%s7888_s2 + $0x180] sm:$0xf] }
 0x16c   : > { %v6632_v29 = vadd.f32 %v2241_v35, %v2169_v49  ;;  %8073 = vst [vmem:[#allocation66_spill] sm:$0xff] %v6662_v52  ;;  %v6664_v28 = vor.u32 %v5270_v25, %v4359_v40 }
 0x16d   : > { %v6635_v5 = vadd.f32 %v2344_v44, %v2272_v32  ;;  %v6666_v32 = vor.u32 %v5301_v54, %v4497_v45  ;;  %v6668_v44 = vor.u32 %v5266_v0, %v4361_v38  ;;  %v5314_v45 = vld [vmem:[%s7888_s2 + $0x300] sm:$0xf0]  ;;  %v4395_v0 = vld [vmem:[%s7888_s2 + $0x1c8] sm:$0xf] }
 0x16e   : > { %8074 = vst [vmem:[#allocation67_spill] sm:$0xff] %v6664_v28  ;;  %v4533_v38 = vld [vmem:[%s7888_s2 + $0x304] sm:$0xf0] }
 0x16f   : > { %8075 = vst [vmem:[#allocation68_spill] sm:$0xff] %v6666_v32 }
 0x170   : > { %v2170_v49 = vpop.f32.mrf.mxu2  ;;  %8076 = vst [vmem:[#allocation69_spill] sm:$0xff] %v6668_v44 }
 0x171   : > { %v2171_v35 = vadd.f32 %v2170_v49, %v6537_v18  ;;  %v5275_v49 = vld [vmem:[%s7888_s2 + $0x1cc] sm:$0xf] }
 0x172   : > { %v2274_v9 = vpop.f32.mrf.mxu0 }
 0x173   : > { %v2243_v51 = vpop.f32.mrf.mxu3  ;;  %v2275_v6 = vadd.f32 %v2274_v9, %v6238_v31  ;;  %v2347_v58 = vpop.f32.mrf.mxu1 }
 0x174   : > { %v6670_v53 = vadd.f32 %v2243_v51, %v2171_v35  ;;  %v4397_v35 = vld [vmem:[%s7888_s2 + $0x1ec] sm:$0xf0] }
 0x175   : > { %v6673_v46 = vadd.f32 %v2347_v58, %v2275_v6  ;;  %2313 = vmatmul.bf16.gmra.mxu0 %v6662_v52  ;;  %2439 = vmatmul.bf16.gmra.mxu2 %v6664_v28  ;;  %v4531_v58 = vld [vmem:[%s7888_s2 + $0x2e0] sm:$0xf]  ;;  %v5332_v52 = vld [vmem:[%s5682_s30 + $0x34] sm:$0xf] }
 0x176   : > { %2386 = vmatmul.bf16.gmra.mxu1 %v6666_v32 }
 0x178   : > { %2512 = vmatmul.bf16.gmra.mxu3 %v6668_v44  ;;  %v2173_v18 = vpop.f32.mrf.mxu2 }
 0x179   : > { %v2174_v19 = vadd.f32 %v2173_v18, %v6576_v42  ;;  %v5310_v42 = vld [vmem:[%s7888_s2 + $0x2e4] sm:$0xf] }
 0x17a   : > { %v2276_v54 = vpop.f32.mrf.mxu0 }
 0x17b   : > { %v2246_v8 = vpop.f32.mrf.mxu3  ;;  %v2277_v31 = vadd.f32 %v2276_v54, %v6283_v23  ;;  %v2349_v25 = vpop.f32.mrf.mxu1  ;;  %v5279_v23 = vld [vmem:[%s7888_s2 + $0x1e8] sm:$0xf0] }
 0x17c   : > { %v6680_v40 = vadd.f32 %v2246_v8, %v2174_v19  ;;  %v6710_v19 = vor.u32 %v5314_v45, %v4531_v58  ;;  %v6712_v8 = vor.u32 %v5279_v23, %v4395_v0  ;;  %v4616_v58 = vor.u32 %v5332_v52, %v4613_v12  ;;  %v5328_v12 = vld [vmem:[%s5682_s30 + $0x14] sm:$0xf]  ;;  %v4597_v52 = vld [vmem:[%s5682_s30 + $0x18] sm:$0xf0] }
 0x17d   : > { %v6683_v6 = vadd.f32 %v2349_v25, %v2277_v31  ;;  %v6714_v31 = vor.u32 %v5310_v42, %v4533_v38  ;;  %v6716_v25 = vor.u32 %v5275_v49, %v4397_v35  ;;  %v5330_v42 = vld [vmem:[%s5682_s30 + $0x24] sm:$0xf] }
 0x17e   : > { %8077 = vst [vmem:[#allocation70_spill] sm:$0xff] %v6710_v19  ;;  %2629 = vmatpush.bf16.msra.mxu1 %v4616_v58  ;;  %v5288_v58 = vld [vmem:[%s7888_s2 + $0x230] sm:$0xf0] }
 0x17f   : > { %8078 = vst [vmem:[#allocation71_spill] sm:$0xff] %v6712_v8 }
 0x180   : > { %v2175_v51 = vpop.f32.mrf.mxu2  ;;  %8079 = vst [vmem:[#allocation72_spill] sm:$0xff] %v6714_v31 }
 0x181   : > { %v2176_v9 = vadd.f32 %v2175_v51, %v6585_v62  ;;  %8080 = vst [vmem:[#allocation73_spill] sm:$0xff] %v6716_v25 }
 0x182   : > { %v2279_v54 = vpop.f32.mrf.mxu0 }
 0x183   : > { %v2248_v18 = vpop.f32.mrf.mxu3  ;;  %v2280_v32 = vadd.f32 %v2279_v54, %v6300_v27  ;;  %v2352_v28 = vpop.f32.mrf.mxu1  ;;  %v4605_v27 = vld [vmem:[%s5682_s30 + $0x28] sm:$0xf0]  ;;  %v4431_v54 = vld [vmem:[%s7888_s2 + $0x210] sm:$0xf] }
 0x184   : > { %v6718_v44 = vadd.f32 %v2248_v18, %v2176_v9  ;;  %v4567_v9 = vld [vmem:[%s7888_s2 + $0x328] sm:$0xf]  ;;  %v4600_v18 = vor.u32 %v5328_v12, %v4597_v52  ;;  %v6768_v12 = vor.u32 %v5288_v58, %v4431_v54 }
 0x185   : > { %v6723_v62 = vadd.f32 %v2352_v28, %v2280_v32  ;;  %2318 = vmatmul.bf16.gmra.mxu0 %v6710_v19  ;;  %2444 = vmatmul.bf16.gmra.mxu2 %v6712_v8  ;;  %v4608_v28 = vor.u32 %v5330_v42, %v4605_v27  ;;  %v5284_v42 = vld [vmem:[%s7888_s2 + $0x214] sm:$0xf]  ;;  %v4433_v27 = vld [vmem:[%s7888_s2 + $0x234] sm:$0xf0] }
 0x186   : > { %2391 = vmatmul.bf16.gmra.mxu1 %v6714_v31  ;;  %v6772_v8 = vor.u32 %v5284_v42, %v4433_v27  ;;  %v4467_v27 = vld [vmem:[%s7888_s2 + $0x258] sm:$0xf] }
 0x187   : > { %2630 = vmatpush.bf16.msra.mxu1 %v4608_v28  ;;  %v4589_v28 = vld [vmem:[%s5682_s30 + $0x8] sm:$0xf0] }
 0x188   : > { %2517 = vmatmul.bf16.gmra.mxu3 %v6716_v25  ;;  %v2178_v45 = vpop.f32.mrf.mxu2  ;;  %8082 = vst [vmem:[#allocation75_spill] sm:$0xff] %v6772_v8 }
 0x189   : > { %v2179_v0 = vadd.f32 %v2178_v45, %v6089_v48  ;;  %v5323_v48 = vld [vmem:[%s7888_s2 + $0x348] sm:$0xf0]  ;;  %v4569_v45 = vld [vmem:[%s7888_s2 + $0x34c] sm:$0xf0] }
 0x18a   : > { %v2281_v32 = vpop.f32.mrf.mxu0 }
 0x18b   : > { %v2251_v23 = vpop.f32.mrf.mxu3  ;;  %v2282_v49 = vadd.f32 %v2281_v32, %v6345_v24  ;;  %v2354_v35 = vpop.f32.mrf.mxu1  ;;  %v5319_v24 = vld [vmem:[%s7888_s2 + $0x32c] sm:$0xf]  ;;  %2631 = vmatpush.bf16.msra.mxu1 %v4600_v18 }
 0x18c   : > { %v6732_v38 = vadd.f32 %v2251_v23, %v2179_v0  ;;  %v5326_v23 = vld [vmem:[%s5682_s30 + $0x4] sm:$0xf]  ;;  %v6770_v31 = vor.u32 %v5319_v24, %v4569_v45 }
 0x18d   : > { %v6737_v51 = vadd.f32 %v2354_v35, %v2282_v49  ;;  %v6766_v35 = vor.u32 %v5323_v48, %v4567_v9  ;;  %v4592_v52 = vor.u32 %v5326_v23, %v4589_v28 }
 0x18e   : > { %8081 = vst [vmem:[#allocation74_spill] sm:$0xff] %v6770_v31 }
 0x18f   : > { %2632 = vmatpush.bf16.msra.mxu1 %v4592_v52 }
 0x190   : > { %v2180_v0 = vpop.f32.mrf.mxu2 }
 0x191   : > { %v2181_v32 = vadd.f32 %v2180_v0, %v6129_v50  ;;  %v5293_v0 = vld [vmem:[%s7888_s2 + $0x25c] sm:$0xf] }
 0x192   : > { %v2284_v25 = vpop.f32.mrf.mxu0 }
 0x193   : > { %v2253_v49 = vpop.f32.mrf.mxu3  ;;  %v2285_v18 = vadd.f32 %v2284_v25, %v6357_v60  ;;  %v2357_v7 = vpop.f32.mrf.mxu1  ;;  %v574_v60 = vld [vmem:[%s7888_s2 + $0x370] sm:$0xff] }
 0x194   : > { %v6774_v19 = vadd.f32 %v2253_v49, %v2181_v32  ;;  %v1052_v45 = vunpack.c.l.b16 %v574_v60  ;;  %v1053_v42 = vunpack.c.h.b16 %v574_v60 }
 0x195   : > { %v6777_v37 = vadd.f32 %v2357_v7, %v2285_v18  ;;  %2323 = vmatmul.bf16.gmra.mxu0 %v6766_v35  ;;  %2449 = vmatmul.bf16.gmra.mxu2 %v6768_v12 }
 0x196   : > { %2396 = vmatmul.bf16.gmra.mxu1 %v6770_v31  ;;  %v6804_v32 = vpack.c.b16 %v1052_v45, %v1052_v45  ;;  %v6808_v18 = vpack.c.b16 %v1053_v42, %v1053_v42 }
 0x198   : > { %2522 = vmatmul.bf16.gmra.mxu3 %v6772_v8  ;;  %v2183_v50 = vpop.f32.mrf.mxu2  ;;  %8083 = vst [vmem:[#allocation76_spill] sm:$0xff] %v6804_v32  ;;  %v5356_v8 = vld [vmem:[%s5682_s30 + $0xf4] sm:$0xf] }
 0x199   : > { %v2184_v9 = vadd.f32 %v2183_v50, %v6141_v20  ;;  %v5297_v20 = vld [vmem:[%s7888_s2 + $0x278] sm:$0xf0]  ;;  %8085 = vst [vmem:[#allocation78_spill] sm:$0xff] %v6808_v18 }
 0x19a   : > { %v2286_v24 = vpop.f32.mrf.mxu0  ;;  %v6806_v49 = vor.u32 %v5297_v20, %v4467_v27 }
 0x19b   : > { %v2256_v48 = vpop.f32.mrf.mxu3  ;;  %v2287_v7 = vadd.f32 %v2286_v24, %v6382_v14  ;;  %v2359_v54 = vpop.f32.mrf.mxu1  ;;  %v4469_v14 = vld [vmem:[%s7888_s2 + $0x27c] sm:$0xf0] }
 0x19c   : > { %v6787_v25 = vadd.f32 %v2256_v48, %v2184_v9  ;;  %8084 = vst [vmem:[#allocation77_spill] sm:$0xff] %v6806_v49  ;;  %v6810_v50 = vor.u32 %v5293_v0, %v4469_v14  ;;  %v4503_v0 = vld [vmem:[%s7888_s2 + $0x2a0] sm:$0xf]  ;;  %v5306_v14 = vld [vmem:[%s7888_s2 + $0x2c0] sm:$0xf0] }
 0x19d   : > { %v6790_v58 = vadd.f32 %v2359_v54, %v2287_v7 }
 0x19e   : > { %8086 = vst [vmem:[#allocation79_spill] sm:$0xff] %v6810_v50 }
 0x1a0   : > { %v2185_v23 = vpop.f32.mrf.mxu2 }
 0x1a1   : > { %v5302_v23 = vld [vmem:[%s7888_s2 + $0x2a4] sm:$0xf] }
 0x1a2   : > { %v2289_v52 = vpop.f32.mrf.mxu0 }
 0x1a3   : > { %v2258_v28 = vpop.f32.mrf.mxu3  ;;  %v2290_v9 = vadd.f32 %v2289_v52, %v6393_v26  ;;  %v2362_v48 = vpop.f32.mrf.mxu1 }
 0x1a4   : > { %v4505_v28 = vld [vmem:[%s7888_s2 + $0x2c4] sm:$0xf0] }
 0x1a5   : > { %v6813_v24 = vadd.f32 %v2362_v48, %v2290_v9  ;;  %2328 = vmatmul.bf16.gmra.mxu0 %v6804_v32  ;;  %2454 = vmatmul.bf16.gmra.mxu2 %v6806_v49 }
 0x1a6   : > { %2401 = vmatmul.bf16.gmra.mxu1 %v6808_v18 }
 0x1a8   : > { %2527 = vmatmul.bf16.gmra.mxu3 %v6810_v50  ;;  %v2415_v60 = vpop.f32.mrf.mxu2 }
 0x1a9   : > { %v2416_v7 = vadd.f32 %v2415_v60, %v6623_v57  ;;  %v4187_v57 = vld [vmem:[%s7888_s2 + $0x20] sm:$0xf]  ;;  %v6844_v60 = vor.u32 %v5306_v14, %v4503_v0  ;;  %v4773_v14 = vld [vmem:[%s5682_s30 + $0x178] sm:$0xf0] }
 0x1aa   : > { %v2291_v45 = vpop.f32.mrf.mxu0 }
 0x1ab   : > { %v2488_v54 = vpop.f32.mrf.mxu3  ;;  %v2292_v42 = vadd.f32 %v2291_v45, %v6432_v22  ;;  %v2364_v27 = vpop.f32.mrf.mxu1  ;;  %v5226_v22 = vld [vmem:[%s7888_s2 + $0x40] sm:$0xf0]  ;;  %8087 = vst [vmem:[#allocation80_spill] sm:$0xff] %v6844_v60  ;;  %v6848_v45 = vor.u32 %v5302_v23, %v4505_v28  ;;  %v4701_v28 = vld [vmem:[%s5682_s30 + $0xe8] sm:$0xf0] }
 0x1ac   : > { %v6821_v26 = vadd.f32 %v2488_v54, %v2416_v7  ;;  %v6846_v7 = vor.u32 %v5226_v22, %v4187_v57  ;;  %v5354_v23 = vld [vmem:[%s5682_s30 + $0xe4] sm:$0xf] }
 0x1ad   : > { %v6823_v20 = vadd.f32 %v2364_v27, %v2292_v42  ;;  %8089 = vst [vmem:[#allocation82_spill] sm:$0xff] %v6848_v45 }
 0x1ae   : > { %8088 = vst [vmem:[#allocation81_spill] sm:$0xff] %v6846_v7 }
 0x1b0   : > { %v2417_v52 = vpop.f32.mrf.mxu2 }
 0x1b1   : > { %v2418_v9 = vadd.f32 %v2417_v52, %v6635_v5  ;;  %v4709_v5 = vld [vmem:[%s5682_s30 + $0xf8] sm:$0xf0] }
 0x1b2   : > { %v2294_v54 = vpop.f32.mrf.mxu0  ;;  %v4712_v0 = vor.u32 %v5356_v8, %v4709_v5 }
 0x1b3   : > { %v2490_v48 = vpop.f32.mrf.mxu3  ;;  %v2295_v42 = vadd.f32 %v2294_v54, %v6441_v21  ;;  %v2367_v27 = vpop.f32.mrf.mxu1  ;;  %v5372_v21 = vld [vmem:[%s5682_s30 + $0x174] sm:$0xf]  ;;  %v4704_v54 = vor.u32 %v5354_v23, %v4701_v28  ;;  %v5235_v28 = vld [vmem:[%s7888_s2 + $0x88] sm:$0xf0] }
 0x1b4   : > { %v6851_v50 = vadd.f32 %v2490_v48, %v2418_v9  ;;  %2688 = vmatpush.bf16.msrb.mxu2 %v4712_v0  ;;  %v4776_v57 = vor.u32 %v5372_v21, %v4773_v14  ;;  %v5352_v14 = vld [vmem:[%s5682_s30 + $0xd4] sm:$0xf] }
 0x1b5   : > { %v6855_v52 = vadd.f32 %v2367_v27, %v2295_v42  ;;  %2459 = vmatmul.bf16.gmra.mxu2 %v6844_v60  ;;  %5105 = vmatmul.msk.bf16.vlgmr.msra.gmra.mxu0 %vm1928_vm0, %v6846_v7  ;;  %v5370_v42 = vld [vmem:[%s5682_s30 + $0x164] sm:$0xf] }
 0x1b6   : > { %2633 = vmatmul.bf16.vlgmr.msra.gmra.mxu1 %v5745_v63  ;;  %2751 = vmatpush.bf16.msrb.mxu3 %v4776_v57  ;;  %v4765_v63 = vld [vmem:[%s5682_s30 + $0x168] sm:$0xf0]  ;;  %v4539_v57 = vld [vmem:[%s7888_s2 + $0x2e8] sm:$0xf] }
 0x1b7   : > { %v4768_v21 = vor.u32 %v5370_v42, %v4765_v63 }
 0x1b8   : > { %2532 = vmatmul.bf16.gmra.mxu3 %v6848_v45  ;;  %v2420_v22 = vpop.f32.mrf.mxu2  ;;  %2689 = vmatpush.bf16.msrb.mxu2 %v4704_v54  ;;  %v4693_v45 = vld [vmem:[%s5682_s30 + $0xd8] sm:$0xf0]  ;;  %v5311_v54 = vld [vmem:[%s7888_s2 + $0x2ec] sm:$0xf] }
 0x1b9   : > { %v2421_v9 = vadd.f32 %v2420_v22, %v6673_v46  ;;  %v5315_v22 = vld [vmem:[%s7888_s2 + $0x308] sm:$0xf0]  ;;  %v4696_v23 = vor.u32 %v5352_v14, %v4693_v45  ;;  %v5350_v45 = vld [vmem:[%s5682_s30 + $0xc4] sm:$0xf] }
 0x1ba   : > { %v2296_v8 = vpop.f32.mrf.mxu0  ;;  %2752 = vmatpush.bf16.msrb.mxu3 %v4768_v21  ;;  %v6899_v14 = vor.u32 %v5315_v22, %v4539_v57  ;;  %v5348_v57 = vld [vmem:[%s5682_s30 + $0xb4] sm:$0xf]  ;;  %v4677_v22 = vld [vmem:[%s5682_s30 + $0xb8] sm:$0xf0] }
 0x1bb   : > { %v2493_v48 = vpop.f32.mrf.mxu3  ;;  %v2297_v27 = vadd.f32 %v2296_v8, %v6478_v47  ;;  %v2369_v5 = vpop.f32.mrf.mxu1  ;;  %v4223_v47 = vld [vmem:[%s7888_s2 + $0x68] sm:$0xf]  ;;  %v4541_v8 = vld [vmem:[%s7888_s2 + $0x30c] sm:$0xf0] }
 0x1bc   : > { %v6870_v0 = vadd.f32 %v2493_v48, %v2421_v9  ;;  %v5368_v9 = vld [vmem:[%s5682_s30 + $0x154] sm:$0xf]  ;;  %v4757_v48 = vld [vmem:[%s5682_s30 + $0x158] sm:$0xf0]  ;;  %2690 = vmatpush.bf16.msrb.mxu2 %v4696_v23  ;;  %8090 = vst [vmem:[#allocation83_spill] sm:$0xff] %v6899_v14  ;;  %v6901_v18 = vor.u32 %v5235_v28, %v4223_v47  ;;  %v6903_v7 = vor.u32 %v5311_v54, %v4541_v8 }
 0x1bd   : > { %v6874_v46 = vadd.f32 %v2369_v5, %v2297_v27  ;;  %v4760_v42 = vor.u32 %v5368_v9, %v4757_v48  ;;  %v4685_v27 = vld [vmem:[%s5682_s30 + $0xc8] sm:$0xf0]  ;;  %v5366_v23 = vld [vmem:[%s5682_s30 + $0x144] sm:$0xf]  ;;  %v4680_v28 = vor.u32 %v5348_v57, %v4677_v22  ;;  %v4661_v57 = vld [vmem:[%s5682_s30 + $0x98] sm:$0xf0] }
 0x1be   : > { %8091 = vst [vmem:[#allocation84_spill] sm:$0xff] %v6901_v18  ;;  %v4688_v31 = vor.u32 %v5350_v45, %v4685_v27  ;;  %v4749_v9 = vld [vmem:[%s5682_s30 + $0x148] sm:$0xf0]  ;;  %v5346_v54 = vld [vmem:[%s5682_s30 + $0xa4] sm:$0xf] }
 0x1bf   : > { %2753 = vmatpush.bf16.msrb.mxu3 %v4760_v42  ;;  %8092 = vst [vmem:[#allocation85_spill] sm:$0xff] %v6903_v7  ;;  %v4669_v8 = vld [vmem:[%s5682_s30 + $0xa8] sm:$0xf0]  ;;  %v4575_v22 = vld [vmem:[%s7888_s2 + $0x330] sm:$0xf] }
 0x1c0   : > { %v2422_v63 = vpop.f32.mrf.mxu2  ;;  %2691 = vmatpush.bf16.msrb.mxu2 %v4688_v31  ;;  %v4741_v31 = vld [vmem:[%s5682_s30 + $0x138] sm:$0xf0]  ;;  %v4672_v45 = vor.u32 %v5346_v54, %v4669_v8  ;;  %v5320_v54 = vld [vmem:[%s7888_s2 + $0x334] sm:$0xf]  ;;  %v4577_v8 = vld [vmem:[%s7888_s2 + $0x354] sm:$0xf0] }
 0x1c1   : > { %v2423_v5 = vadd.f32 %v2422_v63, %v6683_v6  ;;  %v4752_v6 = vor.u32 %v5366_v23, %v4749_v9 }
 0x1c2   : > { %v2299_v60 = vpop.f32.mrf.mxu0 }
 0x1c3   : > { %v2495_v21 = vpop.f32.mrf.mxu3  ;;  %v2300_v48 = vadd.f32 %v2299_v60, %v6489_v61  ;;  %v2372_v49 = vpop.f32.mrf.mxu1  ;;  %v5364_v61 = vld [vmem:[%s5682_s30 + $0x134] sm:$0xf]  ;;  %2754 = vmatpush.bf16.msrb.mxu3 %v4752_v6 }
 0x1c4   : > { %v6908_v32 = vadd.f32 %v2495_v21, %v2423_v5  ;;  %2692 = vmatpush.bf16.msrb.mxu2 %v4680_v28  ;;  %v4744_v60 = vor.u32 %v5364_v61, %v4741_v31  ;;  %v5362_v5 = vld [vmem:[%s5682_s30 + $0x124] sm:$0xf]  ;;  %v5344_v6 = vld [vmem:[%s5682_s30 + $0x94] sm:$0xf]  ;;  %v4259_v28 = vld [vmem:[%s7888_s2 + $0xb0] sm:$0xf] }
 0x1c5   : > { %v6912_v47 = vadd.f32 %v2372_v49, %v2300_v48  ;;  %2464 = vmatmul.bf16.gmra.mxu2 %v6899_v14  ;;  %5106 = vmatmul.msk.bf16.gmra.mxu0 %vm1928_vm0, %v6901_v18  ;;  %v4664_v61 = vor.u32 %v5344_v6, %v4661_v57  ;;  %v5244_v31 = vld [vmem:[%s7888_s2 + $0xd0] sm:$0xf0]  ;;  %v5358_v14 = vld [vmem:[%s5682_s30 + $0x104] sm:$0xf]  ;;  %v4717_v18 = vld [vmem:[%s5682_s30 + $0x108] sm:$0xf0] }
 0x1c6   : > { %2636 = vmatmul.bf16.gmra.mxu1 %v5788_v34  ;;  %v4733_v34 = vld [vmem:[%s5682_s30 + $0x128] sm:$0xf0] }
 0x1c7   : > { %2755 = vmatpush.bf16.msrb.mxu3 %v4744_v60  ;;  %v4736_v48 = vor.u32 %v5362_v5, %v4733_v34  ;;  %v5360_v60 = vld [vmem:[%s5682_s30 + $0x114] sm:$0xf] }
 0x1c8   : > { %2537 = vmatmul.bf16.gmra.mxu3 %v6903_v7  ;;  %v2425_v49 = vpop.f32.mrf.mxu2  ;;  %2693 = vmatpush.bf16.msrb.mxu2 %v4672_v45  ;;  %v5342_v45 = vld [vmem:[%s5682_s30 + $0x84] sm:$0xf]  ;;  %v6960_v7 = vor.u32 %v5320_v54, %v4577_v8 }
 0x1c9   : > { %v2426_v42 = vadd.f32 %v2425_v49, %v6723_v62  ;;  %v4725_v49 = vld [vmem:[%s5682_s30 + $0x118] sm:$0xf0] }
 0x1ca   : > { %v2301_v27 = vpop.f32.mrf.mxu0 }
 0x1cb   : > { %v2498_v63 = vpop.f32.mrf.mxu3  ;;  %v2302_v21 = vadd.f32 %v2301_v27, %v6526_v59  ;;  %v2374_v23 = vpop.f32.mrf.mxu1  ;;  %v5324_v59 = vld [vmem:[%s7888_s2 + $0x350] sm:$0xf0]  ;;  %2756 = vmatpush.bf16.msrb.mxu3 %v4736_v48  ;;  %v4653_v27 = vld [vmem:[%s5682_s30 + $0x88] sm:$0xf0] }
 0x1cc   : > { %v6927_v9 = vadd.f32 %v2498_v63, %v2426_v42  ;;  %2694 = vmatpush.bf16.msrb.mxu2 %v4664_v61  ;;  %v4728_v42 = vor.u32 %v5360_v60, %v4725_v49  ;;  %v4656_v6 = vor.u32 %v5342_v45, %v4653_v27  ;;  %v4720_v49 = vor.u32 %v5358_v14, %v4717_v18  ;;  %v575_v18 = vld [vmem:[%s7888_s2 + $0x378] sm:$0xff] }
 0x1cd   : > { %v6931_v62 = vadd.f32 %v2374_v23, %v2302_v21  ;;  %v6956_v21 = vor.u32 %v5324_v59, %v4575_v22  ;;  %v6958_v23 = vor.u32 %v5244_v31, %v4259_v28 }
 0x1cf   : > { %2757 = vmatpush.bf16.msrb.mxu3 %v4728_v42  ;;  %v4295_v42 = vld [vmem:[%s7888_s2 + $0xf8] sm:$0xf] }
 0x1d0   : > { %v2427_v63 = vpop.f32.mrf.mxu2  ;;  %2695 = vmatpush.bf16.msrb.mxu2 %v4656_v6 }
 0x1d1   : > { %v2428_v5 = vadd.f32 %v2427_v63, %v6737_v51  ;;  %v1055_v63 = vunpack.c.h.b16 %v575_v18 }
 0x1d2   : > { %v2304_v57 = vpop.f32.mrf.mxu0 }
 0x1d3   : > { %v2500_v34 = vpop.f32.mrf.mxu3  ;;  %v2305_v48 = vadd.f32 %v2304_v57, %v6535_v30  ;;  %v2377_v61 = vpop.f32.mrf.mxu1  ;;  %2758 = vmatpush.bf16.msrb.mxu3 %v4720_v49  ;;  %v6994_v57 = vpack.c.b16 %v1055_v63, %v1055_v63  ;;  %v5404_v63 = vld [vmem:[%s5682_s30 + $0x274] sm:$0xf] }
 0x1d4   : > { %v6965_v60 = vadd.f32 %v2500_v34, %v2428_v5 }
 0x1d5   : > { %v6967_v51 = vadd.f32 %v2377_v61, %v2305_v48  ;;  %2469 = vmatmul.bf16.gmra.mxu2 %v6956_v21  ;;  %5107 = vmatmul.msk.bf16.gmra.mxu0 %vm1928_vm0, %v6958_v23 }
 0x1d6   : > { %2639 = vmatmul.bf16.gmra.mxu1 %v5835_v1  ;;  %v1054_v1 = vunpack.c.l.b16 %v575_v18 }
 0x1d8   : > { %2542 = vmatmul.bf16.gmra.mxu3 %v6960_v7  ;;  %v2430_v22 = vpop.f32.mrf.mxu2 }
 0x1d9   : > { %v2431_v30 = vadd.f32 %v2430_v22, %v6777_v37  ;;  %v5253_v37 = vld [vmem:[%s7888_s2 + $0x118] sm:$0xf0] }
 0x1da   : > { %v2306_v28 = vpop.f32.mrf.mxu0  ;;  %v6992_v34 = vor.u32 %v5253_v37, %v4295_v42 }
 0x1db   : > { %v2503_v59 = vpop.f32.mrf.mxu3  ;;  %v2307_v14 = vadd.f32 %v2306_v28, %v6574_v13  ;;  %v2379_v31 = vpop.f32.mrf.mxu1  ;;  %v6990_v13 = vpack.c.b16 %v1054_v1, %v1054_v1  ;;  %v4837_v28 = vld [vmem:[%s5682_s30 + $0x1f8] sm:$0xf0] }
 0x1dc   : > { %v6979_v54 = vadd.f32 %v2503_v59, %v2431_v30  ;;  %v5388_v59 = vld [vmem:[%s5682_s30 + $0x1f4] sm:$0xf] }
 0x1dd   : > { %v6981_v8 = vadd.f32 %v2379_v31, %v2307_v14  ;;  %v4840_v14 = vor.u32 %v5388_v59, %v4837_v28 }
 0x1df   : > { %2814 = vmatpush.bf16.msrb.mxu0 %v4840_v14 }
 0x1e0   : > { %v2432_v45 = vpop.f32.mrf.mxu2 }
 0x1e1   : > { %v2433_v27 = vadd.f32 %v2432_v45, %v6790_v58  ;;  %v4331_v45 = vld [vmem:[%s7888_s2 + $0x140] sm:$0xf] }
 0x1e2   : > { %v2309_v6 = vpop.f32.mrf.mxu0 }
 0x1e3   : > { %v2505_v5 = vpop.f32.mrf.mxu3  ;;  %v2310_v48 = vadd.f32 %v2309_v6, %v6583_v43  ;;  %v2382_v61 = vpop.f32.mrf.mxu1 }
 0x1e4   : > { %v6997_v49 = vadd.f32 %v2505_v5, %v2433_v27 }
 0x1e5   : > { %v6999_v22 = vadd.f32 %v2382_v61, %v2310_v48  ;;  %2474 = vmatmul.bf16.gmra.mxu2 %v6990_v13  ;;  %5108 = vmatmul.msk.bf16.gmra.mxu0 %vm1928_vm0, %v6992_v34 }
 0x1e6   : > { %2642 = vmatmul.bf16.gmra.mxu1 %v5871_v15  ;;  %v4901_v15 = vld [vmem:[%s5682_s30 + $0x278] sm:$0xf0] }
 0x1e7   : > { %v4904_v27 = vor.u32 %v5404_v63, %v4901_v15 }
 0x1e8   : > { %2547 = vmatmul.bf16.gmra.mxu3 %v6994_v57  ;;  %v2435_v58 = vpop.f32.mrf.mxu2 }
 0x1e9   : > { %v2436_v30 = vadd.f32 %v2435_v58, %v6813_v24  ;;  %v5262_v24 = vld [vmem:[%s7888_s2 + $0x160] sm:$0xf0]  ;;  %2877 = vmatpush.bf16.msrb.mxu1 %v4904_v27 }
 0x1ea   : > { %v2311_v18 = vpop.f32.mrf.mxu0  ;;  %v7023_v48 = vor.u32 %v5262_v24, %v4331_v45 }
 0x1eb   : > { %v2508_v43 = vpop.f32.mrf.mxu3  ;;  %v2312_v31 = vadd.f32 %v2311_v18, %v6620_v10  ;;  %v2384_v1 = vpop.f32.mrf.mxu1 }
 0x1ec   : > { %v7010_v42 = vadd.f32 %v2508_v43, %v2436_v30 }
 0x1ed   : > { %v7012_v37 = vadd.f32 %v2384_v1, %v2312_v31 }
 0x1f0   : > { %v2437_v5 = vpop.f32.mrf.mxu2 }
 0x1f1   : > { %v2438_v10 = vadd.f32 %v2437_v5, %v6823_v20 }
 0x1f2   : > { %v2314_v61 = vpop.f32.mrf.mxu0 }
 0x1f3   : > { %v2510_v6 = vpop.f32.mrf.mxu3  ;;  %v2315_v58 = vadd.f32 %v2314_v61, %v6632_v29  ;;  %v2387_v30 = vpop.f32.mrf.mxu1  ;;  %v4829_v61 = vld [vmem:[%s5682_s30 + $0x1e8] sm:$0xf0] }
 0x1f4   : > { %v7026_v43 = vadd.f32 %v2510_v6, %v2438_v10  ;;  %v5386_v6 = vld [vmem:[%s5682_s30 + $0x1e4] sm:$0xf] }
 0x1f5   : > { %v7028_v59 = vadd.f32 %v2387_v30, %v2315_v58  ;;  %5109 = vmatmul.msk.bf16.gmra.mxu0 %vm1928_vm0, %v7023_v48  ;;  %2696 = vmatmul.bf16.vlgmr.msrb.gmra.mxu2 %v5752_v4  ;;  %v4367_v4 = vld [vmem:[%s7888_s2 + $0x188] sm:$0xf]  ;;  %v5402_v58 = vld [vmem:[%s5682_s30 + $0x264] sm:$0xf]  ;;  %v4893_v30 = vld [vmem:[%s5682_s30 + $0x268] sm:$0xf0] }
 0x1f6   : > { %2645 = vmatmul.bf16.gmra.mxu1 %v5911_v33 }
 0x1f8   : > { %2759 = vmatmul.bf16.vlgmr.msrb.gmra.mxu3 %v5837_v2  ;;  %v2440_v20 = vpop.f32.mrf.mxu2  ;;  %v5271_v2 = vld [vmem:[%s7888_s2 + $0x1a8] sm:$0xf0] }
 0x1f9   : > { %v2441_v28 = vadd.f32 %v2440_v20, %v6855_v52  ;;  %v7048_v15 = vor.u32 %v5271_v2, %v4367_v4 }
 0x1fa   : > { %v2316_v14 = vpop.f32.mrf.mxu0 }
 0x1fb   : > { %v2513_v18 = vpop.f32.mrf.mxu3  ;;  %v2317_v29 = vadd.f32 %v2316_v14, %v6670_v53  ;;  %v2389_v31 = vpop.f32.mrf.mxu1 }
 0x1fc   : > { %v7037_v1 = vadd.f32 %v2513_v18, %v2441_v28 }
 0x1fd   : > { %v7039_v63 = vadd.f32 %v2389_v31, %v2317_v29 }
 0x200   : > { %v2442_v33 = vpop.f32.mrf.mxu2 }
 0x201   : > { %v2443_v52 = vadd.f32 %v2442_v33, %v6874_v46  ;;  %v4832_v46 = vor.u32 %v5386_v6, %v4829_v61 }
 0x202   : > { %v2319_v45 = vpop.f32.mrf.mxu0 }
 0x203   : > { %v2515_v53 = vpop.f32.mrf.mxu3  ;;  %v2320_v24 = vadd.f32 %v2319_v45, %v6680_v40  ;;  %v2392_v27 = vpop.f32.mrf.mxu1  ;;  %v4896_v40 = vor.u32 %v5402_v58, %v4893_v30  ;;  %2815 = vmatpush.bf16.msrb.mxu0 %v4832_v46 }
 0x204   : > { %v7051_v5 = vadd.f32 %v2515_v53, %v2443_v52 }
 0x205   : > { %v7053_v10 = vadd.f32 %v2392_v27, %v2320_v24  ;;  %5110 = vmatmul.msk.bf16.gmra.mxu0 %vm1928_vm0, %v7048_v15  ;;  %2699 = vmatmul.bf16.gmra.mxu2 %v5795_v39 }
 0x206   : > { %2648 = vmatmul.bf16.gmra.mxu1 %v5951_v55  ;;  %v5280_v55 = vld [vmem:[%s7888_s2 + $0x1f0] sm:$0xf0] }
 0x207   : > { %2878 = vmatpush.bf16.msrb.mxu1 %v4896_v40  ;;  %v5384_v40 = vld [vmem:[%s5682_s30 + $0x1d4] sm:$0xf] }
 0x208   : > { %2762 = vmatmul.bf16.gmra.mxu3 %v5873_v16  ;;  %v2445_v20 = vpop.f32.mrf.mxu2  ;;  %v4403_v16 = vld [vmem:[%s7888_s2 + $0x1d0] sm:$0xf] }
 0x209   : > { %v2446_v28 = vadd.f32 %v2445_v20, %v6912_v47  ;;  %v7077_v52 = vor.u32 %v5280_v55, %v4403_v16  ;;  %v4821_v20 = vld [vmem:[%s5682_s30 + $0x1d8] sm:$0xf0] }
 0x20a   : > { %v2321_v14 = vpop.f32.mrf.mxu0 }
 0x20b   : > { %v2518_v18 = vpop.f32.mrf.mxu3  ;;  %v2322_v29 = vadd.f32 %v2321_v14, %v6718_v44  ;;  %v2394_v39 = vpop.f32.mrf.mxu1  ;;  %v4885_v14 = vld [vmem:[%s5682_s30 + $0x258] sm:$0xf0] }
 0x20c   : > { %v7066_v31 = vadd.f32 %v2518_v18, %v2446_v28  ;;  %v4824_v28 = vor.u32 %v5384_v40, %v4821_v20 }
 0x20d   : > { %v7068_v4 = vadd.f32 %v2394_v39, %v2322_v29 }
 0x20e   : > { %2816 = vmatpush.bf16.msrb.mxu0 %v4824_v28  ;;  %v8093_v28 = vld [vmem:[#allocation8_spill] sm:$0xff] }
 0x210   : > { %v2447_v2 = vpop.f32.mrf.mxu2 }
 0x211   : > { %v2448_v47 = vadd.f32 %v2447_v2, %v6931_v62 }
 0x212   : > { %v2324_v44 = vpop.f32.mrf.mxu0 }
 0x213   : > { %v2520_v33 = vpop.f32.mrf.mxu3  ;;  %v2325_v53 = vadd.f32 %v2324_v44, %v6732_v38  ;;  %v2397_v45 = vpop.f32.mrf.mxu1 }
 0x214   : > { %v7080_v24 = vadd.f32 %v2520_v33, %v2448_v47 }
 0x215   : > { %v7082_v27 = vadd.f32 %v2397_v45, %v2325_v53  ;;  %5111 = vmatmul.msk.bf16.gmra.mxu0 %vm1928_vm0, %v7077_v52  ;;  %2702 = vmatmul.bf16.gmra.mxu2 %v5839_v3  ;;  %v5400_v3 = vld [vmem:[%s5682_s30 + $0x254] sm:$0xf] }
 0x216   : > { %2653 = vmatmul.bf16.gmra.mxu1 %v5987_v11  ;;  %v5289_v11 = vld [vmem:[%s7888_s2 + $0x238] sm:$0xf0] }
 0x218   : > { %2765 = vmatmul.bf16.gmra.mxu3 %v5913_v36  ;;  %v2450_v62 = vpop.f32.mrf.mxu2  ;;  %v4439_v36 = vld [vmem:[%s7888_s2 + $0x218] sm:$0xf] }
 0x219   : > { %v2451_v38 = vadd.f32 %v2450_v62, %v6967_v51  ;;  %v7106_v16 = vor.u32 %v5289_v11, %v4439_v36  ;;  %v4813_v36 = vld [vmem:[%s5682_s30 + $0x1c8] sm:$0xf0] }
 0x21a   : > { %v2326_v61 = vpop.f32.mrf.mxu0 }
 0x21b   : > { %v2523_v6 = vpop.f32.mrf.mxu3  ;;  %v2327_v46 = vadd.f32 %v2326_v61, %v6774_v19  ;;  %v2399_v58 = vpop.f32.mrf.mxu1  ;;  %v4888_v19 = vor.u32 %v5400_v3, %v4885_v14  ;;  %v8094_v3 = vld [vmem:[#allocation18_spill] sm:$0xff] }
 0x21c   : > { %v7091_v30 = vadd.f32 %v2523_v6, %v2451_v38  ;;  %v4475_v6 = vld [vmem:[%s7888_s2 + $0x260] sm:$0xf]  ;;  %v5382_v14 = vld [vmem:[%s5682_s30 + $0x1c4] sm:$0xf] }
 0x21d   : > { %v7095_v18 = vadd.f32 %v2399_v58, %v2327_v46  ;;  %2879 = vmatpush.bf16.msrb.mxu1 %v4888_v19  ;;  %v4816_v19 = vor.u32 %v5382_v14, %v4813_v36 }
 0x21f   : > { %2817 = vmatpush.bf16.msrb.mxu0 %v4816_v19  ;;  %v4547_v19 = vld [vmem:[%s7888_s2 + $0x2f0] sm:$0xf] }
 0x220   : > { %v2452_v51 = vpop.f32.mrf.mxu2 }
 0x221   : > { %v2453_v29 = vadd.f32 %v2452_v51, %v6981_v8 }
 0x222   : > { %v2329_v55 = vpop.f32.mrf.mxu0 }
 0x223   : > { %v2525_v39 = vpop.f32.mrf.mxu3  ;;  %v2330_v2 = vadd.f32 %v2329_v55, %v6787_v25  ;;  %v2402_v47 = vpop.f32.mrf.mxu1 }
 0x224   : > { %v7109_v33 = vadd.f32 %v2525_v39, %v2453_v29  ;;  %v5398_v39 = vld [vmem:[%s5682_s30 + $0x244] sm:$0xf] }
 0x225   : > { %v7111_v44 = vadd.f32 %v2402_v47, %v2330_v2  ;;  %5112 = vmatmul.msk.bf16.gmra.mxu0 %vm1928_vm0, %v7106_v16  ;;  %2705 = vmatmul.bf16.gmra.mxu2 %v5875_v17  ;;  %v5298_v17 = vld [vmem:[%s7888_s2 + $0x280] sm:$0xf0] }
 0x226   : > { %2658 = vmatmul.bf16.gmra.mxu1 %v6027_v41 }
 0x228   : > { %2768 = vmatmul.bf16.gmra.mxu3 %v5953_v56  ;;  %v2455_v8 = vpop.f32.mrf.mxu2 }
 0x229   : > { %v2456_v53 = vadd.f32 %v2455_v8, %v6999_v22  ;;  %v7128_v22 = vor.u32 %v5298_v17, %v4475_v6 }
 0x22a   : > { %v2331_v62 = vpop.f32.mrf.mxu0 }
 0x22b   : > { %v2528_v45 = vpop.f32.mrf.mxu3  ;;  %v2404_v25 = vpop.f32.mrf.mxu1 }
 0x22c   : > { %v7119_v38 = vadd.f32 %v2528_v45, %v2456_v53  ;;  %v4511_v45 = vld [vmem:[%s7888_s2 + $0x2a8] sm:$0xf] }
 0x230   : > { %v2457_v41 = vpop.f32.mrf.mxu2 }
 0x231   : > { %v2458_v56 = vadd.f32 %v2457_v41, %v7012_v37  ;;  %v8095_v37 = vld [vmem:[#allocation12_spill] sm:$0xff] }
 0x232   : > { %v2561_v46 = vpop.f32.mrf.mxu0 }
 0x233   : > { %v2530_v61 = vpop.f32.mrf.mxu3  ;;  %v7133_v40 = vadd.f32 %v2561_v46, %v6821_v26  ;;  %v2634_v20 = vpop.f32.mrf.mxu1  ;;  %v4877_v26 = vld [vmem:[%s5682_s30 + $0x248] sm:$0xf0]  ;;  %v8096_v46 = vld [vmem:[#allocation10_spill] sm:$0xff] }
 0x234   : > { %v7130_v58 = vadd.f32 %v2530_v61, %v2458_v56  ;;  %v4880_v2 = vor.u32 %v5398_v39, %v4877_v26  ;;  %v8097_v20 = vld [vmem:[#allocation22_spill] sm:$0xff]  ;;  %v4805_v39 = vld [vmem:[%s5682_s30 + $0x1b8] sm:$0xf0] }
 0x235   : > { %5113 = vmatmul.msk.bf16.gmra.mxu0 %vm1928_vm0, %v7128_v22  ;;  %2708 = vmatmul.bf16.gmra.mxu2 %v8093_v28 }
 0x236   : > { %2663 = vmatmul.bf16.gmra.mxu1 %v8094_v3 }
 0x237   : > { %2880 = vmatpush.bf16.msrb.mxu1 %v4880_v2 }
 0x238   : > { %2771 = vmatmul.bf16.gmra.mxu3 %v8095_v37  ;;  %v2460_v11 = vpop.f32.mrf.mxu2 }
 0x239   : > { %v2461_v51 = vadd.f32 %v2460_v11, %v7028_v59  ;;  %v5307_v59 = vld [vmem:[%s7888_s2 + $0x2c8] sm:$0xf0] }
 0x23a   : > { %v2563_v55 = vpop.f32.mrf.mxu0  ;;  %v7156_v17 = vor.u32 %v5307_v59, %v4511_v45 }
 0x23b   : > { %v2533_v29 = vpop.f32.mrf.mxu3  ;;  %v2635_v8 = vpop.f32.mrf.mxu1  ;;  %v2564_v53 = vadd.f32 %v2563_v55, %v6851_v50 }
 0x23c   : > { %v7145_v47 = vadd.f32 %v2533_v29, %v2461_v51  ;;  %v5380_v29 = vld [vmem:[%s5682_s30 + $0x1b4] sm:$0xf] }
 0x23d   : > { %3194 = vrot.lane.b32.xlu0 %v2564_v53, %s7997_s22  ;;  %v4808_v2 = vor.u32 %v5380_v29, %v4805_v39  ;;  %v4789_v29 = vld [vmem:[%s5682_s30 + $0x198] sm:$0xf0]  ;;  %v5392_v39 = vld [vmem:[%s5682_s30 + $0x214] sm:$0xf]  ;;  %s5584_s22 = smov 77  }
 0x23f   : > { %2818 = vmatpush.bf16.msrb.mxu0 %v4808_v2 }
 0x240   : > { %v2462_v62 = vpop.f32.mrf.mxu2 }
 0x241   : > { %v2463_v25 = vadd.f32 %v2462_v62, %v7039_v63  ;;  %v8098_v63 = vld [vmem:[#allocation15_spill] sm:$0xff]  ;;  %v5396_v62 = vld [vmem:[%s5682_s30 + $0x234] sm:$0xf] }
 0x242   : > { %v2566_v41 = vpop.f32.mrf.mxu0 }
 0x243   : > { %v2535_v6 = vpop.f32.mrf.mxu3  ;;  %v2567_v56 = vadd.f32 %v2566_v41, %v6870_v0  ;;  %v2637_v61 = vpop.f32.mrf.mxu1  ;;  %v8100_v41 = vld [vmem:[#allocation26_spill] sm:$0xff] }
 0x244   : > { %v7158_v50 = vadd.f32 %v2535_v6, %v2463_v25  ;;  %v4869_v25 = vld [vmem:[%s5682_s30 + $0x238] sm:$0xf0]  ;;  %v5378_v61 = vld [vmem:[%s5682_s30 + $0x1a4] sm:$0xf] }
 0x245   : > { %5114 = vmatmul.msk.bf16.gmra.mxu0 %vm1928_vm0, %v7156_v17  ;;  %2711 = vmatmul.bf16.gmra.mxu2 %v8096_v46  ;;  %v4872_v6 = vor.u32 %v5396_v62, %v4869_v25  ;;  %v4797_v46 = vld [vmem:[%s5682_s30 + $0x1a8] sm:$0xf0]  ;;  %v5390_v62 = vld [vmem:[%s5682_s30 + $0x204] sm:$0xf] }
 0x246   : > { %3199 = vrot.lane.b32.xlu0 %v2567_v56, %s7993_s29  ;;  %2668 = vmatmul.bf16.gmra.mxu1 %v8097_v20  ;;  %v8101_v56 = vld [vmem:[#allocation19_spill] sm:$0xff]  ;;  %v5394_v20 = vld [vmem:[%s5682_s30 + $0x224] sm:$0xf]  ;;  %s5582_s29 = smov 79  }
 0x247   : > { %2881 = vmatpush.bf16.msrb.mxu1 %v4872_v6 }
 0x248   : > { %2774 = vmatmul.bf16.gmra.mxu3 %v8098_v63  ;;  %v2465_v28 = vpop.f32.mrf.mxu2 }
 0x249   : > { %v2466_v3 = vadd.f32 %v2465_v28, %v7053_v10  ;;  %v5316_v10 = vld [vmem:[%s7888_s2 + $0x310] sm:$0xf0] }
 0x24a   : > { %v2568_v0 = vpop.f32.mrf.mxu0 }
 0x24b   : > { %v2538_v37 = vpop.f32.mrf.mxu3  ;;  %v2638_v36 = vpop.f32.mrf.mxu1  ;;  %v2569_v11 = vadd.f32 %v2568_v0, %v6908_v32  ;;  %v7181_v32 = vor.u32 %v5316_v10, %v4547_v19 }
 0x24c   : > { %v7168_v14 = vadd.f32 %v2538_v37, %v2466_v3  ;;  %v4800_v3 = vor.u32 %v5378_v61, %v4797_v46  ;;  %v4861_v37 = vld [vmem:[%s5682_s30 + $0x228] sm:$0xf0] }
 0x24d   : > { %3204 = vrot.lane.b32.xlu1 %v2569_v11, %s7991_s14  ;;  %v4864_v36 = vor.u32 %v5394_v20, %v4861_v37  ;;  %s5581_s14 = smov 80  }
 0x24e   : > { %2819 = vmatpush.bf16.msrb.mxu0 %v4800_v3  ;;  %v8104_v3 = vld [vmem:[#allocation23_spill] sm:$0xff] }
 0x24f   : > { %2882 = vmatpush.bf16.msrb.mxu1 %v4864_v36 }
 0x250   : > { %v2467_v51 = vpop.f32.mrf.mxu2 }
 0x251   : > { %v2468_v26 = vadd.f32 %v2467_v51, %v7068_v4  ;;  %v8099_v4 = vld [vmem:[#allocation13_spill] sm:$0xff]  ;;  %v5376_v51 = vld [vmem:[%s5682_s30 + $0x194] sm:$0xf] }
 0x252   : > { %v2571_v8 = vpop.f32.mrf.mxu0 }
 0x253   : > { %v2540_v55 = vpop.f32.mrf.mxu3  ;;  %v2572_v45 = vadd.f32 %v2571_v8, %v6927_v9  ;;  %v2640_v59 = vpop.f32.mrf.mxu1 }
 0x254   : > { %v7183_v53 = vadd.f32 %v2540_v55, %v2468_v26  ;;  %v4853_v26 = vld [vmem:[%s5682_s30 + $0x218] sm:$0xf0]  ;;  %v4583_v55 = vld [vmem:[%s7888_s2 + $0x338] sm:$0xf]  ;;  %v4781_v59 = vld [vmem:[%s5682_s30 + $0x188] sm:$0xf0] }
 0x255   : > { %5115 = vmatmul.msk.bf16.gmra.mxu0 %vm1928_vm0, %v7181_v32  ;;  %2716 = vmatmul.bf16.gmra.mxu2 %v8099_v4  ;;  %v4856_v2 = vor.u32 %v5392_v39, %v4853_v26 }
 0x256   : > { %3209 = vrot.lane.b32.xlu1 %v2572_v45, %s7989_s19  ;;  %2673 = vmatmul.bf16.gmra.mxu1 %v8100_v41  ;;  %v5374_v45 = vld [vmem:[%s5682_s30 + $0x184] sm:$0xf]  ;;  %s5580_s19 = smov 88  }
 0x257   : > { %2883 = vmatpush.bf16.msrb.mxu1 %v4856_v2  ;;  %v4784_v41 = vor.u32 %v5374_v45, %v4781_v59  ;;  %v8107_v45 = vld [vmem:[#allocation27_spill] sm:$0xff] }
 0x258   : > { %2779 = vmatmul.bf16.gmra.mxu3 %v8101_v56  ;;  %v2470_v9 = vpop.f32.mrf.mxu2  ;;  %v4845_v56 = vld [vmem:[%s5682_s30 + $0x208] sm:$0xf0] }
 0x259   : > { %v2471_v63 = vadd.f32 %v2470_v9, %v7082_v27  ;;  %v4792_v27 = vor.u32 %v5376_v51, %v4789_v29  ;;  %v4848_v61 = vor.u32 %v5390_v62, %v4845_v56 }
 0x25a   : > { %v2573_v0 = vpop.f32.mrf.mxu0 }
 0x25b   : > { %v2543_v28 = vpop.f32.mrf.mxu3  ;;  %v2641_v19 = vpop.f32.mrf.mxu1  ;;  %v2574_v10 = vadd.f32 %v2573_v0, %v6965_v60  ;;  %v5325_v60 = vld [vmem:[%s7888_s2 + $0x358] sm:$0xf0]  ;;  %2820 = vmatpush.bf16.msrb.mxu0 %v4792_v27  ;;  %2884 = vmatpush.bf16.msrb.mxu1 %v4848_v61 }
 0x25c   : > { %v7199_v11 = vadd.f32 %v2543_v28, %v2471_v63  ;;  %v7217_v4 = vor.u32 %v5325_v60, %v4583_v55  ;;  %v8102_v28 = vld [vmem:[#allocation16_spill] sm:$0xff]  ;;  %v576_v19 = vld [vmem:[%s7888_s2 + $0x380] sm:$0xf] }
 0x25d   : > { %3214 = vrot.lane.b32.xlu2 %v2574_v10, %s7995_s20  ;;  %v1056_v39 = vunpack.c.l.b16 %v576_v19  ;;  %s5583_s20 = smov 78  }
 0x25f   : > { %2821 = vmatpush.bf16.msrb.mxu0 %v4784_v41  ;;  %v7237_v55 = vpack.c.b16 %v1056_v39, %v1056_v39 }
 0x260   : > { %v2472_v8 = vpop.f32.mrf.mxu2 }
 0x261   : > { %v2473_v25 = vadd.f32 %v2472_v8, %v7095_v18  ;;  %v8103_v18 = vld [vmem:[#allocation2_spill] sm:$0xff]  ;;  %v8105_v8 = vld [vmem:[#allocation20_spill] sm:$0xff] }
 0x262   : > { %v2576_v9 = vpop.f32.mrf.mxu0 }
 0x263   : > { %v2545_v6 = vpop.f32.mrf.mxu3  ;;  %v2577_v20 = vadd.f32 %v2576_v9, %v6979_v54  ;;  %v2643_v63 = vpop.f32.mrf.mxu1 }
 0x264   : > { %v7220_v46 = vadd.f32 %v2545_v6, %v2473_v25  ;;  %v5420_v63 = vld [vmem:[%s5682_s30 + $0x2f4] sm:$0xf] }
 0x265   : > { %5116 = vmatmul.msk.bf16.gmra.mxu0 %vm1928_vm0, %v7217_v4  ;;  %2721 = vmatmul.bf16.gmra.mxu2 %v8102_v28  ;;  %v4965_v28 = vld [vmem:[%s5682_s30 + $0x2f8] sm:$0xf0] }
 0x266   : > { %3219 = vrot.lane.b32.xlu2 %v2577_v20, %s7984_s28  ;;  %2678 = vmatmul.bf16.gmra.mxu1 %v8103_v18  ;;  %v8108_v18 = vld [vmem:[#allocation24_spill] sm:$0xff]  ;;  %s5576_s28 = smov 92  }
 0x268   : > { %2784 = vmatmul.bf16.gmra.mxu3 %v8104_v3  ;;  %v2475_v37 = vpop.f32.mrf.mxu2  ;;  %v4968_v3 = vor.u32 %v5420_v63, %v4965_v28  ;;  %v5430_v28 = vld [vmem:[%s5682_s30 + $0x344] sm:$0xf] }
 0x269   : > { %v2476_v0 = vadd.f32 %v2475_v37, %v7111_v44  ;;  %v8110_v37 = vld [vmem:[#allocation31_spill] sm:$0xff] }
 0x26a   : > { %v2578_v54 = vpop.f32.mrf.mxu0  ;;  %2940 = vmatpush.bf16.msra.mxu2 %v4968_v3 }
 0x26b   : > { %v2548_v36 = vpop.f32.mrf.mxu3  ;;  %v2579_v51 = vadd.f32 %v2578_v54, %v6997_v49  ;;  %v2644_v29 = vpop.f32.mrf.mxu1  ;;  %v8106_v49 = vld [vmem:[#allocation4_spill] sm:$0xff] }
 0x26c   : > { %v7233_v10 = vadd.f32 %v2548_v36, %v2476_v0  ;;  %v5436_v0 = vld [vmem:[%s5682_s30 + $0x374] sm:$0xf]  ;;  %v8111_v36 = vld [vmem:[#allocation30_spill] sm:$0xff]  ;;  %v4957_v29 = vld [vmem:[%s5682_s30 + $0x2e8] sm:$0xf0] }
 0x26d   : > { %3224 = vrot.lane.b32.xlu0 %v2579_v51, %s7985_s17  ;;  %v5418_v51 = vld [vmem:[%s5682_s30 + $0x2e4] sm:$0xf]  ;;  %s5577_s17 = smov 91  }
 0x270   : > { %v2477_v27 = vpop.f32.mrf.mxu2 }
 0x271   : > { %v4960_v27 = vor.u32 %v5418_v51, %v4957_v29  ;;  %v8114_v51 = vld [vmem:[#allocation35_spill] sm:$0xff]  ;;  %v4997_v29 = vld [vmem:[%s5682_s30 + $0x338] sm:$0xf0] }
 0x272   : > { %v2581_v44 = vpop.f32.mrf.mxu0 }
 0x273   : > { %v2550_v26 = vpop.f32.mrf.mxu3  ;;  %v2582_v60 = vadd.f32 %v2581_v44, %v7010_v42  ;;  %v2646_v2 = vpop.f32.mrf.mxu1  ;;  %v5434_v44 = vld [vmem:[%s5682_s30 + $0x364] sm:$0xf]  ;;  %2941 = vmatpush.bf16.msra.mxu2 %v4960_v27 }
 0x275   : > { %5117 = vmatmul.msk.bf16.gmra.mxu0 %vm1928_vm0, %v7237_v55  ;;  %2726 = vmatmul.bf16.gmra.mxu2 %v8105_v8 }
 0x276   : > { %3229 = vrot.lane.b32.xlu1 %v2582_v60, %s7986_s18  ;;  %2683 = vmatmul.bf16.gmra.mxu1 %v8106_v49  ;;  %v5021_v60 = vld [vmem:[%s5682_s30 + $0x368] sm:$0xf0]  ;;  %s5578_s18 = smov 90  }
 0x277   : > { %v5024_v49 = vor.u32 %v5434_v44, %v5021_v60  ;;  %v5410_v44 = vld [vmem:[%s5682_s30 + $0x2a4] sm:$0xf]  ;;  %v4925_v60 = vld [vmem:[%s5682_s30 + $0x2a8] sm:$0xf0] }
 0x278   : > { %2789 = vmatmul.bf16.gmra.mxu3 %v8107_v45  ;;  %v2697_v59 = vpop.f32.mrf.mxu2  ;;  %v5416_v45 = vld [vmem:[%s5682_s30 + $0x2d4] sm:$0xf] }
 0x279   : > { %v4949_v59 = vld [vmem:[%s5682_s30 + $0x2d8] sm:$0xf0] }
 0x27a   : > { %v2583_v25 = vpop.f32.mrf.mxu0 }
 0x27b   : > { %v2760_v62 = vpop.f32.mrf.mxu3  ;;  %v2584_v42 = vadd.f32 %v2583_v25, %v7026_v43  ;;  %v2647_v6 = vpop.f32.mrf.mxu1  ;;  %v8109_v43 = vld [vmem:[#allocation6_spill] sm:$0xff]  ;;  %v5432_v25 = vld [vmem:[%s5682_s30 + $0x354] sm:$0xf] }
 0x27c   : > { %v4952_v62 = vor.u32 %v5416_v45, %v4949_v59  ;;  %v5426_v59 = vld [vmem:[%s5682_s30 + $0x324] sm:$0xf] }
 0x27d   : > { %3234 = vrot.lane.b32.xlu2 %v2584_v42, %s7987_s21  ;;  %v5013_v42 = vld [vmem:[%s5682_s30 + $0x358] sm:$0xf0]  ;;  %s5579_s21 = smov 89  }
 0x27e   : > { %2942 = vmatpush.bf16.msra.mxu2 %v4952_v62  ;;  %v4989_v62 = vld [vmem:[%s5682_s30 + $0x328] sm:$0xf0] }
 0x280   : > { %v2698_v41 = vpop.f32.mrf.mxu2 }
 0x281   : > { %v5414_v41 = vld [vmem:[%s5682_s30 + $0x2c4] sm:$0xf] }
 0x282   : > { %v2586_v9 = vpop.f32.mrf.mxu0 }
 0x283   : > { %v2761_v56 = vpop.f32.mrf.mxu3  ;;  %v2587_v61 = vadd.f32 %v2586_v9, %v7037_v1  ;;  %v7249_v20 = vpop.f32.mrf.mxu1  ;;  %v5029_v1 = vld [vmem:[%s5682_s30 + $0x378] sm:$0xf0] }
 0x284   : > { %v5032_v54 = vor.u32 %v5436_v0, %v5029_v1  ;;  %v4941_v56 = vld [vmem:[%s5682_s30 + $0x2c8] sm:$0xf0]  ;;  %v5412_v0 = vld [vmem:[%s5682_s30 + $0x2b4] sm:$0xf]  ;;  %v4933_v1 = vld [vmem:[%s5682_s30 + $0x2b8] sm:$0xf0] }
 0x285   : > { %2731 = vmatmul.bf16.gmra.mxu2 %v8108_v18  ;;  %2822 = vmatmul.bf16.vlgmr.msrb.gmra.mxu0 %v8109_v43  ;;  %v5005_v18 = vld [vmem:[%s5682_s30 + $0x348] sm:$0xf0] }
 0x286   : > { %3240 = vrot.lane.b32.xlu0 %v2587_v61, %s5571_s23  ;;  %2885 = vmatmul.bf16.vlgmr.msrb.gmra.mxu1 %v8110_v37  ;;  %v4944_v61 = vor.u32 %v5414_v41, %v4941_v56  ;;  %v5008_v37 = vor.u32 %v5430_v28, %v5005_v18  ;;  %v4917_v41 = vld [vmem:[%s5682_s30 + $0x298] sm:$0xf0]  ;;  %v5406_v28 = vld [vmem:[%s5682_s30 + $0x284] sm:$0xf]  ;;  %v4909_v18 = vld [vmem:[%s5682_s30 + $0x288] sm:$0xf0] }
 0x287   : > { %3003 = vmatpush.bf16.msra.mxu3 %v5032_v54  ;;  %v8113_v54 = vld [vmem:[#allocation7_spill] sm:$0xff] }
 0x288   : > { %2794 = vmatmul.bf16.gmra.mxu3 %v8111_v36  ;;  %v2700_v19 = vpop.f32.mrf.mxu2  ;;  %2943 = vmatpush.bf16.msra.mxu2 %v4944_v61  ;;  %v8112_v36 = vld [vmem:[#allocation28_spill] sm:$0xff]  ;;  %v4981_v61 = vld [vmem:[%s5682_s30 + $0x318] sm:$0xf0] }
 0x289   : > { %v4936_v19 = vor.u32 %v5412_v0, %v4933_v1  ;;  %v5422_v1 = vld [vmem:[%s5682_s30 + $0x304] sm:$0xf] }
 0x28a   : > { %v2588_v26 = vpop.f32.mrf.mxu0 }
 0x28b   : > { %v2763_v39 = vpop.f32.mrf.mxu3  ;;  %v2589_v2 = vadd.f32 %v2588_v26, %v7051_v5  ;;  %v7265_v8 = vpop.f32.mrf.mxu1  ;;  %3004 = vmatpush.bf16.msra.mxu3 %v5024_v49  ;;  %v5016_v5 = vor.u32 %v5432_v25, %v5013_v42  ;;  %v4928_v49 = vor.u32 %v5410_v44, %v4925_v60 }
 0x28c   : > { %v8115_v39 = vld [vmem:[#allocation34_spill] sm:$0xff]  ;;  %2944 = vmatpush.bf16.msra.mxu2 %v4936_v19 }
 0x28d   : > { %3250 = vrot.lane.b32.xlu2 %v2589_v2, %s5572_s24 }
 0x28f   : > { %3005 = vmatpush.bf16.msra.mxu3 %v5016_v5  ;;  %v4992_v5 = vor.u32 %v5426_v59, %v4989_v62 }
 0x290   : > { %v2701_v6 = vpop.f32.mrf.mxu2  ;;  %2945 = vmatpush.bf16.msra.mxu2 %v4928_v49 }
 0x291   : > { %v5408_v6 = vld [vmem:[%s5682_s30 + $0x294] sm:$0xf] }
 0x292   : > { %v2591_v63 = vpop.f32.mrf.mxu0  ;;  %v4920_v56 = vor.u32 %v5408_v6, %v4917_v41  ;;  %v8121_v6 = vld [vmem:[#allocation11_spill] sm:$0xff]  ;;  %v8123_v41 = vld [vmem:[#allocation42_spill] sm:$0xff] }
 0x293   : > { %v2764_v9 = vpop.f32.mrf.mxu3  ;;  %v2592_v43 = vadd.f32 %v2591_v63, %v7066_v31  ;;  %v7277_v3 = vpop.f32.mrf.mxu1  ;;  %v5428_v31 = vld [vmem:[%s5682_s30 + $0x334] sm:$0xf]  ;;  %3006 = vmatpush.bf16.msra.mxu3 %v5008_v37  ;;  %v4912_v37 = vor.u32 %v5406_v28, %v4909_v18 }
 0x294   : > { %v5000_v26 = vor.u32 %v5428_v31, %v4997_v29  ;;  %v5424_v9 = vld [vmem:[%s5682_s30 + $0x314] sm:$0xf]  ;;  %2946 = vmatpush.bf16.msra.mxu2 %v4920_v56  ;;  %v8116_v31 = vld [vmem:[#allocation3_spill] sm:$0xff]  ;;  %v8117_v29 = vld [vmem:[#allocation9_spill] sm:$0xff] }
 0x295   : > { %2736 = vmatmul.bf16.gmra.mxu2 %v8112_v36  ;;  %2825 = vmatmul.bf16.gmra.mxu0 %v8113_v54  ;;  %v4973_v36 = vld [vmem:[%s5682_s30 + $0x308] sm:$0xf0] }
 0x296   : > { %3260 = vrot.lane.b32.xlu1 %v2592_v43, %s5573_s27  ;;  %2888 = vmatmul.bf16.gmra.mxu1 %v8114_v51  ;;  %v4976_v51 = vor.u32 %v5422_v1, %v4973_v36 }
 0x297   : > { %3007 = vmatpush.bf16.msra.mxu3 %v5000_v26 }
 0x298   : > { %2799 = vmatmul.bf16.gmra.mxu3 %v8115_v39  ;;  %v2703_v27 = vpop.f32.mrf.mxu2  ;;  %2947 = vmatpush.bf16.msra.mxu2 %v4912_v37  ;;  %v8118_v39 = vld [vmem:[#allocation39_spill] sm:$0xff] }
 0x299   : > { %v8119_v27 = vld [vmem:[#allocation38_spill] sm:$0xff]  ;;  %v5101_v37 = vld [vmem:[%s5682_s30 + $0x408] sm:$0xf0] }
 0x29a   : > { %v2593_v45 = vpop.f32.mrf.mxu0 }
 0x29b   : > { %v2766_v2 = vpop.f32.mrf.mxu3  ;;  %v2594_v25 = vadd.f32 %v2593_v45, %v7080_v24  ;;  %v7293_v42 = vpop.f32.mrf.mxu1  ;;  %3008 = vmatpush.bf16.msra.mxu3 %v4992_v5  ;;  %v4984_v24 = vor.u32 %v5424_v9, %v4981_v61  ;;  %v8120_v5 = vld [vmem:[#allocation5_spill] sm:$0xff]  ;;  %v5452_v61 = vld [vmem:[%s5682_s30 + $0x3f4] sm:$0xf] }
 0x29d   : > { %3270 = vrot.lane.b32.xlu0 %v2594_v25, %s5574_s15 }
 0x29f   : > { %3009 = vmatpush.bf16.msra.mxu3 %v4984_v24 }
 0x2a0   : > { %v2704_v63 = vpop.f32.mrf.mxu2 }
 0x2a1   : > { %v5093_v63 = vld [vmem:[%s5682_s30 + $0x3f8] sm:$0xf0] }
 0x2a2   : > { %v2596_v0 = vpop.f32.mrf.mxu0  ;;  %v5096_v24 = vor.u32 %v5452_v61, %v5093_v63  ;;  %v8128_v61 = vld [vmem:[#allocation17_spill] sm:$0xff]  ;;  %v8129_v63 = vld [vmem:[#allocation36_spill] sm:$0xff] }
 0x2a3   : > { %v2767_v43 = vpop.f32.mrf.mxu3  ;;  %v2597_v54 = vadd.f32 %v2596_v0, %v7091_v30  ;;  %v7305_v19 = vpop.f32.mrf.mxu1  ;;  %3010 = vmatpush.bf16.msra.mxu3 %v4976_v51 }
 0x2a4   : > { %v5454_v43 = vld [vmem:[%s5682_s30 + $0x404] sm:$0xf]  ;;  %3066 = vmatpush.bf16.msra.mxu0 %v5096_v24 }
 0x2a5   : > { %2741 = vmatmul.bf16.gmra.mxu2 %v8116_v31  ;;  %2828 = vmatmul.bf16.gmra.mxu0 %v8117_v29  ;;  %v5104_v0 = vor.u32 %v5454_v43, %v5101_v37  ;;  %v8124_v29 = vld [vmem:[#allocation14_spill] sm:$0xff] }
 0x2a6   : > { %3280 = vrot.lane.b32.xlu2 %v2597_v54, %s5575_s16  ;;  %2891 = vmatmul.bf16.gmra.mxu1 %v8118_v39  ;;  %v8126_v39 = vld [vmem:[#allocation46_spill] sm:$0xff] }
 0x2a7   : > { %3136 = vmatpush.bf16.msra.mxu1 %v5104_v0 }
 0x2a8   : > { %2804 = vmatmul.bf16.gmra.mxu3 %v8119_v27  ;;  %v2706_v26 = vpop.f32.mrf.mxu2  ;;  %v8127_v27 = vld [vmem:[#allocation47_spill] sm:$0xff] }
 0x2aa   : > { %v2598_v30 = vpop.f32.mrf.mxu0 }
 0x2ab   : > { %v2769_v44 = vpop.f32.mrf.mxu3  ;;  %v2599_v60 = vadd.f32 %v2598_v30, %v7109_v33  ;;  %v7313_v2 = vpop.f32.mrf.mxu1  ;;  %v8122_v33 = vld [vmem:[#allocation43_spill] sm:$0xff] }
 0x2ad   : > { %3290 = vrot.lane.b32.xlu1 %v2599_v60, %s5576_s28 }
 0x2b0   : > { %v2707_v49 = vpop.f32.mrf.mxu2 }
 0x2b2   : > { %v2601_v59 = vpop.f32.mrf.mxu0 }
 0x2b3   : > { %v2770_v45 = vpop.f32.mrf.mxu3  ;;  %v2602_v62 = vadd.f32 %v2601_v59, %v7119_v38  ;;  %v7317_v25 = vpop.f32.mrf.mxu1 }
 0x2b5   : > { %2746 = vmatmul.bf16.gmra.mxu2 %v8120_v5  ;;  %2831 = vmatmul.bf16.gmra.mxu0 %v8121_v6 }
 0x2b6   : > { %3300 = vrot.lane.b32.xlu0 %v2602_v62, %s5577_s17  ;;  %2894 = vmatmul.bf16.gmra.mxu1 %v8122_v33 }
 0x2b8   : > { %2809 = vmatmul.bf16.gmra.mxu3 %v8123_v41  ;;  %v2709_v56 = vpop.f32.mrf.mxu2 }
 0x2b9   : > { %v5450_v56 = vld [vmem:[%s5682_s30 + $0x3e4] sm:$0xf] }
 0x2ba   : > { %v2603_v38 = vpop.f32.mrf.mxu0 }
 0x2bb   : > { %v2772_v9 = vpop.f32.mrf.mxu3  ;;  %v2604_v28 = vadd.f32 %v2603_v38, %v7130_v58  ;;  %v7327_v18 = vpop.f32.mrf.mxu1  ;;  %v8125_v58 = vld [vmem:[#allocation32_spill] sm:$0xff]  ;;  %v8130_v38 = vld [vmem:[#allocation50_spill] sm:$0xff] }
 0x2bd   : > { %3310 = vrot.lane.b32.xlu2 %v2604_v28, %s5578_s18 }
 0x2c0   : > { %v2710_v1 = vpop.f32.mrf.mxu2 }
 0x2c2   : > { %v2606_v54 = vpop.f32.mrf.mxu0 }
 0x2c3   : > { %v2773_v36 = vpop.f32.mrf.mxu3  ;;  %v2607_v51 = vadd.f32 %v2606_v54, %v7145_v47  ;;  %v7333_v31 = vpop.f32.mrf.mxu1 }
 0x2c5   : > { %2834 = vmatmul.bf16.gmra.mxu0 %v8124_v29  ;;  %2948 = vmatmul.bf16.vlgmr.msra.gmra.mxu2 %v8125_v58 }
 0x2c6   : > { %3320 = vrot.lane.b32.xlu1 %v2607_v51, %s5579_s21  ;;  %2897 = vmatmul.bf16.gmra.mxu1 %v8126_v39 }
 0x2c8   : > { %3011 = vmatmul.bf16.vlgmr.msra.gmra.mxu3 %v8127_v27  ;;  %v2712_v26 = vpop.f32.mrf.mxu2  ;;  %v8133_v27 = vld [vmem:[#allocation40_spill] sm:$0xff] }
 0x2c9   : > { %v2713_v44 = vadd.f32 %v2712_v26, %v7249_v20  ;;  %v8134_v26 = vld [vmem:[#allocation54_spill] sm:$0xff] }
 0x2ca   : > { %v2608_v30 = vpop.f32.mrf.mxu0 }
 0x2cb   : > { %v2775_v47 = vpop.f32.mrf.mxu3  ;;  %v2609_v60 = vadd.f32 %v2608_v30, %v7158_v50  ;;  %v7342_v49 = vpop.f32.mrf.mxu1  ;;  %v5085_v50 = vld [vmem:[%s5682_s30 + $0x3e8] sm:$0xf0] }
 0x2cc   : > { %v7344_v45 = vadd.f32 %v2775_v47, %v2713_v44  ;;  %v5088_v9 = vor.u32 %v5450_v56, %v5085_v50 }
 0x2cd   : > { %3330 = vrot.lane.b32.xlu0 %v2609_v60, %s5580_s19 }
 0x2ce   : > { %3067 = vmatpush.bf16.msra.mxu0 %v5088_v9 }
 0x2d0   : > { %v2714_v59 = vpop.f32.mrf.mxu2 }
 0x2d1   : > { %v2715_v62 = vadd.f32 %v2714_v59, %v7265_v8  ;;  %v8131_v8 = vld [vmem:[#allocation51_spill] sm:$0xff] }
 0x2d2   : > { %v2611_v5 = vpop.f32.mrf.mxu0 }
 0x2d3   : > { %v2777_v6 = vpop.f32.mrf.mxu3  ;;  %v2612_v33 = vadd.f32 %v2611_v5, %v7168_v14  ;;  %v7349_v20 = vpop.f32.mrf.mxu1  ;;  %v5448_v5 = vld [vmem:[%s5682_s30 + $0x3d4] sm:$0xf] }
 0x2d4   : > { %v7351_v41 = vadd.f32 %v2777_v6, %v2715_v62  ;;  %v5077_v6 = vld [vmem:[%s5682_s30 + $0x3d8] sm:$0xf0] }
 0x2d5   : > { %2837 = vmatmul.bf16.gmra.mxu0 %v8128_v61  ;;  %2951 = vmatmul.bf16.gmra.mxu2 %v8129_v63 }
 0x2d6   : > { %3340 = vrot.lane.b32.xlu2 %v2612_v33, %s5581_s14  ;;  %2900 = vmatmul.bf16.gmra.mxu1 %v8130_v38  ;;  %v5080_v33 = vor.u32 %v5448_v5, %v5077_v6  ;;  %v8136_v38 = vld [vmem:[#allocation25_spill] sm:$0xff] }
 0x2d8   : > { %3014 = vmatmul.bf16.gmra.mxu3 %v8131_v8  ;;  %v2717_v14 = vpop.f32.mrf.mxu2  ;;  %3068 = vmatpush.bf16.msra.mxu0 %v5080_v33  ;;  %v8137_v8 = vld [vmem:[#allocation44_spill] sm:$0xff] }
 0x2d9   : > { %v2718_v24 = vadd.f32 %v2717_v14, %v7277_v3  ;;  %v8138_v14 = vld [vmem:[#allocation58_spill] sm:$0xff] }
 0x2da   : > { %v2613_v28 = vpop.f32.mrf.mxu0 }
 0x2db   : > { %v2780_v43 = vpop.f32.mrf.mxu3  ;;  %v2614_v37 = vadd.f32 %v2613_v28, %v7183_v53  ;;  %v7362_v0 = vpop.f32.mrf.mxu1  ;;  %v8132_v53 = vld [vmem:[#allocation21_spill] sm:$0xff] }
 0x2dc   : > { %v7364_v1 = vadd.f32 %v2780_v43, %v2718_v24  ;;  %v8139_v24 = vld [vmem:[#allocation59_spill] sm:$0xff] }
 0x2dd   : > { %3350 = vrot.lane.b32.xlu1 %v2614_v37, %s5582_s29 }
 0x2e0   : > { %v2719_v36 = vpop.f32.mrf.mxu2 }
 0x2e1   : > { %v2720_v54 = vadd.f32 %v2719_v36, %v7293_v42  ;;  %v8135_v42 = vld [vmem:[#allocation55_spill] sm:$0xff] }
 0x2e2   : > { %v2616_v51 = vpop.f32.mrf.mxu0 }
 0x2e3   : > { %v2782_v29 = vpop.f32.mrf.mxu3  ;;  %v2617_v58 = vadd.f32 %v2616_v51, %v7199_v11  ;;  %v7369_v3 = vpop.f32.mrf.mxu1 }
 0x2e4   : > { %v7371_v39 = vadd.f32 %v2782_v29, %v2720_v54 }
 0x2e5   : > { %2842 = vmatmul.bf16.gmra.mxu0 %v8132_v53  ;;  %2954 = vmatmul.bf16.gmra.mxu2 %v8133_v27 }
 0x2e6   : > { %3360 = vrot.lane.b32.xlu0 %v2617_v58, %s5583_s20  ;;  %2905 = vmatmul.bf16.gmra.mxu1 %v8134_v26  ;;  %v8140_v26 = vld [vmem:[#allocation29_spill] sm:$0xff] }
 0x2e8   : > { %3017 = vmatmul.bf16.gmra.mxu3 %v8135_v42  ;;  %v2722_v44 = vpop.f32.mrf.mxu2  ;;  %v8141_v42 = vld [vmem:[#allocation48_spill] sm:$0xff] }
 0x2e9   : > { %v2723_v11 = vadd.f32 %v2722_v44, %v7305_v19  ;;  %v8142_v44 = vld [vmem:[#allocation62_spill] sm:$0xff] }
 0x2ea   : > { %v2618_v30 = vpop.f32.mrf.mxu0 }
 0x2eb   : > { %v2785_v47 = vpop.f32.mrf.mxu3  ;;  %v2619_v60 = vadd.f32 %v2618_v30, %v7220_v46  ;;  %v7380_v59 = vpop.f32.mrf.mxu1  ;;  %v5069_v30 = vld [vmem:[%s5682_s30 + $0x3c8] sm:$0xf0] }
 0x2ec   : > { %v7382_v62 = vadd.f32 %v2785_v47, %v2723_v11  ;;  %v5446_v11 = vld [vmem:[%s5682_s30 + $0x3c4] sm:$0xf] }
 0x2ed   : > { %3370 = vrot.lane.b32.xlu2 %v2619_v60, %s5584_s22  ;;  %v5072_v60 = vor.u32 %v5446_v11, %v5069_v30 }
 0x2ef   : > { %3069 = vmatpush.bf16.msra.mxu0 %v5072_v60  ;;  %v8150_v60 = vld [vmem:[#allocation70_spill] sm:$0xff] }
 0x2f0   : > { %v2724_v56 = vpop.f32.mrf.mxu2 }
 0x2f1   : > { %v2725_v50 = vadd.f32 %v2724_v56, %v7313_v2 }
 0x2f2   : > { %v2621_v9 = vpop.f32.mrf.mxu0 }
 0x2f3   : > { %v2787_v19 = vpop.f32.mrf.mxu3  ;;  %v7389_v61 = vadd.f32 %v2621_v9, %v7233_v10  ;;  %v7391_v46 = vpop.f32.mrf.mxu1 }
 0x2f4   : > { %v7393_v63 = vadd.f32 %v2787_v19, %v2725_v50 }
 0x2f5   : > { %2847 = vmatmul.bf16.gmra.mxu0 %v8136_v38  ;;  %2957 = vmatmul.bf16.gmra.mxu2 %v8137_v8 }
 0x2f6   : > { %2910 = vmatmul.bf16.gmra.mxu1 %v8138_v14 }
 0x2f8   : > { %3020 = vmatmul.bf16.gmra.mxu3 %v8139_v24  ;;  %v2727_v28 = vpop.f32.mrf.mxu2  ;;  %v8144_v24 = vld [vmem:[#allocation33_spill] sm:$0xff] }
 0x2f9   : > { %v2728_v2 = vadd.f32 %v2727_v28, %v7317_v25  ;;  %v8143_v25 = vld [vmem:[#allocation63_spill] sm:$0xff]  ;;  %v8145_v28 = vld [vmem:[#allocation52_spill] sm:$0xff] }
 0x2fa   : > { %v2623_v43 = vpop.f32.mrf.mxu0 }
 0x2fb   : > { %v2790_v10 = vpop.f32.mrf.mxu3  ;;  %v2686_v37 = vpop.f32.mrf.mxu1 }
 0x2fc   : > { %v7400_v36 = vadd.f32 %v2790_v10, %v2728_v2  ;;  %v8147_v2 = vld [vmem:[#allocation67_spill] sm:$0xff] }
 0x300   : > { %v2729_v54 = vpop.f32.mrf.mxu2 }
 0x301   : > { %v2730_v51 = vadd.f32 %v2729_v54, %v7327_v18 }
 0x302   : > { %v2823_v58 = vpop.f32.mrf.mxu0 }
 0x303   : > { %v2792_v29 = vpop.f32.mrf.mxu3  ;;  %v2886_v27 = vpop.f32.mrf.mxu1  ;;  %v5444_v58 = vld [vmem:[%s5682_s30 + $0x3b4] sm:$0xf] }
 0x304   : > { %v7403_v53 = vadd.f32 %v2792_v29, %v2730_v51  ;;  %v5061_v27 = vld [vmem:[%s5682_s30 + $0x3b8] sm:$0xf0] }
 0x305   : > { %2852 = vmatmul.bf16.gmra.mxu0 %v8140_v26  ;;  %2960 = vmatmul.bf16.gmra.mxu2 %v8141_v42  ;;  %v5064_v42 = vor.u32 %v5444_v58, %v5061_v27  ;;  %v8152_v27 = vld [vmem:[#allocation41_spill] sm:$0xff] }
 0x306   : > { %2915 = vmatmul.bf16.gmra.mxu1 %v8142_v44 }
 0x307   : > { %3070 = vmatpush.bf16.msra.mxu0 %v5064_v42 }
 0x308   : > { %3023 = vmatmul.bf16.gmra.mxu3 %v8143_v25  ;;  %v2732_v47 = vpop.f32.mrf.mxu2 }
 0x309   : > { %v2733_v5 = vadd.f32 %v2732_v47, %v7333_v31  ;;  %v8146_v31 = vld [vmem:[#allocation66_spill] sm:$0xff]  ;;  %v8149_v47 = vld [vmem:[#allocation56_spill] sm:$0xff] }
 0x30a   : > { %v2824_v6 = vpop.f32.mrf.mxu0 }
 0x30b   : > { %v2795_v18 = vpop.f32.mrf.mxu3  ;;  %v2887_v56 = vpop.f32.mrf.mxu1  ;;  %v5053_v6 = vld [vmem:[%s5682_s30 + $0x3a8] sm:$0xf0] }
 0x30c   : > { %v7412_v33 = vadd.f32 %v2795_v18, %v2733_v5  ;;  %v8151_v5 = vld [vmem:[#allocation71_spill] sm:$0xff] }
 0x310   : > { %v2734_v50 = vpop.f32.mrf.mxu2 }
 0x311   : > { %v2735_v9 = vadd.f32 %v2734_v50, %v7342_v49 }
 0x312   : > { %v2826_v38 = vpop.f32.mrf.mxu0 }
 0x313   : > { %v2797_v19 = vpop.f32.mrf.mxu3  ;;  %v2889_v14 = vpop.f32.mrf.mxu1 }
 0x314   : > { %v7415_v8 = vadd.f32 %v2797_v19, %v2735_v9 }
 0x315   : > { %2857 = vmatmul.bf16.gmra.mxu0 %v8144_v24  ;;  %2963 = vmatmul.bf16.gmra.mxu2 %v8145_v28  ;;  %v5440_v24 = vld [vmem:[%s5682_s30 + $0x394] sm:$0xf]  ;;  %v5045_v28 = vld [vmem:[%s5682_s30 + $0x398] sm:$0xf0] }
 0x316   : > { %2920 = vmatmul.bf16.gmra.mxu1 %v8146_v31  ;;  %v5048_v31 = vor.u32 %v5440_v24, %v5045_v28 }
 0x318   : > { %3026 = vmatmul.bf16.gmra.mxu3 %v8147_v2  ;;  %v2737_v43 = vpop.f32.mrf.mxu2 }
 0x319   : > { %v2738_v10 = vadd.f32 %v2737_v43, %v7349_v20  ;;  %v8148_v20 = vld [vmem:[#allocation37_spill] sm:$0xff]  ;;  %v5438_v43 = vld [vmem:[%s5682_s30 + $0x384] sm:$0xf] }
 0x31a   : > { %v2827_v49 = vpop.f32.mrf.mxu0 }
 0x31b   : > { %v2800_v37 = vpop.f32.mrf.mxu3  ;;  %v2890_v51 = vpop.f32.mrf.mxu1 }
 0x31c   : > { %v7422_v54 = vadd.f32 %v2800_v37, %v2738_v10  ;;  %v5037_v10 = vld [vmem:[%s5682_s30 + $0x388] sm:$0xf0] }
 0x31d   : > { %v5040_v49 = vor.u32 %v5438_v43, %v5037_v10  ;;  %v8158_v43 = vld [vmem:[#allocation68_spill] sm:$0xff]  ;;  %v8159_v10 = vld [vmem:[#allocation49_spill] sm:$0xff] }
 0x320   : > { %v2739_v29 = vpop.f32.mrf.mxu2 }
 0x321   : > { %v2740_v26 = vadd.f32 %v2739_v29, %v7362_v0  ;;  %v5442_v0 = vld [vmem:[%s5682_s30 + $0x3a4] sm:$0xf]  ;;  %s5586_s30 = smov 76  }
 0x322   : > { %v2829_v25 = vpop.f32.mrf.mxu0  ;;  %v5056_v50 = vor.u32 %v5442_v0, %v5053_v6  ;;  %v8154_v0 = vld [vmem:[#allocation45_spill] sm:$0xff]  ;;  %v8155_v6 = vld [vmem:[#allocation64_spill] sm:$0xff] }
 0x323   : > { %v2802_v44 = vpop.f32.mrf.mxu3  ;;  %v2892_v30 = vpop.f32.mrf.mxu1 }
 0x324   : > { %v7427_v11 = vadd.f32 %v2802_v44, %v2740_v26  ;;  %3071 = vmatpush.bf16.msra.mxu0 %v5056_v50  ;;  %v8153_v26 = vld [vmem:[#allocation60_spill] sm:$0xff] }
 0x325   : > { %2862 = vmatmul.bf16.gmra.mxu0 %v8148_v20  ;;  %2968 = vmatmul.bf16.gmra.mxu2 %v8149_v47 }
 0x326   : > { %2925 = vmatmul.bf16.gmra.mxu1 %v8150_v60 }
 0x328   : > { %3031 = vmatmul.bf16.gmra.mxu3 %v8151_v5  ;;  %v2742_v18 = vpop.f32.mrf.mxu2  ;;  %3072 = vmatpush.bf16.msra.mxu0 %v5048_v31 }
 0x329   : > { %v2743_v56 = vadd.f32 %v2742_v18, %v7369_v3 }
 0x32a   : > { %v2830_v19 = vpop.f32.mrf.mxu0 }
 0x32b   : > { %v2805_v9 = vpop.f32.mrf.mxu3  ;;  %v2893_v14 = vpop.f32.mrf.mxu1 }
 0x32c   : > { %v7436_v38 = vadd.f32 %v2805_v9, %v2743_v56  ;;  %3073 = vmatpush.bf16.msra.mxu0 %v5040_v49  ;;  %v8156_v56 = vld [vmem:[#allocation76_spill] sm:$0xff] }
 0x32d   : > { %v8161_v49 = vld [vmem:[#allocation80_spill] sm:$0xff] }
 0x330   : > { %v2744_v2 = vpop.f32.mrf.mxu2 }
 0x331   : > { %v2745_v37 = vadd.f32 %v2744_v2, %v7380_v59 }
 0x332   : > { %v2832_v29 = vpop.f32.mrf.mxu0 }
 0x333   : > { %v2807_v51 = vpop.f32.mrf.mxu3  ;;  %v2895_v58 = vpop.f32.mrf.mxu1 }
 0x334   : > { %v7443_v3 = vadd.f32 %v2807_v51, %v2745_v37  ;;  %v8160_v37 = vld [vmem:[#allocation81_spill] sm:$0xff] }
 0x335   : > { %2867 = vmatmul.bf16.gmra.mxu0 %v8152_v27  ;;  %2973 = vmatmul.bf16.gmra.mxu2 %v8153_v26 }
 0x336   : > { %2930 = vmatmul.bf16.gmra.mxu1 %v6766_v35  ;;  %v8157_v35 = vld [vmem:[#allocation77_spill] sm:$0xff] }
 0x338   : > { %3036 = vmatmul.bf16.gmra.mxu3 %v6768_v12  ;;  %v2747_v42 = vpop.f32.mrf.mxu2 }
 0x339   : > { %v2748_v44 = vadd.f32 %v2747_v42, %v7391_v46 }
 0x33a   : > { %v2833_v59 = vpop.f32.mrf.mxu0 }
 0x33b   : > { %v2810_v25 = vpop.f32.mrf.mxu3  ;;  %v2896_v20 = vpop.f32.mrf.mxu1 }
 0x33c   : > { %v7450_v30 = vadd.f32 %v2810_v25, %v2748_v44 }
 0x340   : > { %v2749_v47 = vpop.f32.mrf.mxu2 }
 0x342   : > { %v2835_v5 = vpop.f32.mrf.mxu0 }
 0x343   : > { %v2812_v60 = vpop.f32.mrf.mxu3  ;;  %v2898_v18 = vpop.f32.mrf.mxu1  ;;  %v8163_v5 = vld [vmem:[#allocation53_spill] sm:$0xff] }
 0x344   : > { %v8162_v60 = vld [vmem:[#allocation72_spill] sm:$0xff] }
 0x345   : > { %2872 = vmatmul.bf16.gmra.mxu0 %v8154_v0  ;;  %2978 = vmatmul.bf16.gmra.mxu2 %v8155_v6  ;;  %v8164_v18 = vld [vmem:[#allocation84_spill] sm:$0xff]  ;;  %v8165_v0 = vld [vmem:[#allocation83_spill] sm:$0xff] }
 0x346   : > { %2935 = vmatmul.bf16.gmra.mxu1 %v8156_v56 }
 0x348   : > { %3041 = vmatmul.bf16.gmra.mxu3 %v8157_v35  ;;  %v2949_v12 = vpop.f32.mrf.mxu2 }
 0x34a   : > { %v2836_v50 = vpop.f32.mrf.mxu0 }
 0x34b   : > { %v3012_v46 = vpop.f32.mrf.mxu3  ;;  %v2899_v9 = vpop.f32.mrf.mxu1 }
 0x350   : > { %v2950_v19 = vpop.f32.mrf.mxu2 }
 0x352   : > { %v2838_v14 = vpop.f32.mrf.mxu0 }
 0x353   : > { %v3013_v24 = vpop.f32.mrf.mxu3  ;;  %v2839_v28 = vadd.f32 %v2838_v14, %v7344_v45  ;;  %v2901_v31 = vpop.f32.mrf.mxu1 }
 0x355   : > { %v7457_v2 = vadd.f32 %v2901_v31, %v2839_v28  ;;  %2983 = vmatmul.bf16.gmra.mxu2 %v8158_v43  ;;  %3074 = vmatmul.bf16.vlgmr.msra.gmra.mxu0 %v8159_v10  ;;  %v8166_v28 = vld [vmem:[#allocation74_spill] sm:$0xff]  ;;  %v8167_v31 = vld [vmem:[#allocation57_spill] sm:$0xff] }
 0x356   : > { %5118 = vmatmul.msk.bf16.vlgmr.msra.gmra.mxu1 %vm1928_vm0, %v8160_v37 }
 0x358   : > { %3046 = vmatmul.bf16.gmra.mxu3 %v8161_v49  ;;  %v2952_v51 = vpop.f32.mrf.mxu2 }
 0x35a   : > { %v2840_v29 = vpop.f32.mrf.mxu0 }
 0x35b   : > { %v3015_v58 = vpop.f32.mrf.mxu3  ;;  %v2841_v27 = vadd.f32 %v2840_v29, %v7351_v41  ;;  %v2903_v26 = vpop.f32.mrf.mxu1 }
 0x35d   : > { %v7465_v42 = vadd.f32 %v2903_v26, %v2841_v27 }
 0x360   : > { %v2953_v45 = vpop.f32.mrf.mxu2 }
 0x362   : > { %v2843_v44 = vpop.f32.mrf.mxu0 }
 0x363   : > { %v3016_v25 = vpop.f32.mrf.mxu3  ;;  %v2844_v59 = vadd.f32 %v2843_v44, %v7364_v1  ;;  %v2906_v20 = vpop.f32.mrf.mxu1  ;;  %v8168_v44 = vld [vmem:[#allocation78_spill] sm:$0xff] }
 0x365   : > { %v7468_v47 = vadd.f32 %v2906_v20, %v2844_v59  ;;  %2988 = vmatmul.bf16.gmra.mxu2 %v8162_v60  ;;  %3077 = vmatmul.bf16.gmra.mxu0 %v8163_v5 }
 0x366   : > { %5119 = vmatmul.msk.bf16.gmra.mxu1 %vm1928_vm0, %v8164_v18 }
 0x368   : > { %3051 = vmatmul.bf16.gmra.mxu3 %v8165_v0  ;;  %v2955_v41 = vpop.f32.mrf.mxu2 }
 0x36a   : > { %v2845_v6 = vpop.f32.mrf.mxu0 }
 0x36b   : > { %v3018_v56 = vpop.f32.mrf.mxu3  ;;  %v2846_v35 = vadd.f32 %v2845_v6, %v7371_v39  ;;  %v2908_v12 = vpop.f32.mrf.mxu1 }
 0x36c   : > { %v8170_v56 = vld [vmem:[#allocation65_spill] sm:$0xff] }
 0x36d   : > { %v7476_v50 = vadd.f32 %v2908_v12, %v2846_v35 }
 0x370   : > { %v2956_v1 = vpop.f32.mrf.mxu2 }
 0x372   : > { %v2848_v46 = vpop.f32.mrf.mxu0 }
 0x373   : > { %v3019_v9 = vpop.f32.mrf.mxu3  ;;  %v2849_v19 = vadd.f32 %v2848_v46, %v7382_v62  ;;  %v2911_v14 = vpop.f32.mrf.mxu1 }
 0x375   : > { %v7479_v24 = vadd.f32 %v2911_v14, %v2849_v19  ;;  %2993 = vmatmul.bf16.gmra.mxu2 %v8166_v28  ;;  %3080 = vmatmul.bf16.gmra.mxu0 %v8167_v31 }
 0x376   : > { %5120 = vmatmul.msk.bf16.gmra.mxu1 %vm1928_vm0, %v6958_v23  ;;  %v8169_v23 = vld [vmem:[#allocation61_spill] sm:$0xff] }
 0x378   : > { %3056 = vmatmul.bf16.gmra.mxu3 %v6956_v21  ;;  %v2958_v39 = vpop.f32.mrf.mxu2 }
 0x379   : > { %v8171_v39 = vld [vmem:[#allocation69_spill] sm:$0xff] }
 0x37a   : > { %v2850_v43 = vpop.f32.mrf.mxu0 }
 0x37b   : > { %v3021_v10 = vpop.f32.mrf.mxu3  ;;  %v2851_v37 = vadd.f32 %v2850_v43, %v7393_v63  ;;  %v2913_v49 = vpop.f32.mrf.mxu1 }
 0x37d   : > { %v7487_v51 = vadd.f32 %v2913_v49, %v2851_v37 }
 0x380   : > { %v2959_v62 = vpop.f32.mrf.mxu2 }
 0x382   : > { %v2853_v29 = vpop.f32.mrf.mxu0 }
 0x383   : > { %v3022_v58 = vpop.f32.mrf.mxu3  ;;  %v2854_v27 = vadd.f32 %v2853_v29, %v7400_v36  ;;  %v2916_v26 = vpop.f32.mrf.mxu1 }
 0x385   : > { %v7490_v45 = vadd.f32 %v2916_v26, %v2854_v27  ;;  %2998 = vmatmul.bf16.gmra.mxu2 %v8168_v44  ;;  %3083 = vmatmul.bf16.gmra.mxu0 %v8169_v23  ;;  %v8172_v23 = vld [vmem:[#allocation73_spill] sm:$0xff] }
 0x386   : > { %5121 = vmatmul.msk.bf16.gmra.mxu1 %vm1928_vm0, %v6992_v34 }
 0x388   : > { %3061 = vmatmul.bf16.gmra.mxu3 %v6990_v13  ;;  %v2961_v21 = vpop.f32.mrf.mxu2 }
 0x38a   : > { %v2855_v63 = vpop.f32.mrf.mxu0 }
 0x38b   : > { %v3024_v25 = vpop.f32.mrf.mxu3  ;;  %v2856_v59 = vadd.f32 %v2855_v63, %v7403_v53  ;;  %v2918_v20 = vpop.f32.mrf.mxu1 }
 0x38d   : > { %v7498_v60 = vadd.f32 %v2918_v20, %v2856_v59 }
 0x390   : > { %v2962_v36 = vpop.f32.mrf.mxu2 }
 0x392   : > { %v2858_v5 = vpop.f32.mrf.mxu0 }
 0x393   : > { %v3025_v18 = vpop.f32.mrf.mxu3  ;;  %v2859_v0 = vadd.f32 %v2858_v5, %v7412_v33  ;;  %v2921_v41 = vpop.f32.mrf.mxu1 }
 0x395   : > { %v7501_v6 = vadd.f32 %v2921_v41, %v2859_v0  ;;  %3086 = vmatmul.bf16.gmra.mxu0 %v8170_v56  ;;  %v8173_v56 = vld [vmem:[#allocation75_spill] sm:$0xff] }
 0x396   : > { %5122 = vmatmul.msk.bf16.gmra.mxu1 %vm1928_vm0, %v7023_v48 }
 0x398   : > { %v2964_v13 = vpop.f32.mrf.mxu2 }
 0x399   : > { %v2965_v34 = vadd.f32 %v2964_v13, %v7457_v2 }
 0x39a   : > { %v2860_v53 = vpop.f32.mrf.mxu0 }
 0x39b   : > { %v3027_v35 = vpop.f32.mrf.mxu3  ;;  %v2861_v12 = vadd.f32 %v2860_v53, %v7415_v8  ;;  %v2923_v1 = vpop.f32.mrf.mxu1 }
 0x39c   : > { %v7508_v46 = vadd.f32 %v3027_v35, %v2965_v34 }
 0x39d   : > { %v2924_v9 = vadd.f32 %v2923_v1, %v2861_v12 }
 0x3a0   : > { %v7510_v33 = vpop.f32.mrf.mxu2 }
 0x3a2   : > { %v2863_v19 = vpop.f32.mrf.mxu0 }
 0x3a3   : > { %v7512_v14 = vpop.f32.mrf.mxu3  ;;  %v2864_v28 = vadd.f32 %v2863_v19, %v7422_v54  ;;  %v2926_v31 = vpop.f32.mrf.mxu1 }
 0x3a5   : > { %v7515_v48 = vadd.f32 %v2926_v31, %v2864_v28  ;;  %3089 = vmatmul.bf16.gmra.mxu0 %v8171_v39  ;;  %v8174_v39 = vld [vmem:[#allocation79_spill] sm:$0xff] }
 0x3a6   : > { %5123 = vmatmul.msk.bf16.gmra.mxu1 %vm1928_vm0, %v7048_v15 }
 0x3a8   : > { %v2969_v8 = vpop.f32.mrf.mxu2 }
 0x3a9   : > { %v2970_v2 = vadd.f32 %v2969_v8, %v7468_v47 }
 0x3aa   : > { %v2865_v43 = vpop.f32.mrf.mxu0 }
 0x3ab   : > { %v3032_v10 = vpop.f32.mrf.mxu3  ;;  %v2866_v37 = vadd.f32 %v2865_v43, %v7427_v11  ;;  %v2928_v49 = vpop.f32.mrf.mxu1 }
 0x3ac   : > { %v7522_v62 = vadd.f32 %v3032_v10, %v2970_v2 }
 0x3ad   : > { %v2929_v29 = vadd.f32 %v2928_v49, %v2866_v37 }
 0x3b0   : > { %v7524_v54 = vpop.f32.mrf.mxu2 }
 0x3b2   : > { %v2868_v58 = vpop.f32.mrf.mxu0 }
 0x3b3   : > { %v7526_v27 = vpop.f32.mrf.mxu3  ;;  %v2869_v26 = vadd.f32 %v2868_v58, %v7436_v38  ;;  %v2931_v44 = vpop.f32.mrf.mxu1 }
 0x3b5   : > { %v2932_v15 = vadd.f32 %v2931_v44, %v2869_v26  ;;  %3094 = vmatmul.bf16.gmra.mxu0 %v8172_v23  ;;  %v8175_v23 = vld [vmem:[#allocation82_spill] sm:$0xff] }
 0x3b6   : > { %5124 = vmatmul.msk.bf16.gmra.mxu1 %vm1928_vm0, %v7077_v52 }
 0x3b8   : > { %v2974_v47 = vpop.f32.mrf.mxu2 }
 0x3b9   : > { %v2975_v11 = vadd.f32 %v2974_v47, %v7479_v24 }
 0x3ba   : > { %v2870_v21 = vpop.f32.mrf.mxu0 }
 0x3bb   : > { %v3037_v63 = vpop.f32.mrf.mxu3  ;;  %v2871_v25 = vadd.f32 %v2870_v21, %v7443_v3  ;;  %v2933_v59 = vpop.f32.mrf.mxu1 }
 0x3bc   : > { %v7534_v20 = vadd.f32 %v3037_v63, %v2975_v11 }
 0x3bd   : > { %v2934_v36 = vadd.f32 %v2933_v59, %v2871_v25 }
 0x3c0   : > { %v7536_v5 = vpop.f32.mrf.mxu2 }
 0x3c2   : > { %v2873_v38 = vpop.f32.mrf.mxu0 }
 0x3c3   : > { %v7538_v18 = vpop.f32.mrf.mxu3  ;;  %v2874_v0 = vadd.f32 %v2873_v38, %v7450_v30  ;;  %v2936_v41 = vpop.f32.mrf.mxu1 }
 0x3c5   : > { %v2937_v52 = vadd.f32 %v2936_v41, %v2874_v0  ;;  %3099 = vmatmul.bf16.gmra.mxu0 %v8173_v56  ;;  %v8176_v56 = vld [vmem:[#allocation85_spill] sm:$0xff] }
 0x3c6   : > { %5125 = vmatmul.msk.bf16.gmra.mxu1 %vm1928_vm0, %v7106_v16 }
 0x3c8   : > { %v2979_v24 = vpop.f32.mrf.mxu2 }
 0x3c9   : > { %v2980_v3 = vadd.f32 %v2979_v24, %v7490_v45 }
 0x3ca   : > { %v2875_v13 = vpop.f32.mrf.mxu0 }
 0x3cb   : > { %v3042_v34 = vpop.f32.mrf.mxu3  ;;  %v2938_v53 = vpop.f32.mrf.mxu1 }
 0x3cc   : > { %v7545_v35 = vadd.f32 %v3042_v34, %v2980_v3 }
 0x3d0   : > { %v2981_v12 = vpop.f32.mrf.mxu2 }
 0x3d1   : > { %v2982_v1 = vadd.f32 %v2981_v12, %v7498_v60 }
 0x3d2   : > { %v3075_v30 = vpop.f32.mrf.mxu0 }
 0x3d3   : > { %v3044_v19 = vpop.f32.mrf.mxu3  ;;  %v3138_v31 = vpop.f32.mrf.mxu1 }
 0x3d4   : > { %v7548_v28 = vadd.f32 %v3044_v19, %v2982_v1 }
 0x3d5   : > { %3104 = vmatmul.bf16.gmra.mxu0 %v8174_v39 }
 0x3d6   : > { %5126 = vmatmul.msk.bf16.gmra.mxu1 %vm1928_vm0, %v7128_v22 }
 0x3d8   : > { %v2984_v16 = vpop.f32.mrf.mxu2 }
 0x3d9   : > { %v2985_v45 = vadd.f32 %v2984_v16, %v7501_v6 }
 0x3da   : > { %v3076_v2 = vpop.f32.mrf.mxu0 }
 0x3db   : > { %v3047_v8 = vpop.f32.mrf.mxu3  ;;  %v3139_v10 = vpop.f32.mrf.mxu1 }
 0x3dc   : > { %v7554_v43 = vadd.f32 %v3047_v8, %v2985_v45 }
 0x3e0   : > { %v2986_v37 = vpop.f32.mrf.mxu2 }
 0x3e1   : > { %v2987_v60 = vadd.f32 %v2986_v37, %v2924_v9 }
 0x3e2   : > { %v3078_v58 = vpop.f32.mrf.mxu0 }
 0x3e3   : > { %v3049_v49 = vpop.f32.mrf.mxu3  ;;  %v3141_v44 = vpop.f32.mrf.mxu1 }
 0x3e4   : > { %v7556_v26 = vadd.f32 %v3049_v49, %v2987_v60  ;;  %v2967_v49 = vadd.f32 %v7510_v33, %v7465_v42 }
 0x3e5   : > { %3109 = vmatmul.bf16.gmra.mxu0 %v8175_v23 }
 0x3e6   : > { %5127 = vmatmul.msk.bf16.gmra.mxu1 %vm1928_vm0, %v7156_v17  ;;  %v3030_v44 = vadd.f32 %v7512_v14, %v2967_v49 }
 0x3e8   : > { %v2989_v22 = vpop.f32.mrf.mxu2 }
 0x3e9   : > { %v2990_v6 = vadd.f32 %v2989_v22, %v7515_v48 }
 0x3ea   : > { %v3079_v11 = vpop.f32.mrf.mxu0 }
 0x3eb   : > { %v3052_v47 = vpop.f32.mrf.mxu3  ;;  %v3142_v63 = vpop.f32.mrf.mxu1 }
 0x3ec   : > { %v7562_v21 = vadd.f32 %v3052_v47, %v2990_v6 }
 0x3f0   : > { %v2991_v25 = vpop.f32.mrf.mxu2 }
 0x3f1   : > { %v2992_v9 = vadd.f32 %v2991_v25, %v2929_v29 }
 0x3f2   : > { %v3081_v38 = vpop.f32.mrf.mxu0 }
 0x3f3   : > { %v3054_v59 = vpop.f32.mrf.mxu3  ;;  %v3144_v41 = vpop.f32.mrf.mxu1 }
 0x3f4   : > { %v7564_v0 = vadd.f32 %v3054_v59, %v2992_v9 }
 0x3f5   : > { %3114 = vmatmul.bf16.gmra.mxu0 %v8176_v56 }
 0x3f6   : > { %5128 = vmatmul.msk.bf16.gmra.mxu1 %vm1928_vm0, %v7181_v32 }
 0x3f8   : > { %v2994_v17 = vpop.f32.mrf.mxu2 }
 0x3f9   : > { %v2995_v24 = vadd.f32 %v2994_v17, %v2932_v15 }
 0x3fa   : > { %v3082_v3 = vpop.f32.mrf.mxu0 }
 0x3fb   : > { %v3057_v48 = vpop.f32.mrf.mxu3  ;;  %v3145_v34 = vpop.f32.mrf.mxu1 }
 0x3fc   : > { %v7569_v13 = vadd.f32 %v3057_v48, %v2995_v24 }
 0x400   : > { %v2996_v53 = vpop.f32.mrf.mxu2 }
 0x401   : > { %v2997_v12 = vadd.f32 %v2996_v53, %v2934_v36 }
 0x402   : > { %v3084_v1 = vpop.f32.mrf.mxu0 }
 0x403   : > { %v3059_v29 = vpop.f32.mrf.mxu3  ;;  %v3147_v30 = vpop.f32.mrf.mxu1 }
 0x404   : > { %v7571_v19 = vadd.f32 %v3059_v29, %v2997_v12 }
 0x405   : > { %3119 = vmatmul.bf16.gmra.mxu0 %v6960_v7 }
 0x406   : > { %5129 = vmatmul.msk.bf16.gmra.mxu1 %vm1928_vm0, %v7217_v4 }
 0x408   : > { %v2999_v32 = vpop.f32.mrf.mxu2 }
 0x409   : > { %v3000_v31 = vadd.f32 %v2999_v32, %v2937_v52 }
 0x40a   : > { %v3085_v39 = vpop.f32.mrf.mxu0 }
 0x40b   : > { %v3062_v15 = vpop.f32.mrf.mxu3  ;;  %v3148_v45 = vpop.f32.mrf.mxu1 }
 0x40c   : > { %v7576_v16 = vadd.f32 %v3062_v15, %v3000_v31 }
 0x410   : > { %v3001_v8 = vpop.f32.mrf.mxu2 }
 0x412   : > { %v3087_v2 = vpop.f32.mrf.mxu0 }
 0x413   : > { %v3064_v36 = vpop.f32.mrf.mxu3  ;;  %v3150_v10 = vpop.f32.mrf.mxu1  ;;  %v5585_v2 = vmov 0  }
 0x414   : > { %5537 = vset.pattern.permute.xlu0 %v5585_v2  ;;  %5538 = vset.pattern.permute.xlu2 %v5585_v2 }
 0x415   : > { %3124 = vmatmul.bf16.gmra.mxu0 %v6994_v57  ;;  %5549 = vset.pattern.permute.xlu1 %v5585_v2 }
 0x416   : > { %5130 = vmatmul.msk.bf16.gmra.mxu1 %vm1928_vm0, %v7237_v55 }
 0x41a   : > { %v3088_v7 = vpop.f32.mrf.mxu0 }
 0x41b   : > { %v3151_v37 = vpop.f32.mrf.mxu1 }
 0x422   : > { %v3090_v60 = vpop.f32.mrf.mxu0 }
 0x423   : > { %v3091_v4 = vadd.f32 %v3090_v60, %v7508_v46  ;;  %v3153_v52 = vpop.f32.mrf.mxu1  ;;  %v2972_v46 = vadd.f32 %v7524_v54, %v7476_v50 }
 0x425   : > { %v3154_v58 = vadd.f32 %v3153_v52, %v3091_v4  ;;  %v3035_v42 = vadd.f32 %v7526_v27, %v2972_v46 }
 0x427   : > { %3242 = vrot.lane.b32.xlu1 %v3154_v58, %s5571_s23 }
 0x42a   : > { %v3092_v23 = vpop.f32.mrf.mxu0 }
 0x42b   : > { %v3093_v22 = vadd.f32 %v3092_v23, %v3030_v44  ;;  %v3155_v57 = vpop.f32.mrf.mxu1 }
 0x42d   : > { %v3156_v6 = vadd.f32 %v3155_v57, %v3093_v22 }
 0x42f   : > { %3252 = vrot.lane.b32.xlu0 %v3156_v6, %s5572_s24  ;;  %v3195_v6 = vpop.permute.xlu0 %3194 }
 0x432   : > { %v3095_v55 = vpop.f32.mrf.mxu0 }
 0x433   : > { %v3096_v47 = vadd.f32 %v3095_v55, %v7522_v62  ;;  %v3158_v11 = vpop.f32.mrf.mxu1  ;;  %v2977_v62 = vadd.f32 %v7536_v5, %v7487_v51  ;;  %v3205_v55 = vpop.permute.xlu1 %3204 }
 0x435   : > { %v3159_v63 = vadd.f32 %v3158_v11, %v3096_v47  ;;  %v3040_v50 = vadd.f32 %v7538_v18, %v2977_v62  ;;  %v3215_v47 = vpop.permute.xlu2 %3214  ;;  %v3197_v62 = vadd.f32 %v3195_v6, %v7133_v40 }
 0x437   : > { %3262 = vrot.lane.b32.xlu2 %v3159_v63, %s5573_s27  ;;  %v3200_v11 = vpop.permute.xlu0 %3199  ;;  %s8004_s27 = smov 121  }
 0x43a   : > { %v3097_v33 = vpop.f32.mrf.mxu0 }
 0x43b   : > { %v3098_v14 = vadd.f32 %v3097_v33, %v3035_v42  ;;  %v3160_v25 = vpop.f32.mrf.mxu1  ;;  %v3210_v46 = vpop.permute.xlu1 %3209 }
 0x43d   : > { %v3161_v9 = vadd.f32 %v3160_v25, %v3098_v14  ;;  %v3220_v63 = vpop.permute.xlu2 %3219 }
 0x43f   : > { %3272 = vrot.lane.b32.xlu1 %v3161_v9, %s5574_s15  ;;  %s5591_s15 = smov 108  }
 0x442   : > { %v3100_v59 = vpop.f32.mrf.mxu0 }
 0x443   : > { %v3101_v38 = vadd.f32 %v3100_v59, %v7534_v20  ;;  %v3163_v41 = vpop.f32.mrf.mxu1  ;;  %v3230_v42 = vpop.permute.xlu1 %3229 }
 0x445   : > { %v3164_v56 = vadd.f32 %v3163_v41, %v3101_v38  ;;  %v3235_v33 = vpop.permute.xlu2 %3234 }
 0x447   : > { %3282 = vrot.lane.b32.xlu0 %v3164_v56, %s5575_s16  ;;  %s8181_s16 = smov 124  }
 0x44a   : > { %v3102_v54 = vpop.f32.mrf.mxu0 }
 0x44b   : > { %v3103_v27 = vadd.f32 %v3102_v54, %v3040_v50  ;;  %v3165_v17 = vpop.f32.mrf.mxu1  ;;  %v3261_v14 = vpop.permute.xlu1 %3260  ;;  %v3202_v50 = vadd.f32 %v3200_v11, %v3197_v62 }
 0x44d   : > { %v3166_v24 = vadd.f32 %v3165_v17, %v3103_v27  ;;  %v3251_v25 = vpop.permute.xlu2 %3250  ;;  %v3207_v27 = vadd.f32 %v3205_v55, %v3202_v50 }
 0x44f   : > { %3292 = vrot.lane.b32.xlu2 %v3166_v24, %s5576_s28  ;;  %v3212_v24 = vadd.f32 %v3210_v46, %v3207_v27  ;;  %v5459_v27 = vld [vmem:[%s7890_s4 + $0x18] sm:$0xff]  ;;  %s8002_s28 = smov 119  }
 0x452   : > { %v3105_v48 = vpop.f32.mrf.mxu0 }
 0x453   : > { %v3106_v3 = vadd.f32 %v3105_v48, %v7545_v35  ;;  %v3168_v34 = vpop.f32.mrf.mxu1  ;;  %v3291_v59 = vpop.permute.xlu1 %3290 }
 0x455   : > { %v3169_v20 = vadd.f32 %v3168_v34, %v3106_v3  ;;  %v3281_v38 = vpop.permute.xlu2 %3280  ;;  %v3217_v3 = vadd.f32 %v3215_v47, %v3212_v24  ;;  %v5457_v24 = vld [vmem:[%s7890_s4 + $0x8] sm:$0xff] }
 0x457   : > { %3302 = vrot.lane.b32.xlu1 %v3169_v20, %s5577_s17  ;;  %s8001_s17 = smov 118  }
 0x45a   : > { %v3107_v53 = vpop.f32.mrf.mxu0 }
 0x45b   : > { %v3108_v51 = vadd.f32 %v3107_v53, %v7548_v28  ;;  %v3170_v5 = vpop.f32.mrf.mxu1  ;;  %v3321_v56 = vpop.permute.xlu1 %3320  ;;  %v3222_v53 = vadd.f32 %v3220_v63, %v3217_v3 }
 0x45d   : > { %v3171_v12 = vadd.f32 %v3170_v5, %v3108_v51  ;;  %v3311_v54 = vpop.permute.xlu2 %3310 }
 0x45f   : > { %3312 = vrot.lane.b32.xlu0 %v3171_v12, %s5578_s18  ;;  %s8179_s18 = smov 126  }
 0x462   : > { %v3110_v18 = vpop.f32.mrf.mxu0 }
 0x463   : > { %v3111_v29 = vadd.f32 %v3110_v18, %v7554_v43  ;;  %v3173_v1 = vpop.f32.mrf.mxu1  ;;  %v3351_v48 = vpop.permute.xlu1 %3350 }
 0x465   : > { %v3174_v30 = vadd.f32 %v3173_v1, %v3111_v29  ;;  %v3341_v34 = vpop.permute.xlu2 %3340 }
 0x467   : > { %3322 = vrot.lane.b32.xlu2 %v3174_v30, %s5579_s21  ;;  %s8180_s21 = smov 125  }
 0x46a   : > { %v3112_v32 = vpop.f32.mrf.mxu0 }
 0x46b   : > { %v3113_v35 = vadd.f32 %v3112_v32, %v7556_v26  ;;  %v3175_v31 = vpop.f32.mrf.mxu1 }
 0x46d   : > { %v3176_v15 = vadd.f32 %v3175_v31, %v3113_v35  ;;  %v3371_v18 = vpop.permute.xlu2 %3370 }
 0x46f   : > { %3332 = vrot.lane.b32.xlu1 %v3176_v15, %s5580_s19  ;;  %s8005_s19 = smov 120  }
 0x472   : > { %v3115_v39 = vpop.f32.mrf.mxu0 }
 0x473   : > { %v3116_v28 = vadd.f32 %v3115_v39, %v7562_v21  ;;  %v3178_v45 = vpop.f32.mrf.mxu1 }
 0x475   : > { %v3179_v8 = vadd.f32 %v3178_v45, %v3116_v28 }
 0x477   : > { %3342 = vrot.lane.b32.xlu0 %v3179_v8, %s5581_s14  ;;  %s5593_s14 = smov 117  }
 0x47a   : > { %v3117_v43 = vpop.f32.mrf.mxu0 }
 0x47b   : > { %v3118_v26 = vadd.f32 %v3117_v43, %v7564_v0  ;;  %v3180_v36 = vpop.f32.mrf.mxu1 }
 0x47d   : > { %v3181_v10 = vadd.f32 %v3180_v36, %v3118_v26 }
 0x47f   : > { %3352 = vrot.lane.b32.xlu2 %v3181_v10, %s5582_s29  ;;  %s8178_s29 = smov 116  }
 0x482   : > { %v3120_v7 = vpop.f32.mrf.mxu0 }
 0x483   : > { %v3121_v21 = vadd.f32 %v3120_v7, %v7569_v13  ;;  %v3183_v37 = vpop.f32.mrf.mxu1  ;;  %v3388_v13 = vld [vmem:[%s7889_s3] sm:$0xff] }
 0x485   : > { %v3184_v60 = vadd.f32 %v3183_v37, %v3121_v21  ;;  %v5461_v37 = vld [vmem:[%s7890_s4 + $0x28] sm:$0xff] }
 0x486   : > { %3461 = vmatpush.bf16.msrb.mxu2 %v5461_v37 }
 0x487   : > { %3362 = vrot.lane.b32.xlu1 %v3184_v60, %s5583_s20  ;;  %s8177_s20 = smov 127  }
 0x48a   : > { %v3122_v4 = vpop.f32.mrf.mxu0 }
 0x48b   : > { %v3123_v52 = vadd.f32 %v3122_v4, %v7571_v19  ;;  %v3185_v49 = vpop.f32.mrf.mxu1 }
 0x48d   : > { %v3186_v58 = vadd.f32 %v3185_v49, %v3123_v52 }
 0x48f   : > { %3372 = vrot.lane.b32.xlu0 %v3186_v58, %s5584_s22  ;;  %3380 = vrot.lane.b32.xlu1 %v7389_v61, %s5586_s30  ;;  %v3225_v61 = vpop.permute.xlu0 %3224  ;;  %s5594_s22 = smov 111  }
 0x490   : > { %v3227_v51 = vadd.f32 %v3225_v61, %v3222_v53 }
 0x491   : > { %v3263_v31 = vpop.permute.xlu2 %3262 }
 0x492   : > { %v3125_v0 = vpop.f32.mrf.mxu0  ;;  %v3232_v12 = vadd.f32 %v3230_v42, %v3227_v51  ;;  %v3265_v28 = vsel %vm3264_vm3, %v3261_v14, %v3263_v31 }
 0x493   : > { %v3126_v44 = vadd.f32 %v3125_v0, %v7576_v16  ;;  %v3188_v23 = vpop.f32.mrf.mxu1 }
 0x494   : > { %v3237_v40 = vadd.f32 %v3235_v33, %v3232_v12 }
 0x495   : > { %v3189_v22 = vadd.f32 %v3188_v23, %v3126_v44 }
 0x497   : > { %3382 = vrot.lane.b32.xlu2 %v3189_v22, %s5586_s30  ;;  %3391 = vperm.xlu0 %5537, %v3388_v13   ;;  %v3241_v16 = vpop.permute.xlu0 %3240  ;;  %s7999_s30 = smov 109  }
 0x499   : > { %v3243_v5 = vpop.permute.xlu1 %3242 }
 0x49a   : > { %v3127_v57 = vpop.f32.mrf.mxu0  ;;  %v3245_v1 = vsel %vm3244_vm1, %v3241_v16, %v3243_v5  ;;  %vm3455_vm1 = vcmask 785408  }
 0x49b   : > { %v3190_v19 = vpop.f32.mrf.mxu1  ;;  %v3247_v32 = vadd.f32 %v3245_v1, %v3237_v40 }
 0x49f   : > { %v3271_v9 = vpop.permute.xlu0 %3270 }
 0x4a7   : > { %v3301_v41 = vpop.permute.xlu0 %3300 }
 0x4a9   : > { %v3293_v10 = vpop.permute.xlu2 %3292 }
 0x4aa   : > { %v3295_v60 = vsel %vm3294_vm6, %v3291_v59, %v3293_v10 }
 0x4af   : > { %v3331_v17 = vpop.permute.xlu0 %3330 }
 0x4b1   : > { %v3273_v35 = vpop.permute.xlu1 %3272 }
 0x4b2   : > { %v3275_v45 = vsel %vm3274_vm4, %v3271_v9, %v3273_v35 }
 0x4b7   : > { %v3361_v20 = vpop.permute.xlu0 %3360 }
 0x4bf   : > { %v3253_v29 = vpop.permute.xlu0 %3252 }
 0x4c0   : > { %v3255_v30 = vsel %vm3254_vm2, %v3251_v25, %v3253_v29  ;;  %vm3688_vm2 = vcmask 261120  }
 0x4c1   : > { %v3257_v15 = vadd.f32 %v3255_v30, %v3247_v32  ;;  %v3323_v44 = vpop.permute.xlu2 %3322 }
 0x4c2   : > { %v3325_v22 = vsel %vm3324_vm9, %v3321_v56, %v3323_v44  ;;  %vm4065_vm9 = vcmask 8192  }
 0x4c3   : > { %v3267_v8 = vadd.f32 %v3265_v28, %v3257_v15 }
 0x4c5   : > { %v3277_v26 = vadd.f32 %v3275_v45, %v3267_v8 }
 0x4c7   : > { %v3283_v39 = vpop.permute.xlu0 %3282 }
 0x4c8   : > { %v3285_v43 = vsel %vm3284_vm5, %v3281_v38, %v3283_v39 }
 0x4c9   : > { %v3303_v36 = vpop.permute.xlu1 %3302  ;;  %v3287_v7 = vadd.f32 %v3285_v43, %v3277_v26 }
 0x4ca   : > { %v3305_v4 = vsel %vm3304_vm7, %v3301_v41, %v3303_v36  ;;  %v3560_v36 = vld [vmem:[%s7892_s6 + $0x8] sm:$0xff] }
 0x4cb   : > { %v3297_v52 = vadd.f32 %v3295_v60, %v3287_v7  ;;  %v5158_v60 = vld [vmem:[%s7891_s5] sm:$0xf] }
 0x4cd   : > { %v3307_v58 = vadd.f32 %v3305_v4, %v3297_v52  ;;  %v5464_v4 = vld [vmem:[%s7891_s5 + $0xc] sm:$0xf0] }
 0x4ce   : > { %v5159_v52 = vor.u32 %v5464_v4, %v5158_v60 }
 0x4d1   : > { %v3313_v21 = vpop.permute.xlu0 %3312 }
 0x4d2   : > { %v3315_v49 = vsel %vm3314_vm8, %v3311_v54, %v3313_v21  ;;  %v5460_v54 = vld [vmem:[%s7890_s4 + $0x20] sm:$0xff]  ;;  %vm3985_vm8 = vcmask 97280  }
 0x4d3   : > { %v3317_v23 = vadd.f32 %v3315_v49, %v3307_v58  ;;  %3462 = vmatpush.bf16.msrb.mxu2 %v5460_v54 }
 0x4d5   : > { %v3327_v19 = vadd.f32 %v3325_v22, %v3317_v23  ;;  %v5462_v23 = vld [vmem:[%s7891_s5 + $0x4] sm:$0xf] }
 0x4d7   : > { %3463 = vmatpush.bf16.msrb.mxu2 %v5459_v27 }
 0x4d9   : > { %v3353_v11 = vpop.permute.xlu2 %3352 }
 0x4da   : > { %v3355_v63 = vsel %vm3354_vm12, %v3351_v48, %v3353_v11  ;;  %v5166_v11 = vld [vmem:[%s7891_s5 + $0x8] sm:$0xf] }
 0x4e1   : > { %v3333_v0 = vpop.permute.xlu1 %3332 }
 0x4e2   : > { %v3335_v57 = vsel %vm3334_vm10, %v3331_v17, %v3333_v0  ;;  %v5458_v17 = vld [vmem:[%s7890_s4 + $0x10] sm:$0xff]  ;;  %vm4026_vm10 = vcmask 7168  }
 0x4e3   : > { %v3337_v55 = vadd.f32 %v3335_v57, %v3327_v19  ;;  %3464 = vmatpush.bf16.msrb.mxu2 %v5458_v17 }
 0x4e7   : > { %3465 = vmatpush.bf16.msrb.mxu2 %v5457_v24 }
 0x4e9   : > { %v3343_v13 = vpop.permute.xlu0 %3342 }
 0x4ea   : > { %v3345_v6 = vsel %vm3344_vm11, %v3341_v34, %v3343_v13  ;;  %v5456_v34 = vld [vmem:[%s7890_s4] sm:$0xff]  ;;  %v5160_v13 = vld [vmem:[%s7891_s5 + $0x10] sm:$0xf0] }
 0x4eb   : > { %v3347_v46 = vadd.f32 %v3345_v6, %v3337_v55  ;;  %3466 = vmatpush.bf16.msrb.mxu2 %v5456_v34  ;;  %v5163_v22 = vor.u32 %v5462_v23, %v5160_v13 }
 0x4ed   : > { %v3357_v42 = vadd.f32 %v3355_v63, %v3347_v46  ;;  %v5465_v46 = vld [vmem:[%s7891_s5 + $0x14] sm:$0xf0]  ;;  %v3559_v63 = vld [vmem:[%s7892_s6] sm:$0xff] }
 0x4f1   : > { %v3383_v59 = vpop.permute.xlu2 %3382 }
 0x4f9   : > { %v3363_v47 = vpop.permute.xlu1 %3362 }
 0x4fa   : > { %v3365_v61 = vsel %vm3364_vm13, %v3361_v20, %v3363_v47  ;;  %vm4089_vm13 = vcmask 0  }
 0x4fb   : > { %v3367_v16 = vadd.f32 %v3365_v61, %v3357_v42  ;;  %v5167_v42 = vor.u32 %v5465_v46, %v5166_v11  ;;  %v5184_v11 = vld [vmem:[%s7894_s8] sm:$0xf]  ;;  %v5470_v46 = vld [vmem:[%s7894_s8 + $0xc] sm:$0xf0] }
 0x501   : > { %v3373_v33 = vpop.permute.xlu0 %3372  ;;  %v3381_v9 = vpop.permute.xlu1 %3380 }
 0x502   : > { %v3375_v14 = vsel %vm3374_vm14, %v3371_v18, %v3373_v33  ;;  %v3385_v38 = vsel %vm3384_vm15, %v3381_v9, %v3383_v59  ;;  %v5463_v33 = vld [vmem:[%s7891_s5 + $0xc] sm:$0xf] }
 0x503   : > { %v3377_v25 = vadd.f32 %v3375_v14, %v3367_v16  ;;  %v5168_v16 = vld [vmem:[%s7891_s5 + $0x18] sm:$0xf0] }
 0x505   : > { %v3387_v41 = vadd.f32 %v3385_v38, %v3377_v25  ;;  %v5171_v25 = vor.u32 %v5463_v33, %v5168_v16  ;;  %v5185_v33 = vor.u32 %v5470_v46, %v5184_v11 }
 0x509   : > { %v3392_v62 = vpop.permute.xlu0 %3391 }
 0x50a   : > { %v3394_v56 = vadd.f32 %v3392_v62, %v3387_v41 }
 0x50c   : > { %v3395_v50 = vmax.f32 %v3394_v56, 0.0 }
 0x50e   : > { %3397 = vrot.lane.b32.xlu1 %v3395_v50, %s8177_s20 }
 0x580   : > { %v3398_v48 = vpop.permute.xlu1 %3397 }
 0x581   : > { %v3400_v3 = vmax.f32 %v3395_v50, %v3398_v48 }
 0x583   : > { %3402 = vrot.lane.b32.xlu2 %v3400_v3, %s8178_s29 }
 0x5dd   : > { %v3403_v20 = vpop.permute.xlu2 %3402 }
 0x5de   : > { %v3405_v53 = vmax.f32 %v3400_v3, %v3403_v20 }
 0x5e0   : > { %v3406_v51 = vpack.c.bf16 0.0, %v3405_v53 }
 0x5e2   : > { %5155 = vmatmul.msk.bf16.vlgmr.msrb.gmra.mxu2 %vm3455_vm1, %v3406_v51 }
 0x665   : > { %v3468_v5 = vpop.f32.mrf.mxu2 }
 0x666   : > { %v3473_v12 = vpack.c.bf16 %v3468_v5, %v3468_v5 }
 0x668   : > { %v3477_v1 = vunpack.c.l.b16 %v3473_v12 }
 0x66d   : > { %v3470_v18 = vpop.f32.mrf.mxu2 }
 0x66e   : > { %v3474_v29 = vpack.c.bf16 %v3470_v18, %v3470_v18 }
 0x670   : > { %v3478_v40 = vunpack.c.l.b16 %v3474_v29 }
 0x672   : > { %v7644_v30 = vpack.c.b16 %v3478_v40, %v3477_v1  ;;  %v5467_v1 = vld [vmem:[%s7893_s7 + $0x8] sm:$0xff] }
 0x674   : > { %3493 = vrot.lane.b32.xlu0 %v7644_v30, %s8005_s19  ;;  %3496 = vrot.lane.b32.xlu2 %v7644_v30, %s8002_s28  ;;  %s8183_s28 = smov 120   ;;  %s8188_s19 = smov 119  }
 0x675   : > { %3499 = vrot.lane.b32.xlu1 %v7644_v30, %s8001_s17  ;;  %s5597_s17 = smov 123  }
 0x67c   : > { %3484 = vrot.lane.b32.xlu0 %v7644_v30, %s8179_s18  ;;  %3487 = vrot.lane.b32.xlu2 %v7644_v30, %s8180_s21 }
 0x67d   : > { %3526 = vrot.lane.b32.xlu1 %v7644_v30, %s8004_s27 }
 0x684   : > { %3520 = vrot.lane.b32.xlu0 %v7644_v30, %s5591_s15  ;;  %3523 = vrot.lane.b32.xlu2 %v7644_v30, %s5571_s23  ;;  %s8003_s15 = smov 110   ;;  %s8182_s23 = smov 112  }
 0x685   : > { %3481 = vrot.lane.b32.xlu1 %v7644_v30, %s8177_s20 }
 0x68c   : > { %3490 = vrot.lane.b32.xlu0 %v7644_v30, %s8181_s16  ;;  %3517 = vrot.lane.b32.xlu2 %v7644_v30, %s7999_s30  ;;  %s8185_s30 = smov 110  }
 0x68d   : > { %3502 = vrot.lane.b32.xlu1 %v7644_v30, %s5593_s14  ;;  %s8186_s14 = smov 113  }
 0x694   : > { %3511 = vrot.lane.b32.xlu0 %v7644_v30, %s5594_s22  ;;  %s5596_s22 = smov 122  }
 0x695   : > { %3514 = vrot.lane.b32.xlu1 %v7644_v30, %s8003_s15 }
 0x6ce   : > { %v3497_v32 = vpop.permute.xlu2 %3496 }
 0x6cf   : > { %3540 = vrot.lane.b32.xlu1 %v3497_v32, %s5572_s24 }
 0x6d6   : > { %v3488_v35 = vpop.permute.xlu2 %3487 }
 0x6d7   : > { %3505 = vrot.lane.b32.xlu1 %v7644_v30, %s8178_s29 }
 0x6de   : > { %v3524_v31 = vpop.permute.xlu2 %3523 }
 0x6df   : > { %3607 = vmatpush.bf16.msra.mxu2 %v3524_v31 }
 0x6e6   : > { %v3494_v15 = vpop.permute.xlu0 %3493  ;;  %v3518_v26 = vpop.permute.xlu2 %3517 }
 0x6e7   : > { %v3500_v39 = vpop.permute.xlu1 %3499  ;;  %3538 = vrot.lane.b32.xlu0 %v3494_v15, %s5572_s24 }
 0x6e8   : > { %3593 = vmatpush.bf16.msrb.mxu3 %v3500_v39  ;;  %3542 = vrot.lane.b32.xlu2 %v3500_v39, %s5572_s24  ;;  %v5466_v39 = vld [vmem:[%s7893_s7] sm:$0xff] }
 0x6ec   : > { %3594 = vmatpush.bf16.msrb.mxu3 %v3497_v32 }
 0x6ee   : > { %v3485_v28 = vpop.permute.xlu0 %3484 }
 0x6ef   : > { %v3527_v45 = vpop.permute.xlu1 %3526  ;;  %3534 = vrot.lane.b32.xlu0 %v3488_v35, %s5572_s24  ;;  %3532 = vrot.lane.b32.xlu1 %v3485_v28, %s5572_s24 }
 0x6f0   : > { %3595 = vmatpush.bf16.msrb.mxu3 %v3494_v15  ;;  %3508 = vrot.lane.b32.xlu2 %v7644_v30, %s8182_s23 }
 0x6f6   : > { %v3521_v8 = vpop.permute.xlu0 %3520 }
 0x6f7   : > { %v3482_v43 = vpop.permute.xlu1 %3481  ;;  %3528 = vrot.lane.b32.xlu0 %v7644_v30, %s5572_s24  ;;  %3608 = vmatpush.bf16.msra.mxu2 %v3521_v8 }
 0x6f8   : > { %3536 = vrot.lane.b32.xlu2 %v3527_v45, %s5572_s24 }
 0x6fb   : > { %3609 = vmatpush.bf16.msra.mxu2 %v3518_v26 }
 0x6fe   : > { %v3491_v10 = vpop.permute.xlu0 %3490 }
 0x6ff   : > { %v3503_v7 = vpop.permute.xlu1 %3502  ;;  %3568 = vperm.xlu0 %5537, %v3560_v36   ;;  %3596 = vmatpush.bf16.msrb.mxu3 %v3491_v10 }
 0x700   : > { %3530 = vrot.lane.b32.xlu2 %v3482_v43, %s5572_s24  ;;  %3544 = vrot.lane.b32.xlu1 %v3503_v7, %s5572_s24  ;;  %s8184_s24 = smov 121  }
 0x703   : > { %3597 = vmatpush.bf16.msrb.mxu3 %v3488_v35 }
 0x706   : > { %v3512_v37 = vpop.permute.xlu0 %3511 }
 0x707   : > { %v3515_v21 = vpop.permute.xlu1 %3514  ;;  %3598 = vmatpush.bf16.msrb.mxu3 %v3485_v28 }
 0x708   : > { %3610 = vmatpush.bf16.msra.mxu2 %v3515_v21  ;;  %3563 = vperm.xlu2 %5538, %v3559_v63   ;;  %v3797_v63 = vld [vmem:[%s7895_s9 + $0x8] sm:$0xff] }
 0x70b   : > { %3599 = vmatpush.bf16.msrb.mxu3 %v3482_v43 }
 0x70c   : > { %3611 = vmatpush.bf16.msra.mxu2 %v3512_v37 }
 0x70f   : > { %3600 = vmatpush.bf16.msrb.mxu3 %v7644_v30 }
 0x712   : > { %3601 = vmatmul.bf16.vlgmr.msrb.gmra.mxu3 %v5159_v52 }
 0x741   : > { %v3541_v58 = vpop.permute.xlu1 %3540 }
 0x742   : > { %v3543_v49 = vpop.permute.xlu2 %3542 }
 0x743   : > { %3621 = vmatpush.bf16.msra.mxu3 %v3543_v49 }
 0x747   : > { %3622 = vmatpush.bf16.msra.mxu3 %v3541_v58 }
 0x749   : > { %v3506_v44 = vpop.permute.xlu1 %3505 }
 0x74a   : > { %v3509_v0 = vpop.permute.xlu2 %3508 }
 0x74b   : > { %3612 = vmatpush.bf16.msra.mxu2 %v3509_v0 }
 0x74f   : > { %3613 = vmatpush.bf16.msra.mxu2 %v3506_v44 }
 0x752   : > { %v3537_v19 = vpop.permute.xlu2 %3536 }
 0x753   : > { %3614 = vmatpush.bf16.msra.mxu2 %v3503_v7 }
 0x756   : > { %3615 = vmatmul.bf16.vlgmr.msra.gmra.mxu2 %v5163_v22 }
 0x759   : > { %v3539_v57 = vpop.permute.xlu0 %3538 }
 0x75a   : > { %3623 = vmatpush.bf16.msra.mxu3 %v3539_v57  ;;  %v3531_v47 = vpop.permute.xlu2 %3530 }
 0x75e   : > { %3624 = vmatpush.bf16.msra.mxu3 %v3537_v19 }
 0x761   : > { %v3535_v6 = vpop.permute.xlu0 %3534  ;;  %v3533_v55 = vpop.permute.xlu1 %3532 }
 0x762   : > { %3625 = vmatpush.bf16.msra.mxu3 %v3535_v6  ;;  %v3564_v56 = vpop.permute.xlu2 %3563 }
 0x766   : > { %3626 = vmatpush.bf16.msra.mxu3 %v3533_v55 }
 0x769   : > { %v3529_v61 = vpop.permute.xlu0 %3528 }
 0x76a   : > { %3627 = vmatpush.bf16.msra.mxu3 %v3531_v47 }
 0x76e   : > { %3628 = vmatpush.bf16.msra.mxu3 %v3529_v61 }
 0x771   : > { %3629 = vmatmul.bf16.vlgmr.msra.gmra.mxu3 %v5167_v42  ;;  %v3569_v27 = vpop.permute.xlu0 %3568 }
 0x772   : > { %v3545_v14 = vpop.permute.xlu1 %3544  ;;  %3698 = vmatpush.bf16.msrb.mxu3 %v5467_v1  ;;  %v5194_v1 = vld [vmem:[%s7894_s8 + $0x18] sm:$0xf0] }
 0x773   : > { %3642 = vmatpush.bf16.msrb.mxu2 %v3545_v14  ;;  %v3798_v14 = vld [vmem:[%s7895_s9 + $0x10] sm:$0xff] }
 0x776   : > { %5172 = vmatmul.msk.bf16.vlgmr.msrb.gmra.mxu2 %vm1928_vm0, %v5171_v25  ;;  %3699 = vmatpush.bf16.msrb.mxu3 %v5466_v39  ;;  %v5473_v39 = vld [vmem:[%s7894_s8 + $0x2c] sm:$0xf] }
 0x795   : > { %v3602_v9 = vpop.f32.mrf.mxu3 }
 0x796   : > { %v3603_v50 = vadd.f32 %v3602_v9, %v3564_v56  ;;  %v5468_v9 = vld [vmem:[%s7894_s8 + $0x4] sm:$0xf] }
 0x79d   : > { %v3604_v38 = vpop.f32.mrf.mxu3 }
 0x79e   : > { %v3605_v17 = vadd.f32 %v3604_v38, %v3569_v27 }
 0x7d9   : > { %v3616_v59 = vpop.f32.mrf.mxu2 }
 0x7da   : > { %v3617_v24 = vadd.f32 %v3616_v59, %v3603_v50  ;;  %v5186_v59 = vld [vmem:[%s7894_s8 + $0x10] sm:$0xf0]  ;;  %v5472_v50 = vld [vmem:[%s7894_s8 + $0x24] sm:$0xf] }
 0x7db   : > { %v5189_v38 = vor.u32 %v5468_v9, %v5186_v59 }
 0x7e1   : > { %v3618_v41 = vpop.f32.mrf.mxu2 }
 0x7e2   : > { %v3619_v3 = vadd.f32 %v3618_v41, %v3605_v17  ;;  %v5200_v41 = vld [vmem:[%s7894_s8 + $0x20] sm:$0xf] }
 0x7e3   : > { %v3796_v17 = vld [vmem:[%s7895_s9] sm:$0xff] }
 0x7f4   : > { %v3630_v62 = vpop.f32.mrf.mxu3 }
 0x7f5   : > { %v3631_v34 = vadd.f32 %v3630_v62, %v3617_v24  ;;  %v5474_v62 = vld [vmem:[%s7894_s8 + $0x2c] sm:$0xf0] }
 0x7f6   : > { %v5201_v56 = vor.u32 %v5474_v62, %v5200_v41 }
 0x7f9   : > { %v3644_v54 = vpop.f32.mrf.mxu2 }
 0x7fa   : > { %v3645_v53 = vadd.f32 %v3644_v54, %v3631_v34  ;;  %v5202_v54 = vld [vmem:[%s7894_s8 + $0x30] sm:$0xf0] }
 0x7fb   : > { %v5205_v27 = vor.u32 %v5472_v50, %v5202_v54 }
 0x7fc   : > { %v3632_v48 = vpop.f32.mrf.mxu3  ;;  %v3649_v12 = vmax.f32 %v3645_v53, 0.0 }
 0x7fd   : > { %v3633_v20 = vadd.f32 %v3632_v48, %v3619_v3  ;;  %v3799_v3 = vld [vmem:[%s7895_s9 + $0x18] sm:$0xff] }
 0x801   : > { %v3646_v51 = vpop.f32.mrf.mxu2 }
 0x802   : > { %v3647_v5 = vadd.f32 %v3646_v51, %v3633_v20 }
 0x804   : > { %v3650_v18 = vmax.f32 %v3647_v5, 0.0 }
 0x806   : > { %v5539_v29 = vpack.i.bf16 %v3650_v18, %v3649_v12 }
 0x808   : > { %5540 = vrot.lane.b32.xlu1 %v5539_v29, %s8177_s20  ;;  %v5469_v29 = vld [vmem:[%s7894_s8 + $0xc] sm:$0xf] }
 0x87a   : > { %v5541_v40 = vpop.permute.xlu1 %5540 }
 0x87b   : > { %v5543_v30 = vunpack.i.h.bf16 %v5541_v40  ;;  %v5542_v32 = vunpack.i.l.bf16 %v5541_v40 }
 0x87d   : > { %v3660_v35 = vmax.f32 %v3650_v18, %v5543_v30  ;;  %v3659_v31 = vmax.f32 %v3649_v12, %v5542_v32  ;;  %v5192_v12 = vld [vmem:[%s7894_s8 + $0x8] sm:$0xf]  ;;  %v5471_v18 = vld [vmem:[%s7894_s8 + $0x14] sm:$0xf0] }
 0x87e   : > { %v5193_v32 = vor.u32 %v5471_v18, %v5192_v12 }
 0x87f   : > { %v5544_v15 = vpack.i.bf16 %v3660_v35, %v3659_v31 }
 0x881   : > { %5545 = vrot.lane.b32.xlu2 %v5544_v15, %s8183_s28  ;;  %v5475_v15 = vld [vmem:[%s7894_s8 + $0x34] sm:$0xf0] }
 0x8db   : > { %v5546_v28 = vpop.permute.xlu2 %5545 }
 0x8dc   : > { %v5548_v45 = vunpack.i.h.bf16 %v5546_v28  ;;  %v5547_v8 = vunpack.i.l.bf16 %v5546_v28  ;;  %v5210_v28 = vld [vmem:[%s7894_s8 + $0x38] sm:$0xf0] }
 0x8de   : > { %v3670_v43 = vmax.f32 %v3660_v35, %v5548_v45  ;;  %v3669_v26 = vmax.f32 %v3659_v31, %v5547_v8  ;;  %v5197_v35 = vor.u32 %v5469_v29, %v5194_v1  ;;  %v5208_v31 = vld [vmem:[%s7894_s8 + $0x28] sm:$0xf]  ;;  %v5213_v8 = vor.u32 %v5473_v39, %v5210_v28 }
 0x8df   : > { %v5209_v45 = vor.u32 %v5475_v15, %v5208_v31 }
 0x8e0   : > { %v3671_v36 = vpack.c.bf16 %v3670_v43, %v3669_v26  ;;  %v3944_v43 = vlaneseq }
 0x8e2   : > { %5181 = vmatmul.msk.bf16.vlgmr.msrb.gmra.mxu3 %vm3688_vm2, %v3671_v36  ;;  %v3945_v26 = vand.u32 127, %v3944_v43 }
 0x8e4   : > { %v3949_v36 = vand.u32 65535, %v3945_v26 }
 0x965   : > { %v3701_v10 = vpop.f32.mrf.mxu3 }
 0x966   : > { %v3706_v7 = vpack.c.bf16 %v3701_v10, %v3701_v10  ;;  %v3950_v10 = vshrl.u32 %v3945_v26, 16 }
 0x968   : > { %v3710_v60 = vunpack.c.l.b16 %v3706_v7  ;;  %v3953_v7 = vmul.u32 43690, %v3949_v36 }
 0x96d   : > { %v3703_v21 = vpop.f32.mrf.mxu3 }
 0x96e   : > { %v3707_v37 = vpack.c.bf16 %v3703_v21, %v3703_v21  ;;  %v3952_v21 = vmul.u32 43691, %v3949_v36 }
 0x970   : > { %v3711_v4 = vunpack.c.l.b16 %v3707_v37  ;;  %v3954_v37 = vmul.u32 43691, %v3950_v10 }
 0x972   : > { %v3712_v52 = vpack.c.b16 %v3711_v4, %v3710_v60  ;;  %v3956_v60 = vshll.u32 %v3953_v7, 16  ;;  %v3958_v4 = vshll.u32 %v3954_v37, 16 }
 0x974   : > { %3726 = vrot.lane.b32.xlu2 %v3712_v52, %s5596_s22  ;;  %3729 = vrot.lane.b32.xlu1 %v3712_v52, %s8184_s24  ;;  %vm3960_vm3 = vc.u32 %v3952_v21, %v3956_v60 }
 0x975   : > { %3732 = vrot.lane.b32.xlu0 %v3712_v52, %s8183_s28  ;;  %s8190_s28 = smov 118  }
 0x97c   : > { %3753 = vrot.lane.b32.xlu2 %v3712_v52, %s8182_s23  ;;  %3759 = vrot.lane.b32.xlu1 %v3712_v52, %s5597_s17  ;;  %s8189_s23 = smov 115  }
 0x97d   : > { %3756 = vrot.lane.b32.xlu0 %v3712_v52, %s8185_s30 }
 0x984   : > { %3723 = vrot.lane.b32.xlu2 %v3712_v52, %s8181_s16  ;;  %3750 = vrot.lane.b32.xlu1 %v3712_v52, %s8186_s14  ;;  %s8191_s16 = smov 109   ;;  %s447_s14 = scalar_lea.vmem %s7887_s1, %s8195_s26 }
 0x985   : > { %3720 = vrot.lane.b32.xlu0 %v3712_v52, %s8180_s21 }
 0x98c   : > { %3714 = vrot.lane.b32.xlu2 %v3712_v52, %s8177_s20  ;;  %3747 = vrot.lane.b32.xlu1 %v3712_v52, %s8187_s0 }
 0x98d   : > { %3717 = vrot.lane.b32.xlu0 %v3712_v52, %s8179_s18 }
 0x994   : > { %3735 = vrot.lane.b32.xlu2 %v3712_v52, %s8188_s19  ;;  %3741 = vrot.lane.b32.xlu1 %v3712_v52, %s8178_s29 }
 0x995   : > { %3744 = vrot.lane.b32.xlu0 %v3712_v52, %s8189_s23 }
 0x99d   : > { %3738 = vrot.lane.b32.xlu0 %v3712_v52, %s8190_s28 }
 0x9ce   : > { %v3727_v49 = vpop.permute.xlu2 %3726 }
 0x9cf   : > { %3771 = vrot.lane.b32.xlu0 %v3727_v49, %s8191_s16 }
 0x9d6   : > { %v3754_v58 = vpop.permute.xlu2 %3753 }
 0x9de   : > { %v3724_v23 = vpop.permute.xlu2 %3723 }
 0x9e6   : > { %v3730_v0 = vpop.permute.xlu1 %3729  ;;  %v3715_v19 = vpop.permute.xlu2 %3714 }
 0x9e7   : > { %v3733_v44 = vpop.permute.xlu0 %3732  ;;  %3773 = vrot.lane.b32.xlu2 %v3730_v0, %s8191_s16 }
 0x9e8   : > { %3864 = vmatpush.bf16.msra.mxu2 %v3733_v44  ;;  %3775 = vrot.lane.b32.xlu1 %v3733_v44, %s8191_s16 }
 0x9ec   : > { %3865 = vmatpush.bf16.msra.mxu2 %v3730_v0  ;;  %v3961_v0 = vsel %vm3960_vm3, 1, %v5585_v2 }
 0x9ee   : > { %v3760_v13 = vpop.permute.xlu1 %3759  ;;  %v3736_v61 = vpop.permute.xlu2 %3735 }
 0x9ef   : > { %v3757_v22 = vpop.permute.xlu0 %3756 }
 0x9f0   : > { %3866 = vmatpush.bf16.msra.mxu2 %v3727_v49  ;;  %3769 = vrot.lane.b32.xlu1 %v3760_v13, %s8191_s16  ;;  %v3955_v49 = vmul.u32 43690, %v3950_v10 }
 0x9f1   : > { %3883 = vmatpush.bf16.msra.mxu3 %v3757_v22  ;;  %v3957_v22 = vshrl.u32 %v3953_v7, 16 }
 0x9f4   : > { %3867 = vmatpush.bf16.msra.mxu2 %v3724_v23  ;;  %v3963_v23 = vadd.s32 %v3961_v0, %v3955_v49 }
 0x9f5   : > { %3884 = vmatpush.bf16.msra.mxu3 %v3754_v58 }
 0x9f6   : > { %v3751_v57 = vpop.permute.xlu1 %3750 }
 0x9f7   : > { %v3721_v6 = vpop.permute.xlu0 %3720 }
 0x9f8   : > { %3763 = vrot.lane.b32.xlu1 %v3715_v19, %s8191_s16  ;;  %3868 = vmatpush.bf16.msra.mxu2 %v3721_v6 }
 0x9f9   : > { %3885 = vmatpush.bf16.msra.mxu3 %v3751_v57  ;;  %3767 = vrot.lane.b32.xlu2 %v3721_v6, %s8191_s16 }
 0x9fe   : > { %v3748_v55 = vpop.permute.xlu1 %3747 }
 0x9ff   : > { %v3718_v47 = vpop.permute.xlu0 %3717  ;;  %3886 = vmatpush.bf16.msra.mxu3 %v3748_v55  ;;  %v3959_v55 = vshrl.u32 %v3954_v37, 16 }
 0xa00   : > { %3869 = vmatpush.bf16.msra.mxu2 %v3718_v47  ;;  %3765 = vrot.lane.b32.xlu0 %v3718_v47, %s8191_s16 }
 0xa01   : > { %3761 = vrot.lane.b32.xlu2 %v3712_v52, %s8191_s16  ;;  %3802 = vperm.xlu1 %5549, %v3796_v17  }
 0xa04   : > { %3870 = vmatpush.bf16.msra.mxu2 %v3715_v19 }
 0xa06   : > { %v3742_v16 = vpop.permute.xlu1 %3741 }
 0xa07   : > { %v3745_v42 = vpop.permute.xlu0 %3744 }
 0xa08   : > { %3871 = vmatpush.bf16.msra.mxu2 %v3712_v52  ;;  %3777 = vrot.lane.b32.xlu0 %v3736_v61, %s8191_s16  ;;  %v3962_v52 = vadd.s32 %v3956_v60, %v3952_v21  ;;  %s450_s16 = scalar_lea.vmem %s7899_s13, %s8195_s26 }
 0xa09   : > { %3807 = vperm.xlu2 %5538, %v3797_v63   ;;  %3887 = vmatpush.bf16.msra.mxu3 %v3745_v42 }
 0xa0a   : > { %3817 = vperm.xlu1 %5549, %v3799_v3   ;;  %vm3964_vm4 = vc.u32 %v3962_v52, %v3958_v4 }
 0xa0b   : > { %3872 = vmatmul.bf16.vlgmr.msra.gmra.mxu2 %v5185_v33  ;;  %v3965_v13 = vsel %vm3964_vm4, 1, %v5585_v2 }
 0xa0c   : > { %v3967_v57 = vadd.s32 %v3965_v13, %v3963_v23  ;;  %v4062_v23 = vld [vmem:[%s447_s14] sm:$0x1] }
 0xa0d   : > { %3888 = vmatpush.bf16.msra.mxu3 %v3742_v16  ;;  %v4063_v13 = vld [vmem:[%s7898_s12] sm:$0x1] }
 0xa0e   : > { %v3968_v47 = vadd.s32 %v3967_v57, %v3957_v22 }
 0xa0f   : > { %v3739_v25 = vpop.permute.xlu0 %3738 }
 0xa10   : > { %3812 = vperm.xlu0 %5537, %v3798_v14   ;;  %v3969_v11 = vadd.s32 %v3968_v47, %v3959_v55 }
 0xa11   : > { %3889 = vmatpush.bf16.msra.mxu3 %v3739_v25 }
 0xa12   : > { %v3970_v46 = vshrl.u32 %v3969_v11, 2 }
 0xa14   : > { %v3971_v42 = vmul.u32 6, %v3970_v46 }
 0xa15   : > { %3890 = vmatpush.bf16.msra.mxu3 %v3736_v61 }
 0xa16   : > { %v3972_v33 = vsub.s32 %v3945_v26, %v3971_v42  ;;  %v4019_v42 = vld [vmem:[%s7896_s10 + $0x8] sm:$0xff] }
 0xa18   : > { %3891 = vmatmul.bf16.vlgmr.msra.gmra.mxu3 %v5189_v38  ;;  %vm3976_vm5 = vcmp.lt.s32.totalorder %v3972_v33, 0  ;;  %v3978_v59 = vadd.s32 6, %v3972_v33 }
 0xa1b   : > { %3877 = vmatmul.bf16.gmra.mxu2 %v5201_v56 }
 0xa28   : > { %3896 = vmatmul.bf16.gmra.mxu3 %v5205_v27 }
 0xa41   : > { %v3774_v48 = vpop.permute.xlu2 %3773  ;;  %v3772_v34 = vpop.permute.xlu0 %3771 }
 0xa53   : > { %v3768_v53 = vpop.permute.xlu2 %3767 }
 0xa5a   : > { %v3776_v24 = vpop.permute.xlu1 %3775 }
 0xa5b   : > { %3902 = vmatpush.bf16.msrb.mxu2 %v3776_v24  ;;  %v3762_v40 = vpop.permute.xlu2 %3761 }
 0xa5f   : > { %3903 = vmatpush.bf16.msrb.mxu2 %v3774_v48 }
 0xa62   : > { %v3770_v20 = vpop.permute.xlu1 %3769 }
 0xa63   : > { %3904 = vmatpush.bf16.msrb.mxu2 %v3772_v34  ;;  %v3808_v54 = vpop.permute.xlu2 %3807 }
 0xa67   : > { %3905 = vmatpush.bf16.msrb.mxu2 %v3770_v20 }
 0xa6a   : > { %v3764_v5 = vpop.permute.xlu1 %3763 }
 0xa6b   : > { %3906 = vmatpush.bf16.msrb.mxu2 %v3768_v53 }
 0xa72   : > { %v3766_v51 = vpop.permute.xlu0 %3765 }
 0xa73   : > { %3907 = vmatpush.bf16.msrb.mxu2 %v3766_v51  ;;  %v3803_v25 = vpop.permute.xlu1 %3802 }
 0xa77   : > { %3908 = vmatpush.bf16.msrb.mxu2 %v3764_v5 }
 0xa7a   : > { %v3778_v30 = vpop.permute.xlu0 %3777 }
 0xa7b   : > { %3909 = vmatpush.bf16.msrb.mxu2 %v3762_v40  ;;  %3928 = vmatpush.bf16.msrb.mxu3 %v3778_v30 }
 0xa7e   : > { %3910 = vmatmul.bf16.vlgmr.msrb.gmra.mxu2 %v5193_v32  ;;  %5214 = vmatmul.msk.bf16.vlgmr.msrb.gmra.mxu3 %vm1928_vm0, %v5197_v35  ;;  %v3818_v32 = vpop.permute.xlu1 %3817 }
 0xa82   : > { %v3813_v12 = vpop.permute.xlu0 %3812 }
 0xa8e   : > { %3915 = vmatmul.bf16.gmra.mxu2 %v5209_v45  ;;  %5215 = vmatmul.msk.bf16.gmra.mxu3 %vm1928_vm0, %v5213_v8  ;;  %v3873_v58 = vpop.f32.mrf.mxu2  ;;  %vm3975_vm0 = vcmp.ne.s32.totalorder %v3972_v33, 0 }
 0xa8f   : > { %v3874_v9 = vadd.f32 %v3873_v58, %v3803_v25  ;;  %vm3977_vm6 = vmand %vm3976_vm5, %vm3975_vm0  ;;  %v4018_v25 = vld [vmem:[%s7896_s10] sm:$0xff] }
 0xa90   : > { %v3979_v56 = vsel %vm3977_vm6, %v3978_v59, %v3972_v33  ;;  %v4041_v33 = vld [vmem:[%s7897_s11 + $0x8] sm:$0xff]  ;;  %v4040_v59 = vld [vmem:[%s7897_s11] sm:$0xff] }
 0xa91   : > { %vm7812_vm7 = vcmp.lt.s32.totalorder %v3979_v56, 2 }
 0xa96   : > { %v3875_v19 = vpop.f32.mrf.mxu2 }
 0xa97   : > { %v3876_v17 = vadd.f32 %v3875_v19, %v3808_v54  ;;  %v4042_v54 = vld [vmem:[%s7897_s11 + $0x10] sm:$0xff] }
 0xa9b   : > { %v3892_v44 = vpop.f32.mrf.mxu3 }
 0xa9c   : > { %v3893_v2 = vadd.f32 %v3892_v44, %v3874_v9 }
 0xa9e   : > { %v3878_v63 = vpop.f32.mrf.mxu2 }
 0xa9f   : > { %v3879_v18 = vadd.f32 %v3878_v63, %v3813_v12 }
 0xaa3   : > { %v3894_v6 = vpop.f32.mrf.mxu3 }
 0xaa4   : > { %v3895_v48 = vadd.f32 %v3894_v6, %v3876_v17  ;;  %v4064_v6 = vmul.f32 %v4063_v13, %v4062_v23 }
 0xaa6   : > { %v3880_v16 = vpop.f32.mrf.mxu2  ;;  %v4066_v55 = vsel %vm4065_vm9, %v4064_v6, 0.0 }
 0xaa7   : > { %v3881_v8 = vadd.f32 %v3880_v16, %v3818_v32 }
 0xaab   : > { %v3897_v61 = vpop.f32.mrf.mxu3 }
 0xaac   : > { %v3898_v40 = vadd.f32 %v3897_v61, %v3879_v18 }
 0xab3   : > { %v3899_v14 = vpop.f32.mrf.mxu3 }
 0xab4   : > { %v3900_v36 = vadd.f32 %v3899_v14, %v3881_v8 }
 0xb01   : > { %v3911_v38 = vpop.f32.mrf.mxu2  ;;  %v3930_v41 = vpop.f32.mrf.mxu3 }
 0xb02   : > { %v3912_v62 = vadd.f32 %v3911_v38, %v3893_v2  ;;  %v4020_v2 = vld [vmem:[%s7896_s10 + $0x10] sm:$0xff] }
 0xb04   : > { %v3931_v50 = vadd.f32 %v3930_v41, %v3912_v62 }
 0xb06   : > { %v3940_v24 = vmax.f32 %v3931_v50, 0.0 }
 0xb08   : > { %v3981_v3 = vsel %vm7812_vm7, %v3940_v24, 0.0  ;;  %v4002_v1 = vsel %vm7812_vm7, %v3940_v24, -inf  ;;  %v4043_v24 = vld [vmem:[%s7897_s11 + $0x18] sm:$0xff] }
 0xb09   : > { %v3913_v34 = vpop.f32.mrf.mxu2  ;;  %v3986_v20 = vsel %vm3985_vm8, %v3981_v3, 0.0  ;;  %v3932_v53 = vpop.f32.mrf.mxu3  ;;  %v4006_v15 = vsel %vm3985_vm8, %v4002_v1, -inf }
 0xb0a   : > { %v3914_v51 = vadd.f32 %v3913_v34, %v3895_v48  ;;  %3987 = vadd.xlane.f32.xlu2 %v3986_v20  ;;  %v4021_v34 = vld [vmem:[%s7896_s10 + $0x18] sm:$0xff] }
 0xb0c   : > { %v3933_v5 = vadd.f32 %v3932_v53, %v3914_v51 }
 0xb0e   : > { %v3941_v29 = vmax.f32 %v3933_v5, 0.0 }
 0xb10   : > { %v3982_v30 = vsel %vm7812_vm7, %v3941_v29, 0.0  ;;  %v4003_v26 = vsel %vm7812_vm7, %v3941_v29, -inf }
 0xb11   : > { %v3916_v35 = vpop.f32.mrf.mxu2  ;;  %v3989_v31 = vsel %vm3985_vm8, %v3982_v30, 0.0  ;;  %v3935_v39 = vpop.f32.mrf.mxu3  ;;  %v4009_v21 = vsel %vm3985_vm8, %v4003_v26, -inf }
 0xb12   : > { %v3917_v28 = vadd.f32 %v3916_v35, %v3898_v40  ;;  %3990 = vadd.xlane.f32.xlu0 %v3989_v31  ;;  %4007 = vmax.xlane.f32.xlu2 %v4006_v15 }
 0xb14   : > { %v3936_v45 = vadd.f32 %v3935_v39, %v3917_v28 }
 0xb16   : > { %v3942_v43 = vmax.f32 %v3936_v45, 0.0 }
 0xb18   : > { %v3983_v10 = vsel %vm7812_vm7, %v3942_v43, 0.0  ;;  %v4004_v58 = vsel %vm7812_vm7, %v3942_v43, -inf }
 0xb19   : > { %v3918_v7 = vpop.f32.mrf.mxu2  ;;  %v3992_v37 = vsel %vm3985_vm8, %v3983_v10, 0.0  ;;  %v3937_v4 = vpop.f32.mrf.mxu3  ;;  %v4012_v57 = vsel %vm3985_vm8, %v4004_v58, -inf }
 0xb1a   : > { %v3919_v60 = vadd.f32 %v3918_v7, %v3900_v36  ;;  %4010 = vmax.xlane.f32.xlu2 %v4009_v21  ;;  %3993 = vadd.xlane.f32.xlu1 %v3992_v37 }
 0xb1c   : > { %v3938_v52 = vadd.f32 %v3937_v4, %v3919_v60 }
 0xb1e   : > { %v3943_v49 = vmax.f32 %v3938_v52, 0.0 }
 0xb20   : > { %v3984_v0 = vsel %vm7812_vm7, %v3943_v49, 0.0  ;;  %v4005_v44 = vsel %vm7812_vm7, %v3943_v49, -inf }
 0xb21   : > { %v3995_v22 = vsel %vm3985_vm8, %v3984_v0, 0.0  ;;  %v4015_v19 = vsel %vm3985_vm8, %v4005_v44, -inf }
 0xb22   : > { %3996 = vadd.xlane.f32.xlu0 %v3995_v22  ;;  %4013 = vmax.xlane.f32.xlu1 %v4012_v57 }
 0xb23   : > { %4016 = vmax.xlane.f32.xlu2 %v4015_v19 }
 0xb2a   : > { %4067 = vadd.xlane.f32.xlu0 %v4066_v55 }
 0xb7d   : > { %v3988_v47 = vpop.xlane.xlu2 %3987 }
 0xb7e   : > { %v3998_v61 = vmul.f32 0.25, %v3988_v47 }
 0xb80   : > { %v4022_v62 = vmul.f32 %v4018_v25, %v3998_v61 }
 0xb82   : > { %v4027_v48 = vsel %vm4026_vm10, %v4022_v62, 0.0 }
 0xb85   : > { %v4008_v11 = vpop.xlane.xlu2 %4007  ;;  %v3991_v46 = vpop.xlane.xlu0 %3990 }
 0xb86   : > { %v3999_v63 = vmul.f32 0.25, %v3991_v46  ;;  %v4044_v56 = vmul.f32 %v4040_v59, %v4008_v11 }
 0xb88   : > { %v4023_v38 = vmul.f32 %v4019_v42, %v3999_v63  ;;  %v4048_v53 = vsel %vm4026_vm10, %v4044_v56, 0.0 }
 0xb8a   : > { %v4028_v27 = vsel %vm4026_vm10, %v4023_v38, 0.0 }
 0xb8b   : > { %v4029_v29 = vadd.f32 %v4028_v27, %v4027_v48 }
 0xb8d   : > { %v4011_v16 = vpop.xlane.xlu2 %4010  ;;  %v3994_v14 = vpop.xlane.xlu1 %3993 }
 0xb8e   : > { %v4000_v9 = vmul.f32 0.25, %v3994_v14  ;;  %v4045_v41 = vmul.f32 %v4041_v33, %v4011_v16 }
 0xb90   : > { %v4024_v50 = vmul.f32 %v4020_v2, %v4000_v9  ;;  %v4049_v17 = vsel %vm4026_vm10, %v4045_v41, 0.0 }
 0xb91   : > { %v4050_v1 = vadd.f32 %v4049_v17, %v4048_v53 }
 0xb92   : > { %v4030_v51 = vsel %vm4026_vm10, %v4024_v50, 0.0 }
 0xb93   : > { %v4031_v35 = vadd.f32 %v4030_v51, %v4029_v29 }
 0xb95   : > { %v4014_v3 = vpop.xlane.xlu1 %4013  ;;  %v3997_v20 = vpop.xlane.xlu0 %3996 }
 0xb96   : > { %v4046_v5 = vmul.f32 %v4042_v54, %v4014_v3  ;;  %v4001_v12 = vmul.f32 0.25, %v3997_v20  ;;  %v4017_v18 = vpop.xlane.xlu2 %4016 }
 0xb97   : > { %v4047_v40 = vmul.f32 %v4043_v24, %v4017_v18 }
 0xb98   : > { %v4051_v30 = vsel %vm4026_vm10, %v4046_v5, 0.0  ;;  %v4025_v32 = vmul.f32 %v4021_v34, %v4001_v12 }
 0xb99   : > { %v4052_v31 = vadd.f32 %v4051_v30, %v4050_v1  ;;  %v4053_v39 = vsel %vm4026_vm10, %v4047_v40, 0.0 }
 0xb9a   : > { %v4032_v15 = vsel %vm4026_vm10, %v4025_v32, 0.0 }
 0xb9b   : > { %v4033_v28 = vadd.f32 %v4032_v15, %v4031_v35  ;;  %v4054_v45 = vadd.f32 %v4053_v39, %v4052_v31 }
 0xb9d   : > { %v4034_v8 = vrot.slane %v4033_v28, 4  ;;  %v4055_v43 = vrot.slane %v4054_v45, 4  ;;  %v4068_v58 = vpop.xlane.xlu0 %4067 }
 0xb9f   : > { %v4035_v26 = vadd.f32 %v4034_v8, %v4033_v28  ;;  %v4056_v36 = vadd.f32 %v4055_v43, %v4054_v45 }
 0xba1   : > { %v4057_v10 = vrot.slane %v4056_v36, 2  ;;  %v4036_v7 = vrot.slane %v4035_v26, 2 }
 0xba3   : > { %v4037_v21 = vadd.f32 %v4036_v7, %v4035_v26  ;;  %v4058_v37 = vadd.f32 %v4057_v10, %v4056_v36 }
 0xba5   : > { %v4038_v60 = vrot.slane %v4037_v21, 1  ;;  %v4059_v4 = vrot.slane %v4058_v37, 1 }
 0xba7   : > { %v4039_v52 = vadd.f32 %v4038_v60, %v4037_v21  ;;  %v4060_v49 = vadd.f32 %v4059_v4, %v4058_v37 }
 0xba9   : > { %v4061_v0 = vadd.f32 %v4060_v49, %v4039_v52 }
 0xbab   : > { %v4069_v44 = vadd.f32 %v4068_v58, %v4061_v0 }
 0xbad   : > { %v4070_v23 = vsub.f32 0.0, %v4069_v44 }
 0xbaf   : > { %v4071_v13 = vmul.f32 1.442695, %v4070_v23 }
 0xbb1   : > { %5550 = vpow2.f32 %v4071_v13 }
 0xbb7   : > { %v5551_v22 = vpop.eup %5550 }
 0xbb8   : > { %v4073_v57 = vadd.f32 1.0, %v5551_v22 }
 0xbba   : > { %5552 = vrcp.f32 %v4073_v57  ;;  %v4085_v47 = vand.u32 2147483648, %v4073_v57  ;;  %v4083_v46 = vand.u32 2147483647, %v4073_v57  ;;  %vm4079_vm12 = vweird.f32 %v4073_v57 }
 0xbbc   : > { %v4086_v61 = vor.u32 1.1754944e-38, %v4085_v47  ;;  %vm4084_vm15 = vcmp.eq.f32.partialorder %v4083_v46, 8.507059e+37 }
 0xbc0   : > { %v5553_v19 = vpop.eup %5552 }
 0xbc1   : > { %v4075_v6 = vmul.f32 %v5553_v19, %v4073_v57  ;;  %vm4080_vm11 = vweird.f32 %v5553_v19 }
 0xbc2   : > { %vm4081_vm14 = vmor %vm4079_vm12, %vm4080_vm11 }
 0xbc3   : > { %v4076_v55 = vsub.f32 1.0, %v4075_v6 }
 0xbc5   : > { %v4077_v11 = vmul.f32 %v5553_v19, %v4076_v55 }
 0xbc7   : > { %v4078_v63 = vadd.f32 %v5553_v19, %v4077_v11 }
 0xbc9   : > { %v4082_v42 = vsel %vm4081_vm14, %v5553_v19, %v4078_v63 }
 0xbca   : > { %v4087_v33 = vsel %vm4084_vm15, %v4086_v61, %v4082_v42 }
 0xbcb   : > { %4090 = vst.msk [vmem:[%s450_s16] sm:$0x1] %vm4089_vm13, %v4087_v33 }
 0xbcc PF: > { %s23_s25 = sadd.s32 1, %s5560_s25  }
 0xbcd   : > { %p20_p4 = scmp.ge.s32.totalorder %s23_s25, 4  }
 0xbcf   :  { %22 = sbr.rel (!%p20_p4) target bundleno = 2 (0x2), region = 105 }

</bundles_post_ra>
